<compile_context>
chip_gen: v7x
topology: tpu7x:2x2x1
jax: 0.10.0
libtpu: 0.0.40
codegen_flags: <defaults>
</compile_context>

<pallas_src>
import jax
import jax.numpy as jnp
import numpy as np
from jax.experimental import pallas as pl
from jax.experimental.pallas import tpu as pltpu


def _residual_block_kernel(x_ref, w1_ref, b1_ref, w2_ref, b2_ref, o_ref,
                           xpad_ref):
    """One batch element: (conv3x3 -> folded-BN bias -> ReLU) x2, + residual."""
    _, H, W, C = x_ref.shape
    x = x_ref[0].astype(jnp.float32)                       # (H, W, C)

    # Zero the padded halo scratch once; only the interior is (re)written below,
    # so the 1-pixel zero border provides "same" padding for both convs.
    xpad_ref[...] = jnp.zeros_like(xpad_ref)
    xpad_ref[pl.ds(1, H), pl.ds(1, W), :] = x

    def conv_bias_relu(w_ref, b_ref):
        # im2col: one (H*W, 9*C) slab -> a single MXU matmul with K = 9*C.
        patches = jnp.concatenate(
            [xpad_ref[pl.ds(dy, H), pl.ds(dx, W), :]
             for dy in range(3) for dx in range(3)],
            axis=-1)                                       # (H, W, 9*C) f32
        patches = patches.reshape(H * W, 9 * C).astype(jnp.bfloat16)
        y = jnp.dot(patches, w_ref[...],                   # (H*W, C) f32 acc
                    preferred_element_type=jnp.float32)
        return jnp.maximum(y + b_ref[...], 0.0)            # bias + ReLU in f32

    # conv1 -> BN(folded) -> ReLU
    y1 = conv_bias_relu(w1_ref, b1_ref)
    # Reuse the same padded scratch (border is still zero) for conv2's input.
    xpad_ref[pl.ds(1, H), pl.ds(1, W), :] = y1.reshape(H, W, C)
    # conv2 -> BN(folded) -> ReLU
    y2 = conv_bias_relu(w2_ref, b2_ref)

    # Residual add (f32), then store.
    o_ref[0] = (y2.reshape(H, W, C) + x).astype(o_ref.dtype)


@jax.jit
def identity_residual_block(x_nhwc, w1_mat, b1, w2_mat, b2):
    """x_nhwc: (N,H,W,C).  w*_mat: (9*C, C) bf16, BN scale folded in.
       b*: (1, C) f32 BN shift."""
    N, H, W, C = x_nhwc.shape

    act_spec = pl.BlockSpec((1, H, W, C), lambda n: (n, 0, 0, 0))
    wt_spec = pl.BlockSpec((9 * C, C), lambda n: (0, 0))
    vec_spec = pl.BlockSpec((1, C), lambda n: (0, 0))

    return pl.pallas_call(
        _residual_block_kernel,
        out_shape=jax.ShapeDtypeStruct((N, H, W, C), x_nhwc.dtype),
        grid_spec=pltpu.PrefetchScalarGridSpec(
            num_scalar_prefetch=0,
            grid=(N,),
            in_specs=[act_spec, wt_spec, vec_spec, wt_spec, vec_spec],
            out_specs=act_spec,
            scratch_shapes=[pltpu.VMEM((H + 2, W + 2, C), jnp.float32)],
        ),
        compiler_params=pltpu.CompilerParams(
            dimension_semantics=("parallel",),
            vmem_limit_bytes=32 * 1024 * 1024),
    )(x_nhwc, w1_mat, b1, w2_mat, b2)


def fold_bn_into_conv(w_hwio, gamma, beta, mean, var, eps=1e-5):
    """Fold eval-mode BN into the conv weight (scale) and a bias (shift).

    Returns:
      w_mat  : (9*Cin, Cout) bf16 matrix for the kernel's im2col matmul.
      w_hwio : (3,3,Cin,Cout) bf16 folded weight for the lax reference.
      shift  : (1, Cout) f32 bias applied after the conv.
    """
    scale = gamma / jnp.sqrt(var + eps)
    shift = (beta - mean * scale).reshape(1, -1).astype(jnp.float32)
    w_folded = (w_hwio * scale[None, None, None, :]).astype(jnp.bfloat16)
    kh, kw, cin, cout = w_hwio.shape
    w_mat = w_folded.reshape(kh * kw * cin, cout)
    return w_mat, w_folded, shift


def reference_block(x_nhwc, w1_hwio, b1, w2_hwio, b2):
    """Pure-JAX reference mirroring the kernel numerics (bf16 MXU, f32 accum)."""
    dn = jax.lax.conv_dimension_numbers(x_nhwc.shape, w1_hwio.shape,
                                        ("NHWC", "HWIO", "NHWC"))

    def conv(a, w):
        return jax.lax.conv_general_dilated(
            a.astype(jnp.bfloat16), w, (1, 1), ((1, 1), (1, 1)),
            dimension_numbers=dn, preferred_element_type=jnp.float32)

    y = jnp.maximum(conv(x_nhwc, w1_hwio) + b1, 0.0)
    y = jnp.maximum(conv(y, w2_hwio) + b2, 0.0)
    return y + x_nhwc


if __name__ == "__main__":
    key = jax.random.PRNGKey(0)
    N, C, H, W = 2, 16, 16, 16   # in_channels == out_channels (identity residual)

    k = iter(jax.random.split(key, 12))
    x_nchw = jax.random.normal(next(k), (N, C, H, W), jnp.float32)

    # Conv weights (PyTorch OIHW) -> HWIO.
    w1_oihw = jax.random.normal(next(k), (C, C, 3, 3), jnp.float32) * 0.1
    w2_oihw = jax.random.normal(next(k), (C, C, 3, 3), jnp.float32) * 0.1
    w1_hwio = jnp.transpose(w1_oihw, (2, 3, 1, 0))
    w2_hwio = jnp.transpose(w2_oihw, (2, 3, 1, 0))

    # BatchNorm parameters (eval mode: running stats), deterministic.
    g1 = 1.0 + 0.1 * jax.random.normal(next(k), (C,), jnp.float32)
    be1 = 0.1 * jax.random.normal(next(k), (C,), jnp.float32)
    m1 = 0.1 * jax.random.normal(next(k), (C,), jnp.float32)
    v1 = 1.0 + 0.1 * jax.random.uniform(next(k), (C,), jnp.float32)
    g2 = 1.0 + 0.1 * jax.random.normal(next(k), (C,), jnp.float32)
    be2 = 0.1 * jax.random.normal(next(k), (C,), jnp.float32)
    m2 = 0.1 * jax.random.normal(next(k), (C,), jnp.float32)
    v2 = 1.0 + 0.1 * jax.random.uniform(next(k), (C,), jnp.float32)

    w1_mat, w1_ref_hwio, b1 = fold_bn_into_conv(w1_hwio, g1, be1, m1, v1)
    w2_mat, w2_ref_hwio, b2 = fold_bn_into_conv(w2_hwio, g2, be2, m2, v2)

    # NCHW -> NHWC for the kernel.
    x_nhwc = jnp.transpose(x_nchw, (0, 2, 3, 1))

    out = identity_residual_block(x_nhwc, w1_mat, b1, w2_mat, b2)
    out = jax.block_until_ready(out)

    ref = reference_block(x_nhwc, w1_ref_hwio, b1, w2_ref_hwio, b2)
    np.testing.assert_allclose(np.asarray(out), np.asarray(ref),
                               rtol=2e-3, atol=2e-3)

    # Back to NCHW to match the PyTorch output convention.
    out_nchw = jnp.transpose(out, (0, 3, 1, 2))
    assert out_nchw.shape == (N, C, H, W)

    print("KERNEL_OK")
</pallas_src>

<mosaic_0001>
module attributes {stable_mosaic.version = 11 : i64} {
  func.func @_residual_block_kernel(%arg0: i32, %arg1: memref<1x16x16x16xf32, #tpu.memory_space<vmem>>, %arg2: memref<144x16xbf16, #tpu.memory_space<vmem>>, %arg3: memref<1x16xf32, #tpu.memory_space<vmem>>, %arg4: memref<144x16xbf16, #tpu.memory_space<vmem>>, %arg5: memref<1x16xf32, #tpu.memory_space<vmem>>, %arg6: memref<1x16x16x16xf32, #tpu.memory_space<vmem>>, %arg7: memref<18x18x16xf32, #tpu.memory_space<vmem>>) attributes {dimension_semantics = [#tpu.dimension_semantics<parallel>], iteration_bounds = array<i64: 2>, scalar_prefetch = 0 : i64, scratch_operands = 1 : i64, tpu.core_type = #tpu.core_type<tc>, window_params = [{transform_indices = @transform_0, window_bounds = array<i64: 1, 16, 16, 16>}, {pipeline_mode = #tpu.pipeline_mode<synchronous>, transform_indices = @transform_1, window_bounds = array<i64: 144, 16>}, {pipeline_mode = #tpu.pipeline_mode<synchronous>, transform_indices = @transform_2, window_bounds = array<i64: 1, 16>}, {pipeline_mode = #tpu.pipeline_mode<synchronous>, transform_indices = @transform_3, window_bounds = array<i64: 144, 16>}, {pipeline_mode = #tpu.pipeline_mode<synchronous>, transform_indices = @transform_4, window_bounds = array<i64: 1, 16>}, {transform_indices = @transform_5, window_bounds = array<i64: 1, 16, 16, 16>}]} {
    %c0 = arith.constant 0 : index
    %c0_0 = arith.constant 0 : index
    %c0_1 = arith.constant 0 : index
    %c0_2 = arith.constant 0 : index
    %0 = vector.load %arg1[%c0, %c0_0, %c0_1, %c0_2] : memref<1x16x16x16xf32, #tpu.memory_space<vmem>>, vector<1x16x16x16xf32>
    %1 = vector.shape_cast %0 : vector<1x16x16x16xf32> to vector<16x16x16xf32>
    %cst = arith.constant 0.000000e+00 : f32
    %2 = vector.broadcast %cst : f32 to vector<18x18x16xf32>
    %c0_3 = arith.constant 0 : index
    %c0_4 = arith.constant 0 : index
    %c0_5 = arith.constant 0 : index
    %3 = vector.load %arg7[%c0_3, %c0_4, %c0_5] : memref<18x18x16xf32, #tpu.memory_space<vmem>>, vector<18x18x16xf32>
    tpu.vector_store %arg7[%c0_3, %c0_4, %c0_5], %2 {strides = array<i32>} : memref<18x18x16xf32, #tpu.memory_space<vmem>>, vector<18x18x16xf32>,
    %c1 = arith.constant 1 : index
    %c1_6 = arith.constant 1 : index
    %c0_7 = arith.constant 0 : index
    %4 = vector.load %arg7[%c1, %c1_6, %c0_7] : memref<18x18x16xf32, #tpu.memory_space<vmem>>, vector<16x16x16xf32>
    tpu.vector_store %arg7[%c1, %c1_6, %c0_7], %1 {strides = array<i32>} : memref<18x18x16xf32, #tpu.memory_space<vmem>>, vector<16x16x16xf32>,
    %c0_8 = arith.constant 0 : index
    %c0_9 = arith.constant 0 : index
    %c0_10 = arith.constant 0 : index
    %5 = vector.load %arg7[%c0_8, %c0_9, %c0_10] : memref<18x18x16xf32, #tpu.memory_space<vmem>>, vector<16x16x16xf32>
    %c0_11 = arith.constant 0 : index
    %c1_12 = arith.constant 1 : index
    %c0_13 = arith.constant 0 : index
    %6 = vector.load %arg7[%c0_11, %c1_12, %c0_13] : memref<18x18x16xf32, #tpu.memory_space<vmem>>, vector<16x16x16xf32>
    %c0_14 = arith.constant 0 : index
    %c2 = arith.constant 2 : index
    %c0_15 = arith.constant 0 : index
    %7 = vector.load %arg7[%c0_14, %c2, %c0_15] : memref<18x18x16xf32, #tpu.memory_space<vmem>>, vector<16x16x16xf32>
    %c1_16 = arith.constant 1 : index
    %c0_17 = arith.constant 0 : index
    %c0_18 = arith.constant 0 : index
    %8 = vector.load %arg7[%c1_16, %c0_17, %c0_18] : memref<18x18x16xf32, #tpu.memory_space<vmem>>, vector<16x16x16xf32>
    %c1_19 = arith.constant 1 : index
    %c1_20 = arith.constant 1 : index
    %c0_21 = arith.constant 0 : index
    %9 = vector.load %arg7[%c1_19, %c1_20, %c0_21] : memref<18x18x16xf32, #tpu.memory_space<vmem>>, vector<16x16x16xf32>
    %c1_22 = arith.constant 1 : index
    %c2_23 = arith.constant 2 : index
    %c0_24 = arith.constant 0 : index
    %10 = vector.load %arg7[%c1_22, %c2_23, %c0_24] : memref<18x18x16xf32, #tpu.memory_space<vmem>>, vector<16x16x16xf32>
    %c2_25 = arith.constant 2 : index
    %c0_26 = arith.constant 0 : index
    %c0_27 = arith.constant 0 : index
    %11 = vector.load %arg7[%c2_25, %c0_26, %c0_27] : memref<18x18x16xf32, #tpu.memory_space<vmem>>, vector<16x16x16xf32>
    %c2_28 = arith.constant 2 : index
    %c1_29 = arith.constant 1 : index
    %c0_30 = arith.constant 0 : index
    %12 = vector.load %arg7[%c2_28, %c1_29, %c0_30] : memref<18x18x16xf32, #tpu.memory_space<vmem>>, vector<16x16x16xf32>
    %c2_31 = arith.constant 2 : index
    %c2_32 = arith.constant 2 : index
    %c0_33 = arith.constant 0 : index
    %13 = vector.load %arg7[%c2_31, %c2_32, %c0_33] : memref<18x18x16xf32, #tpu.memory_space<vmem>>, vector<16x16x16xf32>
    %14 = tpu.concatenate %5, %6, %7, %8, %9, %10, %11, %12, %13 in 2 : vector<16x16x16xf32>, vector<16x16x16xf32>, vector<16x16x16xf32>, vector<16x16x16xf32>, vector<16x16x16xf32>, vector<16x16x16xf32>, vector<16x16x16xf32>, vector<16x16x16xf32>, vector<16x16x16xf32> -> vector<16x16x144xf32>
    %15 = vector.shape_cast %14 : vector<16x16x144xf32> to vector<256x144xf32>
    %16 = arith.truncf %15 : vector<256x144xf32> to vector<256x144xbf16>
    %c0_34 = arith.constant 0 : index
    %c0_35 = arith.constant 0 : index
    %17 = vector.load %arg2[%c0_34, %c0_35] : memref<144x16xbf16, #tpu.memory_space<vmem>>, vector<144x16xbf16>
    %cst_36 = arith.constant dense<0.000000e+00> : vector<256x16xf32>
    %18 = tpu.matmul %16, %17, %cst_36 {dimension_numbers = #tpu.dot_dimension_numbers<[1], [0], [0], [1], [0, 0, 1, 1], [], []>} : vector<256x144xbf16>, vector<144x16xbf16>, vector<256x16xf32> -> vector<256x16xf32>
    %c0_37 = arith.constant 0 : index
    %c0_38 = arith.constant 0 : index
    %19 = vector.load %arg3[%c0_37, %c0_38] : memref<1x16xf32, #tpu.memory_space<vmem>>, vector<1x16xf32>
    %20 = vector.broadcast %19 : vector<1x16xf32> to vector<256x16xf32>
    %21 = arith.addf %18, %20 : vector<256x16xf32>
    %cst_39 = arith.constant 0.000000e+00 : f32
    %22 = vector.broadcast %cst_39 : f32 to vector<256x16xf32>
    %23 = arith.maximumf %21, %22 : vector<256x16xf32>
    %24 = vector.shape_cast %23 : vector<256x16xf32> to vector<16x16x16xf32>
    %c1_40 = arith.constant 1 : index
    %c1_41 = arith.constant 1 : index
    %c0_42 = arith.constant 0 : index
    %25 = vector.load %arg7[%c1_40, %c1_41, %c0_42] : memref<18x18x16xf32, #tpu.memory_space<vmem>>, vector<16x16x16xf32>
    tpu.vector_store %arg7[%c1_40, %c1_41, %c0_42], %24 {strides = array<i32>} : memref<18x18x16xf32, #tpu.memory_space<vmem>>, vector<16x16x16xf32>,
    %c0_43 = arith.constant 0 : index
    %c0_44 = arith.constant 0 : index
    %c0_45 = arith.constant 0 : index
    %26 = vector.load %arg7[%c0_43, %c0_44, %c0_45] : memref<18x18x16xf32, #tpu.memory_space<vmem>>, vector<16x16x16xf32>
    %c0_46 = arith.constant 0 : index
    %c1_47 = arith.constant 1 : index
    %c0_48 = arith.constant 0 : index
    %27 = vector.load %arg7[%c0_46, %c1_47, %c0_48] : memref<18x18x16xf32, #tpu.memory_space<vmem>>, vector<16x16x16xf32>
    %c0_49 = arith.constant 0 : index
    %c2_50 = arith.constant 2 : index
    %c0_51 = arith.constant 0 : index
    %28 = vector.load %arg7[%c0_49, %c2_50, %c0_51] : memref<18x18x16xf32, #tpu.memory_space<vmem>>, vector<16x16x16xf32>
    %c1_52 = arith.constant 1 : index
    %c0_53 = arith.constant 0 : index
    %c0_54 = arith.constant 0 : index
    %29 = vector.load %arg7[%c1_52, %c0_53, %c0_54] : memref<18x18x16xf32, #tpu.memory_space<vmem>>, vector<16x16x16xf32>
    %c1_55 = arith.constant 1 : index
    %c1_56 = arith.constant 1 : index
    %c0_57 = arith.constant 0 : index
    %30 = vector.load %arg7[%c1_55, %c1_56, %c0_57] : memref<18x18x16xf32, #tpu.memory_space<vmem>>, vector<16x16x16xf32>
    %c1_58 = arith.constant 1 : index
    %c2_59 = arith.constant 2 : index
    %c0_60 = arith.constant 0 : index
    %31 = vector.load %arg7[%c1_58, %c2_59, %c0_60] : memref<18x18x16xf32, #tpu.memory_space<vmem>>, vector<16x16x16xf32>
    %c2_61 = arith.constant 2 : index
    %c0_62 = arith.constant 0 : index
    %c0_63 = arith.constant 0 : index
    %32 = vector.load %arg7[%c2_61, %c0_62, %c0_63] : memref<18x18x16xf32, #tpu.memory_space<vmem>>, vector<16x16x16xf32>
    %c2_64 = arith.constant 2 : index
    %c1_65 = arith.constant 1 : index
    %c0_66 = arith.constant 0 : index
    %33 = vector.load %arg7[%c2_64, %c1_65, %c0_66] : memref<18x18x16xf32, #tpu.memory_space<vmem>>, vector<16x16x16xf32>
    %c2_67 = arith.constant 2 : index
    %c2_68 = arith.constant 2 : index
    %c0_69 = arith.constant 0 : index
    %34 = vector.load %arg7[%c2_67, %c2_68, %c0_69] : memref<18x18x16xf32, #tpu.memory_space<vmem>>, vector<16x16x16xf32>
    %35 = tpu.concatenate %26, %27, %28, %29, %30, %31, %32, %33, %34 in 2 : vector<16x16x16xf32>, vector<16x16x16xf32>, vector<16x16x16xf32>, vector<16x16x16xf32>, vector<16x16x16xf32>, vector<16x16x16xf32>, vector<16x16x16xf32>, vector<16x16x16xf32>, vector<16x16x16xf32> -> vector<16x16x144xf32>
    %36 = vector.shape_cast %35 : vector<16x16x144xf32> to vector<256x144xf32>
    %37 = arith.truncf %36 : vector<256x144xf32> to vector<256x144xbf16>
    %c0_70 = arith.constant 0 : index
    %c0_71 = arith.constant 0 : index
    %38 = vector.load %arg4[%c0_70, %c0_71] : memref<144x16xbf16, #tpu.memory_space<vmem>>, vector<144x16xbf16>
    %cst_72 = arith.constant dense<0.000000e+00> : vector<256x16xf32>
    %39 = tpu.matmul %37, %38, %cst_72 {dimension_numbers = #tpu.dot_dimension_numbers<[1], [0], [0], [1], [0, 0, 1, 1], [], []>} : vector<256x144xbf16>, vector<144x16xbf16>, vector<256x16xf32> -> vector<256x16xf32>
    %c0_73 = arith.constant 0 : index
    %c0_74 = arith.constant 0 : index
    %40 = vector.load %arg5[%c0_73, %c0_74] : memref<1x16xf32, #tpu.memory_space<vmem>>, vector<1x16xf32>
    %41 = vector.broadcast %40 : vector<1x16xf32> to vector<256x16xf32>
    %42 = arith.addf %39, %41 : vector<256x16xf32>
    %cst_75 = arith.constant 0.000000e+00 : f32
    %43 = vector.broadcast %cst_75 : f32 to vector<256x16xf32>
    %44 = arith.maximumf %42, %43 : vector<256x16xf32>
    %45 = vector.shape_cast %44 : vector<256x16xf32> to vector<16x16x16xf32>
    %46 = arith.addf %45, %1 : vector<16x16x16xf32>
    %c0_76 = arith.constant 0 : index
    %c0_77 = arith.constant 0 : index
    %c0_78 = arith.constant 0 : index
    %c0_79 = arith.constant 0 : index
    %47 = vector.load %arg6[%c0_76, %c0_77, %c0_78, %c0_79] : memref<1x16x16x16xf32, #tpu.memory_space<vmem>>, vector<1x16x16x16xf32>
    %48 = vector.shape_cast %47 : vector<1x16x16x16xf32> to vector<16x16x16xf32>
    %49 = vector.shape_cast %46 : vector<16x16x16xf32> to vector<1x16x16x16xf32>
    tpu.vector_store %arg6[%c0_76, %c0_77, %c0_78, %c0_79], %49 {strides = array<i32>} : memref<1x16x16x16xf32, #tpu.memory_space<vmem>>, vector<1x16x16x16xf32>,
    return
  }
  func.func @transform_0(%arg0: i32) -> (i32, i32, i32, i32) {
    %c0_i32 = arith.constant 0 : i32
    %c0_i32_0 = arith.constant 0 : i32
    %c0_i32_1 = arith.constant 0 : i32
    %c0_i32_2 = arith.constant 0 : i32
    return %arg0, %c0_i32, %c0_i32_0, %c0_i32_1 : i32, i32, i32, i32
  }
  func.func @transform_1(%arg0: i32) -> (i32, i32) {
    %c0_i32 = arith.constant 0 : i32
    %c0_i32_0 = arith.constant 0 : i32
    %c0_i32_1 = arith.constant 0 : i32
    return %c0_i32, %c0_i32_0 : i32, i32
  }
  func.func @transform_2(%arg0: i32) -> (i32, i32) {
    %c0_i32 = arith.constant 0 : i32
    %c0_i32_0 = arith.constant 0 : i32
    %c0_i32_1 = arith.constant 0 : i32
    return %c0_i32, %c0_i32_0 : i32, i32
  }
  func.func @transform_3(%arg0: i32) -> (i32, i32) {
    %c0_i32 = arith.constant 0 : i32
    %c0_i32_0 = arith.constant 0 : i32
    %c0_i32_1 = arith.constant 0 : i32
    return %c0_i32, %c0_i32_0 : i32, i32
  }
  func.func @transform_4(%arg0: i32) -> (i32, i32) {
    %c0_i32 = arith.constant 0 : i32
    %c0_i32_0 = arith.constant 0 : i32
    %c0_i32_1 = arith.constant 0 : i32
    return %c0_i32, %c0_i32_0 : i32, i32
  }
  func.func @transform_5(%arg0: i32) -> (i32, i32, i32, i32) {
    %c0_i32 = arith.constant 0 : i32
    %c0_i32_0 = arith.constant 0 : i32
    %c0_i32_1 = arith.constant 0 : i32
    %c0_i32_2 = arith.constant 0 : i32
    return %arg0, %c0_i32, %c0_i32_0, %c0_i32_1 : i32, i32, i32, i32
  }
}

</mosaic_0001>

<bundles_post_ra>
// kernel: identity_residual_block.1
= control target key start
LH: loop header
LB: loop body
LE: loop exit
PB: predicated region body
PF: predicated region fallthrough
CT: control target
= control target key end

     0   :  { %10 = vsyncpa [#allocation4], 0  ;;  %s7510_s0 = inlined_call_operand.hbm [shape: f32[2,16,16,16], index: 0, kind: input, shape index: {}]   ;;  %s7511_s1 = inlined_call_operand.vmem [shape: bf16[144,16], index: 1, kind: input, shape index: {}]   ;;  %s7512_s2 = inlined_call_operand.vmem [shape: f32[1,16], index: 2, kind: input, shape index: {}]   ;;  %s7513_s3 = inlined_call_operand.vmem [shape: bf16[144,16], index: 3, kind: input, shape index: {}]   ;;  %s7514_s4 = inlined_call_operand.vmem [shape: f32[1,16], index: 4, kind: input, shape index: {}]   ;;  %s7515_s5 = inlined_call_operand.hbm [shape: f32[2,16,16,16], index: 5, kind: output, shape index: {}]  }
   0x1   :  { %12 = vsyncpa [#allocation4 + $0x1], 0 }
   0x2   :  { %13 = vsyncpa [#allocation5], 0 }
   0x3   :  { %15 = vsyncpa [#allocation5 + $0x1], 0  ;;  %s5505_s18 = smov 0   ;;  %s5507_s19 = smov 0  }
   0x4   :  { %s5509_s20 = smov 0   ;;  %s5511_s21 = smov 0  }
   0x5 LB: > { %s5526_s22 = sadd.s32 4294967295, %s5458_s21   ;;  %s4075_s23 = sadd.s32 4294967294, %s5458_s21   ;;  %s5458_s21 = sphi %s5511_s21, %s7709_s21   ;;  %s5454_s20 = sphi %s5509_s20, %s7708_s20   ;;  %s5450_s19 = sphi %s5507_s19, %s7707_s19   ;;  %s5446_s18 = sphi %s5505_s18, %s7706_s18  }
   0x6   : > { %s5530_s24 = sadd.s32 1, %s5458_s21   ;;  %s28_s25 = sadd.s32 1, %s5454_s20 }
   0x7   : > { %s25_s26 = ssub.s32 %s5458_s21, %s5530_s24  ;;  %p35_p0 = scmp.ne.s32.totalorder %s5454_s20, %s5450_s19 }
   0x8   : > { %p26_p1 = scmp.eq.s32.totalorder %s25_s26, 0  ;;  %p36_p2 = scmp.eq.s32.totalorder %s5458_s21, 0 }
   0x9   : > { %p41_p3 = scmp.ne.s32.totalorder %s5450_s19, %s5446_s18  ;;  %p42_p4 = scmp.eq.s32.totalorder %s5526_s22, 0 }
   0xa   : > { %s5542_s27 = scalar_select %p26_p1, %s5454_s20, %s28_s25  }
   0xb   : > { %p5544_p5 = por %p36_p2, %p35_p0  ;;  %p5548_p6 = por %p42_p4, %p41_p3 }
   0xc   : > { %p149_p7 = scmp.eq.s32.totalorder %s5526_s22, 1  ;;  %p155_p8 = scmp.eq.s32.totalorder %s4075_s23, 1 }
   0xd   : > { %p4155_p10 = scmp.lt.s32.totalorder %s5458_s21, 2  ;;  %s187_s7 = sand.u32 1, %s5454_s20  }
   0xe   : > { %p5555_p11 = por %p149_p7, %p35_p0  ;;  %p5559_p12 = por %p155_p8, %p41_p3 }
   0xf   : > { %s4141_s8 = sshll.u32 %s5458_s21, 12  ;;  %s4078_s9 = sshll.u32 %s187_s7, 8 }
  0x10   : > { %s7580_s30 = scalar_select %p5555_p11, 1, 0 }
  0x11   : > { %s7581_s6 = scalar_select %p5559_p12, 1, 0 }
  0x12   : > { %s5568_s12 = scalar_lea.hbm %s7510_s0, %s4141_s8  ;;  %s191_s13 = scalar_lea.vmem [#allocation3], %s4078_s9 }
  0x13   : > { %s198_s14 = sshll.u32 %s191_s13, 4  ;;  %p5572_p13 = pnand %p4155_p10, %p5544_p5  ;;  %s5576_s14 = int_to_ptr.vmem [resolvable:$true] %s198_s14 }
  0x14   : > { %s5578_s16 = scalar_lea.sflag [#allocation4], %s187_s7  ;;  %s5362_s17 = scalar_lea.hbm %s5568_s12, 4096 }
  0x15   : > { %p5363_p0 = scmp.ne.s32.totalorder %s5568_s12, %s5362_s17  ;;  %p5364_p1 = pneg %p5572_p13 }
  0x16   : > { %s5367_s26 = scalar_lea.hbm %s7510_s0, 8192  ;;  %p5368_p4 = scmp.lt.u32.totalorder %s5568_s12, %s7510_s0 }
  0x17   : > { %p5365_p2 = pnand %p5364_p1, %p5363_p0  ;;  %p5369_p5 = scmp.lt.u32.totalorder %s5367_s26, %s5362_s17 }
  0x18   : > { %p5371_p8 = scmp.lt.u32.totalorder %s5362_s17, %s5568_s12 }
  0x19   : > { %p5366_p3 = pneg %p5365_p2  ;;  %p5370_p7 = por %p5369_p5, %p5368_p4 }
  0x1b   : > { %p5372_p10 = por %p5371_p8, %p5370_p7 }
  0x1d   : > { %p5373_p9 = pnand %p5372_p10, %p5366_p3 }
  0x1f   : > { %5376 = shalt.err (!%p5373_p9)
}
  0x20   : > { %s5377_s7 = scalar_lea.vmem %s5576_s14, 4096  ;;  %s5460_s9 = smov [#allocation3]  }
  0x21   : > { %p5378_p0 = scmp.ne.s32.totalorder %s5576_s14, %s5377_s7  ;;  %s5382_s10 = sshll.u32 %s5460_s9, 4  ;;  %s5383_s10 = int_to_ptr.vmem [resolvable:$false] %s5382_s10 }
  0x22   : > { %s5384_s11 = scalar_lea.vmem %s5383_s10, 8192  ;;  %p5385_p11 = scmp.lt.s32.totalorder %s5576_s14, %s5383_s10 }
  0x23   : > { %p5380_p2 = pnand %p5378_p0, %p5364_p1  ;;  %p5386_p4 = scmp.lt.s32.totalorder %s5384_s11, %s5377_s7 }
  0x25   : > { %p5381_p12 = pneg %p5380_p2  ;;  %p5387_p5 = por %p5386_p4, %p5385_p11 }
  0x27   : > { %p5388_p7 = pnand %p5387_p5, %p5381_p12 }
  0x29   : > { %5391 = shalt.err (!%p5388_p7)
}
  0x2a   : > { %s5461_s13 = smov 128   ;;  %s5462_s17 = smov 8  }
  0x2b   : > { %4150 = dma.hbm_to_vmem [thread:$0]  (!%p5572_p13), %s5568_s12, 4096, %s5576_s14, %s5578_s16, %s5461_s13, %s5461_s13, %s5462_s17  }
  0x2c   : > { %p4081_p9 = scmp.ge.s32.totalorder %s5458_s21, 1  ;;  %p206_p1 = scmp.lt.s32.totalorder %s5458_s21, 3 }
  0x2e   : > { %p207_p3 = pnand %p4081_p9, %p206_p1 }
  0x30   : > { %210 = sbr.rel (%p207_p3) target bundleno = 1120 (0x460), region = 40 }
  0x37   : > { %s5609_s23 = sand.u32 1, %s5450_s19  }
  0x38   : > { %s7577_s25 = sshll.u32 %s5609_s23, 8  ;;  %s213_s26 = scalar_lea.sflag [#allocation4], %s5609_s23 }
  0x39   : > { %s5615_s28 = scalar_lea.vmem [#allocation3], %s7577_s25 }
  0x3a   : > { %5437 = dma.done.wait (%p5548_p6), %s213_s26, 4096  }
  0x3b   : > { %5439 = vsyncadd (%p5548_p6), %s213_s26, 4294963200  ;;  %vm276_vm0 = vcmask 130048   ;;  %vm279_vm1 = vcmask 123904   ;;  %v5463_v0 = vmov 0.0   ;;  %v5676_v1 = vld [vmem:[%s5615_s28 + $0x10] sm:$0xff]  ;;  %v5679_v2 = vld [vmem:[%s5615_s28 + $0x18] sm:$0xff] }
  0x3c   : > { %277 = vst.msk [vmem:[#allocation2] sm:$0xff] %vm276_vm0, %v5463_v0  ;;  %278 = vst.msk [vmem:[#allocation2 + $0x8] sm:$0xff] %vm276_vm0, %v5463_v0  ;;  %v5682_v3 = vld [vmem:[%s5615_s28] sm:$0xff]  ;;  %v5689_v6 = vld [vmem:[%s5615_s28 + $0x8] sm:$0xff]  ;;  %s5464_s29 = smov 16   ;;  %s5465_s12 = smov 32  }
  0x3d   : > { %280 = vst.msk [vmem:[#allocation2 + $0x10] sm:$0x3] %vm279_vm1, %v5463_v0  ;;  %283 = vst.msk [vmem:[#allocation2 + $0x28] sm:$0x3] %vm279_vm1, %v5463_v0  ;;  %v5696_v8 = vld [vmem:[%s5615_s28 + $0x20] sm:$0xff]  ;;  %v5699_v9 = vld [vmem:[%s5615_s28 + $0x28] sm:$0xff] }
  0x3e   : > { %281 = vst.msk [vmem:[#allocation2 + $0x18] sm:$0xff] %vm276_vm0, %v5463_v0  ;;  %282 = vst.msk [vmem:[#allocation2 + $0x20] sm:$0xff] %vm276_vm0, %v5463_v0  ;;  %v5702_v10 = vld [vmem:[%s5615_s28 + $0x30] sm:$0xff]  ;;  %v5709_v11 = vld [vmem:[%s5615_s28 + $0x38] sm:$0xff]  ;;  %s5467_s7 = smov 48   ;;  %s5468_s13 = smov 64  }
  0x3f   : > { %284 = vst.msk [vmem:[#allocation2 + $0x30] sm:$0xff] %vm276_vm0, %v5463_v0  ;;  %285 = vst.msk [vmem:[#allocation2 + $0x38] sm:$0xff] %vm276_vm0, %v5463_v0  ;;  %v5714_v12 = vld [vmem:[%s5615_s28 + $0x40] sm:$0xff]  ;;  %v5717_v13 = vld [vmem:[%s5615_s28 + $0x48] sm:$0xff]  ;;  %s5469_s17 = smov 80   ;;  %s5470_s26 = smov 96  }
  0x40   : > { %286 = vst.msk [vmem:[#allocation2 + $0x40] sm:$0x3] %vm279_vm1, %v5463_v0  ;;  %289 = vst.msk [vmem:[#allocation2 + $0x58] sm:$0x3] %vm279_vm1, %v5463_v0  ;;  %v5727_v14 = vld [vmem:[%s5615_s28 + $0x50] sm:$0xff]  ;;  %v5730_v15 = vld [vmem:[%s5615_s28 + $0x58] sm:$0xff] }
  0x41   : > { %287 = vst.msk [vmem:[#allocation2 + $0x48] sm:$0xff] %vm276_vm0, %v5463_v0  ;;  %288 = vst.msk [vmem:[#allocation2 + $0x50] sm:$0xff] %vm276_vm0, %v5463_v0  ;;  %v5733_v16 = vld [vmem:[%s5615_s28 + $0x60] sm:$0xff]  ;;  %v5740_v17 = vld [vmem:[%s5615_s28 + $0x68] sm:$0xff]  ;;  %vm1582_vm2 = vcmask 261120   ;;  %vm1615_vm3 = vcmask 392192  }
  0x42   : > { %290 = vst.msk [vmem:[#allocation2 + $0x60] sm:$0xff] %vm276_vm0, %v5463_v0  ;;  %291 = vst.msk [vmem:[#allocation2 + $0x68] sm:$0xff] %vm276_vm0, %v5463_v0  ;;  %v5745_v18 = vld [vmem:[%s5615_s28 + $0x70] sm:$0xff]  ;;  %v5748_v19 = vld [vmem:[%s5615_s28 + $0x78] sm:$0xff]  ;;  %vm1648_vm4 = vcmask 523264   ;;  %vm1681_vm5 = vcmask 654336  }
  0x43   : > { %292 = vst.msk [vmem:[#allocation2 + $0x70] sm:$0x3] %vm279_vm1, %v5463_v0  ;;  %295 = vst.msk [vmem:[#allocation2 + $0x88] sm:$0x3] %vm279_vm1, %v5463_v0  ;;  %v397_v4 = vld [vmem:[#allocation2 + $0x1] sm:$0xff]  ;;  %v5757_v20 = vld [vmem:[%s5615_s28 + $0x80] sm:$0xff] }
  0x44   : > { %293 = vst.msk [vmem:[#allocation2 + $0x78] sm:$0xff] %vm276_vm0, %v5463_v0  ;;  %294 = vst.msk [vmem:[#allocation2 + $0x80] sm:$0xff] %vm276_vm0, %v5463_v0  ;;  %v398_v5 = vld [vmem:[#allocation2 + $0x9] sm:$0xff]  ;;  %v5760_v21 = vld [vmem:[%s5615_s28 + $0x88] sm:$0xff]  ;;  %vm1714_vm6 = vcmask 785408   ;;  %vm1747_vm7 = vcmask 916480  }
  0x45   : > { %296 = vst.msk [vmem:[#allocation2 + $0x90] sm:$0xff] %vm276_vm0, %v5463_v0  ;;  %297 = vst.msk [vmem:[#allocation2 + $0x98] sm:$0xff] %vm276_vm0, %v5463_v0  ;;  %v4202_v7 = vpack.i.bf16 %v398_v5, %v397_v4  ;;  %v5763_v22 = vld [vmem:[%s5615_s28 + $0x90] sm:$0xff]  ;;  %v5770_v23 = vld [vmem:[%s5615_s28 + $0x98] sm:$0xff]  ;;  %p7703_p11 = scmp.ne.s32.totalorder %s7580_s30, 0  ;;  %s5472_s11 = smov [#allocation6]  }
  0x46   : > { %298 = vst.msk [vmem:[#allocation2 + $0xa0] sm:$0x3] %vm279_vm1, %v5463_v0  ;;  %301 = vst.msk [vmem:[#allocation2 + $0xb8] sm:$0x3] %vm279_vm1, %v5463_v0  ;;  %v5775_v24 = vld [vmem:[%s5615_s28 + $0xa0] sm:$0xff]  ;;  %v5778_v25 = vld [vmem:[%s5615_s28 + $0xa8] sm:$0xff] }
  0x47   : > { %299 = vst.msk [vmem:[#allocation2 + $0xa8] sm:$0xff] %vm276_vm0, %v5463_v0  ;;  %300 = vst.msk [vmem:[#allocation2 + $0xb0] sm:$0xff] %vm276_vm0, %v5463_v0  ;;  %4203 = vrot.lane.b32.xlu0 %v4202_v7, %s5464_s29  ;;  %v5789_v31 = vld [vmem:[%s5615_s28 + $0xb0] sm:$0xff]  ;;  %v5792_v32 = vld [vmem:[%s5615_s28 + $0xb8] sm:$0xff]  ;;  %s5396_s14 = sshll.u32 %s5472_s11, 4  ;;  %s5397_s14 = int_to_ptr.vmem [resolvable:$false] %s5396_s14 }
  0x48   : > { %302 = vst.msk [vmem:[#allocation2 + $0xc0] sm:$0xff] %vm276_vm0, %v5463_v0  ;;  %303 = vst.msk [vmem:[#allocation2 + $0xc8] sm:$0xff] %vm276_vm0, %v5463_v0  ;;  %v5817_v48 = vld [vmem:[%s5615_s28 + $0xc0] sm:$0xff]  ;;  %v5820_v49 = vld [vmem:[%s5615_s28 + $0xc8] sm:$0xff]  ;;  %s5398_s15 = scalar_lea.vmem %s5397_s14, 8192 }
  0x49   : > { %304 = vst.msk [vmem:[#allocation2 + $0xd0] sm:$0x3] %vm279_vm1, %v5463_v0  ;;  %307 = vst.msk [vmem:[#allocation2 + $0xe8] sm:$0x3] %vm279_vm1, %v5463_v0  ;;  %v5823_v50 = vld [vmem:[%s5615_s28 + $0xd0] sm:$0xff]  ;;  %v5830_v53 = vld [vmem:[%s5615_s28 + $0xd8] sm:$0xff] }
  0x4a   : > { %305 = vst.msk [vmem:[#allocation2 + $0xd8] sm:$0xff] %vm276_vm0, %v5463_v0  ;;  %306 = vst.msk [vmem:[#allocation2 + $0xe0] sm:$0xff] %vm276_vm0, %v5463_v0  ;;  %v5837_v54 = vld [vmem:[%s5615_s28 + $0xe0] sm:$0xff]  ;;  %v5840_v55 = vld [vmem:[%s5615_s28 + $0xe8] sm:$0xff] }
  0x4b   : > { %308 = vst.msk [vmem:[#allocation2 + $0xf0] sm:$0xff] %vm276_vm0, %v5463_v0  ;;  %309 = vst.msk [vmem:[#allocation2 + $0xf8] sm:$0xff] %vm276_vm0, %v5463_v0 }
  0x4c   : > { %310 = vst.msk [vmem:[#allocation2 + $0x100] sm:$0x3] %vm279_vm1, %v5463_v0  ;;  %313 = vst.msk [vmem:[#allocation2 + $0x118] sm:$0x3] %vm279_vm1, %v5463_v0 }
  0x4d   : > { %311 = vst.msk [vmem:[#allocation2 + $0x108] sm:$0xff] %vm276_vm0, %v5463_v0  ;;  %312 = vst.msk [vmem:[#allocation2 + $0x110] sm:$0xff] %vm276_vm0, %v5463_v0 }
  0x4e   : > { %314 = vst.msk [vmem:[#allocation2 + $0x120] sm:$0xff] %vm276_vm0, %v5463_v0  ;;  %315 = vst.msk [vmem:[#allocation2 + $0x128] sm:$0xff] %vm276_vm0, %v5463_v0 }
  0x4f   : > { %316 = vst.msk [vmem:[#allocation2 + $0x130] sm:$0x3] %vm279_vm1, %v5463_v0  ;;  %319 = vst.msk [vmem:[#allocation2 + $0x148] sm:$0x3] %vm279_vm1, %v5463_v0 }
  0x50   : > { %317 = vst.msk [vmem:[#allocation2 + $0x138] sm:$0xff] %vm276_vm0, %v5463_v0  ;;  %318 = vst.msk [vmem:[#allocation2 + $0x140] sm:$0xff] %vm276_vm0, %v5463_v0 }
  0x51   : > { %320 = vst.msk [vmem:[#allocation2 + $0x150] sm:$0xff] %vm276_vm0, %v5463_v0  ;;  %321 = vst.msk [vmem:[#allocation2 + $0x158] sm:$0xff] %vm276_vm0, %v5463_v0 }
  0x52   : > { %322 = vst.msk [vmem:[#allocation2 + $0x160] sm:$0x3] %vm279_vm1, %v5463_v0  ;;  %325 = vst.msk [vmem:[#allocation2 + $0x178] sm:$0x3] %vm279_vm1, %v5463_v0 }
  0x53   : > { %323 = vst.msk [vmem:[#allocation2 + $0x168] sm:$0xff] %vm276_vm0, %v5463_v0  ;;  %324 = vst.msk [vmem:[#allocation2 + $0x170] sm:$0xff] %vm276_vm0, %v5463_v0 }
  0x54   : > { %326 = vst.msk [vmem:[#allocation2 + $0x180] sm:$0xff] %vm276_vm0, %v5463_v0  ;;  %327 = vst.msk [vmem:[#allocation2 + $0x188] sm:$0xff] %vm276_vm0, %v5463_v0 }
  0x55   : > { %328 = vst.msk [vmem:[#allocation2 + $0x190] sm:$0x3] %vm279_vm1, %v5463_v0  ;;  %331 = vst.msk [vmem:[#allocation2 + $0x1a8] sm:$0x3] %vm279_vm1, %v5463_v0 }
  0x56   : > { %329 = vst.msk [vmem:[#allocation2 + $0x198] sm:$0xff] %vm276_vm0, %v5463_v0  ;;  %330 = vst.msk [vmem:[#allocation2 + $0x1a0] sm:$0xff] %vm276_vm0, %v5463_v0 }
  0x57   : > { %7583 = vst [vmem:[#allocation9_spill] sm:$0xff] %v5676_v1  ;;  %7584 = vst [vmem:[#allocation10_spill] sm:$0xff] %v5679_v2 }
  0x58   : > { %7585 = vst [vmem:[#allocation11_spill] sm:$0xff] %v5682_v3  ;;  %335 = vst.msk [vmem:[#allocation2 + $0x31] sm:$0xff] %vm276_vm0, %v5676_v1 }
  0x59   : > { %336 = vst.msk [vmem:[#allocation2 + $0x39] sm:$0xff] %vm276_vm0, %v5679_v2  ;;  %7586 = vst [vmem:[#allocation12_spill] sm:$0xff] %v5689_v6 }
  0x5a   : > { %333 = vst.msk [vmem:[#allocation2 + $0x19] sm:$0xff] %vm276_vm0, %v5682_v3  ;;  %334 = vst.msk [vmem:[#allocation2 + $0x21] sm:$0xff] %vm276_vm0, %v5689_v6 }
  0x5b   : > { %7587 = vst [vmem:[#allocation13_spill] sm:$0xff] %v5696_v8  ;;  %7588 = vst [vmem:[#allocation14_spill] sm:$0xff] %v5699_v9 }
  0x5c   : > { %7589 = vst [vmem:[#allocation15_spill] sm:$0xff] %v5702_v10  ;;  %337 = vst.msk [vmem:[#allocation2 + $0x49] sm:$0xff] %vm276_vm0, %v5696_v8 }
  0x5d   : > { %338 = vst.msk [vmem:[#allocation2 + $0x51] sm:$0xff] %vm276_vm0, %v5699_v9  ;;  %7590 = vst [vmem:[#allocation16_spill] sm:$0xff] %v5709_v11 }
  0x5e   : > { %339 = vst.msk [vmem:[#allocation2 + $0x61] sm:$0xff] %vm276_vm0, %v5702_v10  ;;  %7591 = vst [vmem:[#allocation17_spill] sm:$0xff] %v5714_v12 }
  0x5f   : > { %7592 = vst [vmem:[#allocation18_spill] sm:$0xff] %v5717_v13  ;;  %340 = vst.msk [vmem:[#allocation2 + $0x69] sm:$0xff] %vm276_vm0, %v5709_v11  ;;  %v401_v26 = vld [vmem:[#allocation2 + $0x31] sm:$0xff] }
  0x60   : > { %341 = vst.msk [vmem:[#allocation2 + $0x79] sm:$0xff] %vm276_vm0, %v5714_v12  ;;  %342 = vst.msk [vmem:[#allocation2 + $0x81] sm:$0xff] %vm276_vm0, %v5717_v13  ;;  %v402_v27 = vld [vmem:[#allocation2 + $0x39] sm:$0xff] }
  0x61   : > { %7593 = vst [vmem:[#allocation19_spill] sm:$0xff] %v5727_v14  ;;  %7594 = vst [vmem:[#allocation20_spill] sm:$0xff] %v5730_v15  ;;  %v399_v28 = vld [vmem:[#allocation2 + $0x19] sm:$0xff]  ;;  %v5786_v29 = vpack.i.bf16 %v402_v27, %v401_v26  ;;  %v400_v30 = vld [vmem:[#allocation2 + $0x21] sm:$0xff] }
  0x62   : > { %7595 = vst [vmem:[#allocation21_spill] sm:$0xff] %v5733_v16  ;;  %343 = vst.msk [vmem:[#allocation2 + $0x91] sm:$0xff] %vm276_vm0, %v5727_v14  ;;  %v5794_v33 = vpack.i.bf16 %v400_v30, %v399_v28  ;;  %v623_v8 = vld [vmem:[#allocation2 + $0x3a] sm:$0xff] }
  0x63   : > { %344 = vst.msk [vmem:[#allocation2 + $0x99] sm:$0xff] %vm276_vm0, %v5730_v15  ;;  %7596 = vst [vmem:[#allocation22_spill] sm:$0xff] %v5740_v17  ;;  %v403_v34 = vld [vmem:[#allocation2 + $0x49] sm:$0xff]  ;;  %4213 = vrot.lane.b32.xlu1 %v5786_v29, %s5464_s29 }
  0x64   : > { %345 = vst.msk [vmem:[#allocation2 + $0xa9] sm:$0xff] %vm276_vm0, %v5733_v16  ;;  %7597 = vst [vmem:[#allocation23_spill] sm:$0xff] %v5745_v18  ;;  %v404_v35 = vld [vmem:[#allocation2 + $0x51] sm:$0xff]  ;;  %4208 = vrot.lane.b32.xlu0 %v5794_v33, %s5464_s29 }
  0x65   : > { %7598 = vst [vmem:[#allocation24_spill] sm:$0xff] %v5748_v19  ;;  %346 = vst.msk [vmem:[#allocation2 + $0xb1] sm:$0xff] %vm276_vm0, %v5740_v17  ;;  %v405_v36 = vld [vmem:[#allocation2 + $0x61] sm:$0xff]  ;;  %v5802_v37 = vpack.i.bf16 %v404_v35, %v403_v34 }
  0x66   : > { %347 = vst.msk [vmem:[#allocation2 + $0xc1] sm:$0xff] %vm276_vm0, %v5745_v18  ;;  %348 = vst.msk [vmem:[#allocation2 + $0xc9] sm:$0xff] %vm276_vm0, %v5748_v19  ;;  %v406_v38 = vld [vmem:[#allocation2 + $0x69] sm:$0xff]  ;;  %v5326_v18 = vld [vmem:[%s7511_s1 + $0x20] sm:$0xff]  }
  0x67   : > { %7599 = vst [vmem:[#allocation25_spill] sm:$0xff] %v5757_v20  ;;  %7600 = vst [vmem:[#allocation26_spill] sm:$0xff] %v5760_v21  ;;  %v5806_v39 = vpack.i.bf16 %v406_v38, %v405_v36  ;;  %v407_v40 = vld [vmem:[#allocation2 + $0x79] sm:$0xff]  ;;  %v408_v41 = vld [vmem:[#allocation2 + $0x81] sm:$0xff]  ;;  %4218 = vrot.lane.b32.xlu1 %v5802_v37, %s5464_s29 }
  0x68   : > { %7601 = vst [vmem:[#allocation27_spill] sm:$0xff] %v5763_v22  ;;  %349 = vst.msk [vmem:[#allocation2 + $0xd9] sm:$0xff] %vm276_vm0, %v5757_v20  ;;  %v5810_v44 = vpack.i.bf16 %v408_v41, %v407_v40 }
  0x69   : > { %350 = vst.msk [vmem:[#allocation2 + $0xe1] sm:$0xff] %vm276_vm0, %v5760_v21  ;;  %7602 = vst [vmem:[#allocation28_spill] sm:$0xff] %v5770_v23  ;;  %v409_v42 = vld [vmem:[#allocation2 + $0x91] sm:$0xff]  ;;  %4223 = vrot.lane.b32.xlu0 %v5806_v39, %s5464_s29 }
  0x6a   : > { %351 = vst.msk [vmem:[#allocation2 + $0xf1] sm:$0xff] %vm276_vm0, %v5763_v22  ;;  %7603 = vst [vmem:[#allocation29_spill] sm:$0xff] %v5775_v24  ;;  %v410_v43 = vld [vmem:[#allocation2 + $0x99] sm:$0xff] }
  0x6b   : > { %7604 = vst [vmem:[#allocation30_spill] sm:$0xff] %v5778_v25  ;;  %352 = vst.msk [vmem:[#allocation2 + $0xf9] sm:$0xff] %vm276_vm0, %v5770_v23  ;;  %v411_v45 = vld [vmem:[#allocation2 + $0xa9] sm:$0xff]  ;;  %v5814_v47 = vpack.i.bf16 %v410_v43, %v409_v42  ;;  %4228 = vrot.lane.b32.xlu1 %v5810_v44, %s5464_s29 }
  0x6c   : > { %353 = vst.msk [vmem:[#allocation2 + $0x109] sm:$0xff] %vm276_vm0, %v5775_v24  ;;  %354 = vst.msk [vmem:[#allocation2 + $0x111] sm:$0xff] %vm276_vm0, %v5778_v25  ;;  %v412_v46 = vld [vmem:[#allocation2 + $0xb1] sm:$0xff]  ;;  %v429_v42 = vld [vmem:[#allocation2 + $0x2] sm:$0xff] }
  0x6d   : > { %7605 = vst [vmem:[#allocation31_spill] sm:$0xff] %v5789_v31  ;;  %7606 = vst [vmem:[#allocation32_spill] sm:$0xff] %v5792_v32  ;;  %v413_v51 = vld [vmem:[#allocation2 + $0xc1] sm:$0xff]  ;;  %v414_v52 = vld [vmem:[#allocation2 + $0xc9] sm:$0xff]  ;;  %v5844_v56 = vpack.i.bf16 %v412_v46, %v411_v45  ;;  %4233 = vrot.lane.b32.xlu0 %v5814_v47, %s5464_s29 }
  0x6e   : > { %355 = vst.msk [vmem:[#allocation2 + $0x121] sm:$0xff] %vm276_vm0, %v5789_v31  ;;  %356 = vst.msk [vmem:[#allocation2 + $0x129] sm:$0xff] %vm276_vm0, %v5792_v32  ;;  %v5852_v57 = vpack.i.bf16 %v414_v52, %v413_v51  ;;  %v430_v43 = vld [vmem:[#allocation2 + $0xa] sm:$0xff]  ;;  %v431_v51 = vld [vmem:[#allocation2 + $0x1a] sm:$0xff] }
  0x6f   : > { %7607 = vst [vmem:[#allocation33_spill] sm:$0xff] %v5817_v48  ;;  %7608 = vst [vmem:[#allocation34_spill] sm:$0xff] %v5820_v49  ;;  %v415_v58 = vld [vmem:[#allocation2 + $0xd9] sm:$0xff]  ;;  %4238 = vrot.lane.b32.xlu1 %v5844_v56, %s5464_s29  ;;  %v4282_v46 = vpack.i.bf16 %v430_v43, %v429_v42  ;;  %v432_v52 = vld [vmem:[#allocation2 + $0x22] sm:$0xff] }
  0x70   : > { %7609 = vst [vmem:[#allocation35_spill] sm:$0xff] %v5823_v50  ;;  %357 = vst.msk [vmem:[#allocation2 + $0x139] sm:$0xff] %vm276_vm0, %v5817_v48  ;;  %v416_v59 = vld [vmem:[#allocation2 + $0xe1] sm:$0xff]  ;;  %v5991_v48 = vld [vmem:[#allocation2 + $0x98] sm:$0xff] }
  0x71   : > { %358 = vst.msk [vmem:[#allocation2 + $0x141] sm:$0xff] %vm276_vm0, %v5820_v49  ;;  %7610 = vst [vmem:[#allocation36_spill] sm:$0xff] %v5830_v53  ;;  %v417_v60 = vld [vmem:[#allocation2 + $0xf1] sm:$0xff]  ;;  %v5856_v62 = vpack.i.bf16 %v416_v59, %v415_v58  ;;  %4243 = vrot.lane.b32.xlu0 %v5852_v57, %s5464_s29  ;;  %v434_v59 = vld [vmem:[#allocation2 + $0x3a] sm:$0xff] }
  0x72   : > { %359 = vst.msk [vmem:[#allocation2 + $0x151] sm:$0xff] %vm276_vm0, %v5823_v50  ;;  %360 = vst.msk [vmem:[#allocation2 + $0x159] sm:$0xff] %vm276_vm0, %v5830_v53  ;;  %v418_v61 = vld [vmem:[#allocation2 + $0xf9] sm:$0xff]  ;;  %v7615_v53 = vmov 0   ;;  %v5324_v50 = vld [vmem:[%s7511_s1 + $0x10] sm:$0xff]  }
  0x73   : > { %7611 = vst [vmem:[#allocation37_spill] sm:$0xff] %v5837_v54  ;;  %7612 = vst [vmem:[#allocation38_spill] sm:$0xff] %v5840_v55  ;;  %v5860_v63 = vpack.i.bf16 %v418_v61, %v417_v60  ;;  %v419_v0 = vld [vmem:[#allocation2 + $0x109] sm:$0xff]  ;;  %v420_v4 = vld [vmem:[#allocation2 + $0x111] sm:$0xff]  ;;  %4248 = vrot.lane.b32.xlu1 %v5856_v62, %s5464_s29  ;;  %v5871_v60 = vpack.i.bf16 %v432_v52, %v431_v51 }
  0x74   : > { %361 = vst.msk [vmem:[#allocation2 + $0x169] sm:$0xff] %vm276_vm0, %v5837_v54  ;;  %362 = vst.msk [vmem:[#allocation2 + $0x171] sm:$0xff] %vm276_vm0, %v5840_v55  ;;  %v4257_v26 = vpack.i.bf16 %v420_v4, %v419_v0  ;;  %v433_v58 = vld [vmem:[#allocation2 + $0x32] sm:$0xff]  ;;  %v435_v0 = vld [vmem:[#allocation2 + $0x4a] sm:$0xff] }
  0x75   : > { %v421_v5 = vld [vmem:[#allocation2 + $0x121] sm:$0xff]  ;;  %v422_v7 = vld [vmem:[#allocation2 + $0x129] sm:$0xff]  ;;  %4253 = vrot.lane.b32.xlu0 %v5860_v63, %s5464_s29  ;;  %v5874_v61 = vpack.i.bf16 %v434_v59, %v433_v58  ;;  %v436_v4 = vld [vmem:[#allocation2 + $0x52] sm:$0xff] }
  0x76   : > { %v4262_v27 = vpack.i.bf16 %v422_v7, %v421_v5  ;;  %v437_v5 = vld [vmem:[#allocation2 + $0x62] sm:$0xff]  ;;  %v438_v7 = vld [vmem:[#allocation2 + $0x6a] sm:$0xff]  ;;  %v447_v51 = vld [vmem:[#allocation2 + $0xda] sm:$0xff] }
  0x77   : > { %v423_v28 = vld [vmem:[#allocation2 + $0x139] sm:$0xff]  ;;  %4258 = vrot.lane.b32.xlu1 %v4257_v26, %s5464_s29  ;;  %v448_v52 = vld [vmem:[#allocation2 + $0xe2] sm:$0xff]  ;;  %v5995_v31 = vld [vmem:[#allocation2 + $0xb0] sm:$0xff] }
  0x78   : > { %v424_v30 = vld [vmem:[#allocation2 + $0x141] sm:$0xff]  ;;  %v5325_v24 = vld [vmem:[%s7511_s1 + $0x18] sm:$0xff]   ;;  %v479_v16 = vld [vmem:[#allocation2 + $0xf0] sm:$0xff] }
  0x79   : > { %v425_v34 = vld [vmem:[#allocation2 + $0x151] sm:$0xff]  ;;  %v426_v35 = vld [vmem:[#allocation2 + $0x159] sm:$0xff]  ;;  %v4267_v36 = vpack.i.bf16 %v424_v30, %v423_v28  ;;  %4263 = vrot.lane.b32.xlu0 %v4262_v27, %s5464_s29  ;;  %v5880_v27 = vld [vmem:[%s5615_s28 + $0xf8] sm:$0xff] }
  0x7a   : > { %v4272_v38 = vpack.i.bf16 %v426_v35, %v425_v34  ;;  %v5877_v26 = vld [vmem:[%s5615_s28 + $0xf0] sm:$0xff]  ;;  %7614 = vst [vmem:[#allocation40_spill] sm:$0xff] %v5880_v27  ;;  %364 = vst.msk [vmem:[#allocation2 + $0x189] sm:$0xff] %vm276_vm0, %v5880_v27  ;;  %v5888_v34 = vpack.i.bf16 %v436_v4, %v435_v0  ;;  %v441_v35 = vld [vmem:[#allocation2 + $0x92] sm:$0xff]  ;;  %s5471_s28 = smov 112  }
  0x7b   : > { %v427_v40 = vld [vmem:[#allocation2 + $0x169] sm:$0xff]  ;;  %v428_v41 = vld [vmem:[#allocation2 + $0x171] sm:$0xff]  ;;  %4268 = vrot.lane.b32.xlu1 %v4267_v36, %s5464_s29  ;;  %7613 = vst [vmem:[#allocation39_spill] sm:$0xff] %v5877_v26  ;;  %v439_v28 = vld [vmem:[#allocation2 + $0x7a] sm:$0xff] }
  0x7c   : > { %v4277_v45 = vpack.i.bf16 %v428_v41, %v427_v40  ;;  %v440_v30 = vld [vmem:[#allocation2 + $0x82] sm:$0xff]  ;;  %363 = vst.msk [vmem:[#allocation2 + $0x181] sm:$0xff] %vm276_vm0, %v5877_v26  ;;  %v442_v36 = vld [vmem:[#allocation2 + $0x9a] sm:$0xff]  ;;  %v443_v40 = vld [vmem:[#allocation2 + $0xaa] sm:$0xff] }
  0x7d   : > { %4273 = vrot.lane.b32.xlu0 %v4272_v38, %s5464_s29  ;;  %v5892_v38 = vpack.i.bf16 %v438_v7, %v437_v5  ;;  %v444_v41 = vld [vmem:[#allocation2 + $0xb2] sm:$0xff]  ;;  %v5896_v42 = vpack.i.bf16 %v440_v30, %v439_v28  ;;  %v5900_v43 = vpack.i.bf16 %v442_v36, %v441_v35  ;;  %v450_v4 = vld [vmem:[#allocation2 + $0xfa] sm:$0xff]  ;;  %v5912_v5 = vpack.i.bf16 %v448_v52, %v447_v51  ;;  %v451_v28 = vld [vmem:[#allocation2 + $0x10a] sm:$0xff] }
  0x7e   : > { %v5904_v58 = vpack.i.bf16 %v444_v41, %v443_v40  ;;  %v449_v0 = vld [vmem:[#allocation2 + $0xf2] sm:$0xff]  ;;  %v453_v35 = vld [vmem:[#allocation2 + $0x122] sm:$0xff]  ;;  %v454_v36 = vld [vmem:[#allocation2 + $0x12a] sm:$0xff] }
  0x7f   : > { %4278 = vrot.lane.b32.xlu1 %v4277_v45, %s5464_s29  ;;  %v445_v45 = vld [vmem:[#allocation2 + $0xc2] sm:$0xff]  ;;  %v5916_v7 = vpack.i.bf16 %v450_v4, %v449_v0  ;;  %v452_v30 = vld [vmem:[#allocation2 + $0x112] sm:$0xff]  ;;  %v5924_v41 = vpack.i.bf16 %v454_v36, %v453_v35  ;;  %v458_v52 = vld [vmem:[#allocation2 + $0x15a] sm:$0xff] }
  0x80   : > { %v5920_v40 = vpack.i.bf16 %v452_v30, %v451_v28  ;;  %v457_v51 = vld [vmem:[#allocation2 + $0x152] sm:$0xff]  ;;  %v459_v27 = vld [vmem:[#allocation2 + $0x16a] sm:$0xff]  ;;  %v5932_v26 = vld [vmem:[#allocation2 + $0x20] sm:$0xff] }
  0x81   : > { %4283 = vrot.lane.b32.xlu0 %v4282_v46, %s5465_s12  ;;  %v446_v46 = vld [vmem:[#allocation2 + $0xca] sm:$0xff]  ;;  %v4352_v4 = vpack.i.bf16 %v458_v52, %v457_v51  ;;  %v460_v28 = vld [vmem:[#allocation2 + $0x172] sm:$0xff]  ;;  %v5322_v36 = vld [vmem:[%s7511_s1] sm:$0xff]   ;;  %v7520_v52 = vmov 0  }
  0x82   : > { %v5908_v59 = vpack.i.bf16 %v446_v46, %v445_v45  ;;  %v455_v45 = vld [vmem:[#allocation2 + $0x13a] sm:$0xff]  ;;  %v456_v46 = vld [vmem:[#allocation2 + $0x142] sm:$0xff]  ;;  %v4357_v35 = vpack.i.bf16 %v460_v28, %v459_v27  ;;  %1939 = vmatprep.subr.bf16.mxu0 %v7520_v52  ;;  %3731 = vmatprep.subr.bf16.mxu1 %v7520_v52 }
  0x83   : > { %4288 = vrot.lane.b32.xlu1 %v5871_v60, %s5465_s12  ;;  %v4347_v0 = vpack.i.bf16 %v456_v46, %v455_v45  ;;  %v5930_v30 = vld [vmem:[#allocation2 + $0x18] sm:$0xff]  ;;  %v5941_v46 = vld [vmem:[#allocation2 + $0x30] sm:$0xff]  ;;  %v5946_v55 = vld [vmem:[#allocation2 + $0x48] sm:$0xff]  ;;  %1940 = vmatpush1.bf16.msra.mxu0 %v5322_v36 }
  0x84   : > { %v4362_v45 = vpack.i.bf16 %v5932_v26, %v5930_v30  ;;  %v5943_v51 = vld [vmem:[#allocation2 + $0x38] sm:$0xff]  ;;  %1941 = vmatprep.subr.bf16.mxu0 %v7520_v52  ;;  %v5965_v36 = vld [vmem:[#allocation2 + $0x60] sm:$0xff]  ;;  %v5967_v52 = vld [vmem:[#allocation2 + $0x68] sm:$0xff] }
  0x85   : > { %4293 = vrot.lane.b32.xlu0 %v5874_v61, %s5465_s12  ;;  %v5955_v27 = vpack.i.bf16 %v5943_v51, %v5941_v46  ;;  %v5971_v54 = vld [vmem:[#allocation2 + $0x80] sm:$0xff]  ;;  %v5993_v32 = vld [vmem:[#allocation2 + $0xa8] sm:$0xff]  ;;  %v477_v21 = vld [vmem:[#allocation2 + $0xd8] sm:$0xff] }
  0x86   : > { %v6011_v23 = vpack.i.bf16 %v5995_v31, %v5993_v32  ;;  %v476_v22 = vld [vmem:[#allocation2 + $0xc8] sm:$0xff]  ;;  %v478_v20 = vld [vmem:[#allocation2 + $0xe0] sm:$0xff]  ;;  %v480_v15 = vld [vmem:[#allocation2 + $0xf8] sm:$0xff] }
  0x87   : > { %4298 = vrot.lane.b32.xlu1 %v5888_v34, %s5465_s12  ;;  %v6023_v17 = vpack.i.bf16 %v478_v20, %v477_v21  ;;  %v481_v14 = vld [vmem:[#allocation2 + $0x108] sm:$0xff]  ;;  %v483_v21 = vld [vmem:[#allocation2 + $0x120] sm:$0xff]  ;;  %v485_v12 = vld [vmem:[#allocation2 + $0x138] sm:$0xff] }
  0x88   : > { %v484_v13 = vld [vmem:[#allocation2 + $0x128] sm:$0xff]  ;;  %v488_v11 = vld [vmem:[#allocation2 + $0x158] sm:$0xff] }
  0x89   : > { %4303 = vrot.lane.b32.xlu0 %v5892_v38, %s5465_s12  ;;  %v489_v10 = vld [vmem:[#allocation2 + $0x168] sm:$0xff] }
  0x8a   : > { %v492_v9 = vld [vmem:[#allocation2 + $0x188] sm:$0xff] }
  0x8b   : > { %4308 = vrot.lane.b32.xlu1 %v5896_v42, %s5465_s12 }
  0x8d   : > { %4313 = vrot.lane.b32.xlu0 %v5900_v43, %s5465_s12 }
  0x8f   : > { %4318 = vrot.lane.b32.xlu1 %v5904_v58, %s5465_s12 }
  0x91   : > { %4323 = vrot.lane.b32.xlu0 %v5908_v59, %s5465_s12 }
  0x93   : > { %4328 = vrot.lane.b32.xlu1 %v5912_v5, %s5465_s12 }
  0x95   : > { %4333 = vrot.lane.b32.xlu0 %v5916_v7, %s5465_s12 }
  0x97   : > { %4338 = vrot.lane.b32.xlu1 %v5920_v40, %s5465_s12 }
  0x99   : > { %4343 = vrot.lane.b32.xlu0 %v5924_v41, %s5465_s12 }
  0x9b   : > { %4348 = vrot.lane.b32.xlu1 %v4347_v0, %s5465_s12  ;;  %v5948_v0 = vld [vmem:[#allocation2 + $0x50] sm:$0xff] }
  0x9c   : > { %v5963_v28 = vpack.i.bf16 %v5948_v0, %v5946_v55 }
  0x9d   : > { %4353 = vrot.lane.b32.xlu0 %v4352_v4, %s5465_s12  ;;  %v5323_v4 = vld [vmem:[%s7511_s1 + $0x8] sm:$0xff]  }
  0x9e   : > { %1942 = vmatpush1.bf16.msra.mxu0 %v5323_v4  ;;  %v5989_v4 = vld [vmem:[#allocation2 + $0x90] sm:$0xff] }
  0x9f   : > { %4358 = vrot.lane.b32.xlu1 %v4357_v35, %s5465_s12  ;;  %v5969_v35 = vld [vmem:[#allocation2 + $0x78] sm:$0xff]  ;;  %1943 = vmatprep.subr.bf16.mxu0 %v7615_v53  ;;  %v6002_v25 = vpack.i.bf16 %v5991_v48, %v5989_v4 }
  0xa0   : > { %v5987_v49 = vpack.i.bf16 %v5971_v54, %v5969_v35 }
  0xa1   : > { %4363 = vrot.lane.b32.xlu0 %v4362_v45, %s5467_s7  ;;  %v5978_v45 = vpack.i.bf16 %v5967_v52, %v5965_v36 }
  0xa2   : > { %1944 = vmatpush1.bf16.msra.mxu0 %v5324_v50  ;;  %v475_v50 = vld [vmem:[#allocation2 + $0xc0] sm:$0xff] }
  0xa3   : > { %4368 = vrot.lane.b32.xlu1 %v5955_v27, %s5467_s7  ;;  %1945 = vmatprep.subr.bf16.mxu0 %v7615_v53  ;;  %v6016_v19 = vpack.i.bf16 %v476_v22, %v475_v50  ;;  %v6028_v22 = vpack.i.bf16 %v480_v15, %v479_v16  ;;  %v5327_v50 = vld [vmem:[%s7511_s1 + $0x28] sm:$0xff]   ;;  %v6040_v15 = vpack.i.bf16 %v484_v13, %v483_v21  ;;  %v5328_v16 = vld [vmem:[%s7511_s1 + $0x30] sm:$0xff]   ;;  %v5329_v21 = vld [vmem:[%s7511_s1 + $0x38] sm:$0xff]  }
  0xa5   : > { %4373 = vrot.lane.b32.xlu0 %v5963_v28, %s5467_s7 }
  0xa6   : > { %1946 = vmatpush1.bf16.msra.mxu0 %v5325_v24  ;;  %v482_v24 = vld [vmem:[#allocation2 + $0x110] sm:$0xff] }
  0xa7   : > { %4378 = vrot.lane.b32.xlu1 %v5978_v45, %s5467_s7  ;;  %1947 = vmatprep.subr.bf16.mxu0 %v7615_v53  ;;  %v6035_v20 = vpack.i.bf16 %v482_v24, %v481_v14  ;;  %v487_v24 = vld [vmem:[#allocation2 + $0x150] sm:$0xff] }
  0xa8   : > { %v6052_v13 = vpack.i.bf16 %v488_v11, %v487_v24  ;;  %v5330_v11 = vld [vmem:[%s7511_s1 + $0x40] sm:$0xff]   ;;  %v622_v24 = vld [vmem:[#allocation2 + $0x32] sm:$0xff] }
  0xa9   : > { %4383 = vrot.lane.b32.xlu0 %v5987_v49, %s5467_s7  ;;  %v1781_v2 = vpack.c.bf16 %v623_v8, %v622_v24 }
  0xaa   : > { %1948 = vmatpush1.bf16.msra.mxu0 %v5326_v18  ;;  %v486_v18 = vld [vmem:[#allocation2 + $0x140] sm:$0xff] }
  0xab   : > { %4388 = vrot.lane.b32.xlu1 %v6002_v25, %s5467_s7  ;;  %1949 = vmatprep.subr.bf16.mxu0 %v7615_v53  ;;  %v6047_v14 = vpack.i.bf16 %v486_v18, %v485_v12  ;;  %v491_v18 = vld [vmem:[#allocation2 + $0x180] sm:$0xff] }
  0xac   : > { %4094 = vmatprep.mubr.msk.bf16.mxu0 %vm276_vm0, %v1781_v2 }
  0xad   : > { %4393 = vrot.lane.b32.xlu0 %v6011_v23, %s5467_s7 }
  0xae   : > { %1950 = vmatpush1.bf16.msra.mxu0 %v5327_v50  ;;  %v490_v50 = vld [vmem:[#allocation2 + $0x170] sm:$0xff] }
  0xaf   : > { %4398 = vrot.lane.b32.xlu1 %v6016_v19, %s5467_s7  ;;  %1951 = vmatprep.subr.bf16.mxu0 %v7615_v53  ;;  %v4432_v12 = vpack.i.bf16 %v490_v50, %v489_v10 }
  0xb1   : > { %4403 = vrot.lane.b32.xlu0 %v6023_v17, %s5467_s7 }
  0xb2   : > { %1952 = vmatpush1.bf16.msra.mxu0 %v5328_v16  ;;  %v4437_v16 = vpack.i.bf16 %v492_v9, %v491_v18  ;;  %v611_v18 = vld [vmem:[#allocation2 + $0x129] sm:$0xff] }
  0xb3   : > { %4408 = vrot.lane.b32.xlu1 %v6028_v22, %s5467_s7  ;;  %1953 = vmatprep.subr.bf16.mxu0 %v7615_v53 }
  0xb5   : > { %4413 = vrot.lane.b32.xlu0 %v6035_v20, %s5467_s7 }
  0xb6   : > { %1954 = vmatpush1.bf16.msra.mxu0 %v5329_v21 }
  0xb7   : > { %4418 = vrot.lane.b32.xlu1 %v6040_v15, %s5467_s7  ;;  %1955 = vmatprep.subr.bf16.mxu0 %v7615_v53  ;;  %v551_v53 = vld [vmem:[#allocation2 + $0x152] sm:$0xff] }
  0xb9   : > { %4423 = vrot.lane.b32.xlu0 %v6047_v14, %s5467_s7  ;;  %v6086_v2 = vpop.permute.xlu0 %4203 }
  0xba   : > { %1956 = vmatpush1.bf16.msra.mxu0 %v5330_v11 }
  0xbb   : > { %4428 = vrot.lane.b32.xlu1 %v6052_v13, %s5467_s7 }
  0xbd   : > { %4433 = vrot.lane.b32.xlu0 %v4432_v12, %s5467_s7 }
  0xbf   : > { %4438 = vrot.lane.b32.xlu1 %v4437_v16, %s5467_s7 }
  0xc1   : > { %4443 = vrot.lane.b32.xlu0 %v5794_v33, %s5468_s13 }
  0xc3   : > { %4448 = vrot.lane.b32.xlu1 %v5871_v60, %s5469_s17 }
  0xc5   : > { %4453 = vrot.lane.b32.xlu0 %v5955_v27, %s5470_s26 }
  0xc7   : > { %4458 = vrot.lane.b32.xlu1 %v5786_v29, %s5471_s28 }
  0xc9   : > { %4463 = vrot.lane.b32.xlu0 %v5786_v29, %s5468_s13 }
  0xcb   : > { %4468 = vrot.lane.b32.xlu1 %v5874_v61, %s5469_s17 }
  0xcd   : > { %4473 = vrot.lane.b32.xlu0 %v5963_v28, %s5470_s26 }
  0xcf   : > { %4478 = vrot.lane.b32.xlu1 %v5802_v37, %s5471_s28 }
  0xd1   : > { %4483 = vrot.lane.b32.xlu0 %v5802_v37, %s5468_s13 }
  0xd3   : > { %4488 = vrot.lane.b32.xlu1 %v5888_v34, %s5469_s17 }
  0xd5   : > { %4493 = vrot.lane.b32.xlu0 %v5978_v45, %s5470_s26  ;;  %v6092_v8 = vpop.permute.xlu1 %4213  ;;  %v609_v45 = vld [vmem:[#allocation2 + $0x111] sm:$0xff] }
  0xd6   : > { %v6094_v9 = vpop.permute.xlu0 %4208 }
  0xd7   : > { %4498 = vrot.lane.b32.xlu1 %v5806_v39, %s5471_s28 }
  0xd9   : > { %4503 = vrot.lane.b32.xlu0 %v5806_v39, %s5468_s13  ;;  %v6100_v10 = vpop.permute.xlu1 %4218 }
  0xdb   : > { %v6102_v29 = vpop.permute.xlu0 %4223  ;;  %4508 = vrot.lane.b32.xlu1 %v5892_v38, %s5469_s17 }
  0xdd   : > { %4513 = vrot.lane.b32.xlu0 %v5987_v49, %s5470_s26  ;;  %v6108_v33 = vpop.permute.xlu1 %4228 }
  0xdf   : > { %v6110_v37 = vpop.permute.xlu0 %4233  ;;  %4518 = vrot.lane.b32.xlu1 %v5810_v44, %s5471_s28 }
  0xe1   : > { %4523 = vrot.lane.b32.xlu0 %v5810_v44, %s5468_s13  ;;  %v6116_v39 = vpop.permute.xlu1 %4238 }
  0xe3   : > { %v6118_v60 = vpop.permute.xlu0 %4243  ;;  %4528 = vrot.lane.b32.xlu1 %v5896_v42, %s5469_s17 }
  0xe5   : > { %4533 = vrot.lane.b32.xlu0 %v6002_v25, %s5470_s26  ;;  %v6124_v49 = vpop.permute.xlu1 %4248 }
  0xe6   : > { %7616 = vst [vmem:[#allocation41_spill] sm:$0xff] %v6124_v49 }
  0xe7   : > { %v6126_v61 = vpop.permute.xlu0 %4253  ;;  %4538 = vrot.lane.b32.xlu1 %v5814_v47, %s5471_s28 }
  0xe8   : > { %7617 = vst [vmem:[#allocation42_spill] sm:$0xff] %v6126_v61 }
  0xe9   : > { %4543 = vrot.lane.b32.xlu0 %v5814_v47, %s5468_s13  ;;  %v6132_v44 = vpop.permute.xlu1 %4258 }
  0xea   : > { %7618 = vst [vmem:[#allocation43_spill] sm:$0xff] %v6132_v44  ;;  %v555_v44 = vld [vmem:[#allocation2 + $0x182] sm:$0xff] }
  0xeb   : > { %v6134_v34 = vpop.permute.xlu0 %4263  ;;  %4548 = vrot.lane.b32.xlu1 %v5900_v43, %s5469_s17 }
  0xec   : > { %7619 = vst [vmem:[#allocation44_spill] sm:$0xff] %v6134_v34  ;;  %v586_v34 = vld [vmem:[#allocation2 + $0x180] sm:$0xff] }
  0xed   : > { %4553 = vrot.lane.b32.xlu0 %v6011_v23, %s5470_s26  ;;  %v6140_v25 = vpop.permute.xlu1 %4268 }
  0xee   : > { %7620 = vst [vmem:[#allocation45_spill] sm:$0xff] %v6140_v25  ;;  %v616_v25 = vld [vmem:[#allocation2 + $0x169] sm:$0xff] }
  0xef   : > { %v6142_v38 = vpop.permute.xlu0 %4273  ;;  %4558 = vrot.lane.b32.xlu1 %v5844_v56, %s5471_s28 }
  0xf0   : > { %7621 = vst [vmem:[#allocation46_spill] sm:$0xff] %v6142_v38  ;;  %v585_v38 = vld [vmem:[#allocation2 + $0x170] sm:$0xff] }
  0xf1   : > { %4563 = vrot.lane.b32.xlu0 %v5844_v56, %s5468_s13  ;;  %v6148_v47 = vpop.permute.xlu1 %4278 }
  0xf2   : > { %7622 = vst [vmem:[#allocation47_spill] sm:$0xff] %v6148_v47 }
  0xf3   : > { %v6150_v42 = vpop.permute.xlu0 %4283  ;;  %4568 = vrot.lane.b32.xlu1 %v5904_v58, %s5469_s17 }
  0xf5   : > { %4573 = vrot.lane.b32.xlu0 %v6016_v19, %s5470_s26  ;;  %v6156_v23 = vpop.permute.xlu1 %4288 }
  0xf7   : > { %v6158_v43 = vpop.permute.xlu0 %4293  ;;  %4578 = vrot.lane.b32.xlu1 %v5852_v57, %s5471_s28 }
  0xf9   : > { %4583 = vrot.lane.b32.xlu0 %v5852_v57, %s5468_s13  ;;  %v6164_v56 = vpop.permute.xlu1 %4298 }
  0xfb   : > { %v6166_v27 = vpop.permute.xlu0 %4303  ;;  %4588 = vrot.lane.b32.xlu1 %v5908_v59, %s5469_s17 }
  0xfd   : > { %4593 = vrot.lane.b32.xlu0 %v6023_v17, %s5470_s26  ;;  %v6172_v19 = vpop.permute.xlu1 %4308 }
  0xff   : > { %v6174_v58 = vpop.permute.xlu0 %4313  ;;  %4598 = vrot.lane.b32.xlu1 %v5856_v62, %s5471_s28 }
 0x101   : > { %4603 = vrot.lane.b32.xlu0 %v5856_v62, %s5468_s13  ;;  %v6180_v57 = vpop.permute.xlu1 %4318  ;;  %v608_v62 = vld [vmem:[#allocation2 + $0x109] sm:$0xff] }
 0x103   : > { %v6182_v28 = vpop.permute.xlu0 %4323  ;;  %4608 = vrot.lane.b32.xlu1 %v5912_v5, %s5469_s17  ;;  %v4637_v5 = vpack.i.bf16 %v609_v45, %v608_v62  ;;  %v612_v62 = vld [vmem:[#allocation2 + $0x139] sm:$0xff]  ;;  %v613_v45 = vld [vmem:[#allocation2 + $0x141] sm:$0xff] }
 0x104   : > { %7623 = vst [vmem:[#allocation48_spill] sm:$0xff] %v6182_v28  ;;  %v620_v28 = vld [vmem:[#allocation2 + $0x199] sm:$0xff] }
 0x105   : > { %4613 = vrot.lane.b32.xlu0 %v6028_v22, %s5470_s26  ;;  %v6188_v17 = vpop.permute.xlu1 %4328 }
 0x106   : > { %7624 = vst [vmem:[#allocation49_spill] sm:$0xff] %v6188_v17 }
 0x107   : > { %v6190_v59 = vpop.permute.xlu0 %4333  ;;  %4618 = vrot.lane.b32.xlu1 %v5860_v63, %s5471_s28 }
 0x108   : > { %7625 = vst [vmem:[#allocation50_spill] sm:$0xff] %v6190_v59 }
 0x109   : > { %4623 = vrot.lane.b32.xlu0 %v5860_v63, %s5468_s13  ;;  %v6196_v50 = vpop.permute.xlu1 %4338  ;;  %v610_v63 = vld [vmem:[#allocation2 + $0x121] sm:$0xff] }
 0x10a   : > { %7626 = vst [vmem:[#allocation51_spill] sm:$0xff] %v6196_v50 }
 0x10b   : > { %v6198_v21 = vpop.permute.xlu0 %4343  ;;  %4628 = vrot.lane.b32.xlu1 %v5916_v7, %s5469_s17  ;;  %v4657_v7 = vpack.i.bf16 %v611_v18, %v610_v63  ;;  %v6234_v63 = vld [vmem:[#allocation2 + $0x142] sm:$0xff] }
 0x10c   : > { %7627 = vst [vmem:[#allocation52_spill] sm:$0xff] %v6198_v21  ;;  %7632 = vst [vmem:[#allocation57_spill] sm:$0xff] %v6234_v63 }
 0x10d   : > { %4633 = vrot.lane.b32.xlu0 %v6035_v20, %s5470_s26  ;;  %v6204_v22 = vpop.permute.xlu1 %4348 }
 0x10e   : > { %7628 = vst [vmem:[#allocation53_spill] sm:$0xff] %v6204_v22 }
 0x10f   : > { %v6206_v12 = vpop.permute.xlu0 %4353  ;;  %4638 = vrot.lane.b32.xlu1 %v4637_v5, %s5471_s28 }
 0x110   : > { %7629 = vst [vmem:[#allocation54_spill] sm:$0xff] %v6206_v12  ;;  %v584_v12 = vld [vmem:[#allocation2 + $0x168] sm:$0xff] }
 0x111   : > { %4643 = vrot.lane.b32.xlu0 %v4637_v5, %s5468_s13  ;;  %v6210_v16 = vpop.permute.xlu1 %4358  ;;  %v4712_v21 = vpack.i.bf16 %v585_v38, %v584_v12  ;;  %v366_v38 = vld [vmem:[#allocation2 + $0x8] sm:$0xff]  ;;  %v4206_v12 = vunpack.i.h.bf16 %v6086_v2 }
 0x112   : > { %7630 = vst [vmem:[#allocation55_spill] sm:$0xff] %v6210_v16  ;;  %v552_v16 = vld [vmem:[#allocation2 + $0x15a] sm:$0xff] }
 0x113   : > { %v6212_v11 = vpop.permute.xlu0 %4363  ;;  %4648 = vrot.lane.b32.xlu1 %v5920_v40, %s5469_s17  ;;  %v4677_v40 = vpack.i.bf16 %v613_v45, %v612_v62  ;;  %v615_v62 = vld [vmem:[#allocation2 + $0x159] sm:$0xff] }
 0x115   : > { %4653 = vrot.lane.b32.xlu0 %v6040_v15, %s5470_s26  ;;  %v6218_v20 = vpop.permute.xlu1 %4368  ;;  %v6232_v15 = vld [vmem:[#allocation2 + $0x13a] sm:$0xff] }
 0x116   : > { %7631 = vst [vmem:[#allocation56_spill] sm:$0xff] %v6232_v15  ;;  %v4687_v6 = vpack.i.bf16 %v6234_v63, %v6232_v15  ;;  %v553_v63 = vld [vmem:[#allocation2 + $0x16a] sm:$0xff]  ;;  %v554_v15 = vld [vmem:[#allocation2 + $0x172] sm:$0xff] }
 0x117   : > { %v6220_v24 = vpop.permute.xlu0 %4373  ;;  %4658 = vrot.lane.b32.xlu1 %v4657_v7, %s5471_s28 }
 0x119   : > { %4663 = vrot.lane.b32.xlu0 %v4657_v7, %s5468_s13  ;;  %v6224_v5 = vpop.permute.xlu1 %4378 }
 0x11b   : > { %v6226_v1 = vpop.permute.xlu0 %4383  ;;  %4668 = vrot.lane.b32.xlu1 %v5924_v41, %s5469_s17  ;;  %v614_v41 = vld [vmem:[#allocation2 + $0x151] sm:$0xff] }
 0x11c   : > { %v4697_v3 = vpack.i.bf16 %v615_v62, %v614_v41 }
 0x11d   : > { %4673 = vrot.lane.b32.xlu0 %v6047_v14, %s5470_s26  ;;  %v6236_v18 = vpop.permute.xlu1 %4388 }
 0x11f   : > { %v6238_v7 = vpop.permute.xlu0 %4393  ;;  %4678 = vrot.lane.b32.xlu1 %v4677_v40, %s5471_s28 }
 0x121   : > { %4683 = vrot.lane.b32.xlu0 %v4677_v40, %s5468_s13  ;;  %v6244_v45 = vpop.permute.xlu1 %4398  ;;  %v4707_v40 = vpack.i.bf16 %v552_v16, %v551_v53  ;;  %v587_v53 = vld [vmem:[#allocation2 + $0x188] sm:$0xff] }
 0x123   : > { %v6246_v14 = vpop.permute.xlu0 %4403  ;;  %4688 = vrot.lane.b32.xlu1 %v4687_v6, %s5469_s17  ;;  %v617_v6 = vld [vmem:[#allocation2 + $0x171] sm:$0xff] }
 0x124   : > { %7633 = vst [vmem:[#allocation58_spill] sm:$0xff] %v6246_v14 }
 0x125   : > { %4693 = vrot.lane.b32.xlu0 %v6052_v13, %s5470_s26  ;;  %v6251_v47 = vpop.permute.xlu1 %4408  ;;  %v4717_v13 = vpack.i.bf16 %v617_v6, %v616_v25  ;;  %v4732_v25 = vpack.i.bf16 %v587_v53, %v586_v34  ;;  %v365_v6 = vld [vmem:[#allocation2] sm:$0xff]  ;;  %v588_v34 = vld [vmem:[#allocation2 + $0x198] sm:$0xff] }
 0x126   : > { %7634 = vst [vmem:[#allocation59_spill] sm:$0xff] %v6251_v47  ;;  %v589_v53 = vld [vmem:[#allocation2 + $0x1a0] sm:$0xff] }
 0x127   : > { %v6253_v22 = vpop.permute.xlu0 %4413  ;;  %4698 = vrot.lane.b32.xlu1 %v4697_v3, %s5471_s28  ;;  %v4752_v14 = vpack.i.bf16 %v589_v53, %v588_v34  ;;  %v4371_v53 = vunpack.i.h.bf16 %v6218_v20 }
 0x128   : > { %7635 = vst [vmem:[#allocation60_spill] sm:$0xff] %v6253_v22 }
 0x129   : > { %4703 = vrot.lane.b32.xlu0 %v4697_v3, %s5468_s13  ;;  %v6257_v41 = vpop.permute.xlu1 %4418  ;;  %v4727_v3 = vpack.i.bf16 %v554_v15, %v553_v63  ;;  %v556_v15 = vld [vmem:[#allocation2 + $0x18a] sm:$0xff]  ;;  %v4366_v63 = vunpack.i.h.bf16 %v6212_v11 }
 0x12a   : > { %7636 = vst [vmem:[#allocation61_spill] sm:$0xff] %v6257_v41  ;;  %v4285_v41 = vunpack.i.l.bf16 %v6150_v42  ;;  %v4747_v47 = vpack.i.bf16 %v556_v15, %v555_v44 }
 0x12b   : > { %v6259_v62 = vpop.permute.xlu0 %4423  ;;  %4708 = vrot.lane.b32.xlu1 %v4707_v40, %s5469_s17  ;;  %v619_v40 = vld [vmem:[#allocation2 + $0x189] sm:$0xff] }
 0x12c   : > { %7637 = vst [vmem:[#allocation62_spill] sm:$0xff] %v6259_v62  ;;  %v4205_v62 = vunpack.i.l.bf16 %v6086_v2  ;;  %v4365_v2 = vunpack.i.l.bf16 %v6212_v11 }
 0x12d   : > { %4713 = vrot.lane.b32.xlu0 %v4712_v21, %s5470_s26  ;;  %v6263_v50 = vpop.permute.xlu1 %4428  ;;  %v618_v21 = vld [vmem:[#allocation2 + $0x181] sm:$0xff] }
 0x12e   : > { %7638 = vst [vmem:[#allocation63_spill] sm:$0xff] %v6263_v50  ;;  %v4286_v50 = vunpack.i.h.bf16 %v6150_v42  ;;  %v4737_v61 = vpack.i.bf16 %v619_v40, %v618_v21  ;;  %v1551_v42 = vsel %vm276_vm0, %v366_v38, %v4206_v12 }
 0x12f   : > { %v6265_v16 = vpop.permute.xlu0 %4433  ;;  %4718 = vrot.lane.b32.xlu1 %v4717_v13, %s5471_s28 }
 0x130   : > { %7639 = vst [vmem:[#allocation64_spill] sm:$0xff] %v6265_v16  ;;  %v1584_v11 = vsel %vm1582_vm2, %v1551_v42, %v4286_v50  ;;  %v4370_v42 = vunpack.i.l.bf16 %v6218_v20 }
 0x131   : > { %4723 = vrot.lane.b32.xlu0 %v4717_v13, %s5468_s13  ;;  %v6273_v16 = vpop.permute.xlu1 %4438  ;;  %v1617_v21 = vsel %vm1615_vm3, %v1584_v11, %v4366_v63 }
 0x132   : > { %7640 = vst [vmem:[#allocation65_spill] sm:$0xff] %v6273_v16  ;;  %v1550_v16 = vsel %vm276_vm0, %v365_v6, %v4205_v62  ;;  %v621_v62 = vld [vmem:[#allocation2 + $0x1a1] sm:$0xff]  ;;  %v624_v6 = vld [vmem:[#allocation2 + $0x4a] sm:$0xff] }
 0x133   : > { %v4444_v13 = vpop.permute.xlu0 %4443  ;;  %4728 = vrot.lane.b32.xlu1 %v4727_v3, %s5469_s17  ;;  %v1583_v17 = vsel %vm1582_vm2, %v1550_v16, %v4285_v41  ;;  %v4211_v16 = vunpack.i.h.bf16 %v6094_v9 }
 0x134   : > { %v4446_v22 = vunpack.i.h.bf16 %v4444_v13  ;;  %v4445_v59 = vunpack.i.l.bf16 %v4444_v13  ;;  %v1616_v3 = vsel %vm1615_vm3, %v1583_v17, %v4365_v2  ;;  %v4210_v17 = vunpack.i.l.bf16 %v6094_v9 }
 0x135   : > { %4733 = vrot.lane.b32.xlu0 %v4732_v25, %s5470_s26  ;;  %v4449_v49 = vpop.permute.xlu1 %4448  ;;  %v625_v25 = vld [vmem:[#allocation2 + $0x52] sm:$0xff]  ;;  %v4291_v2 = vunpack.i.h.bf16 %v6156_v23 }
 0x136   : > { %v4451_v40 = vunpack.i.h.bf16 %v4449_v49  ;;  %v4450_v38 = vunpack.i.l.bf16 %v4449_v49  ;;  %v1649_v44 = vsel %vm1648_vm4, %v1616_v3, %v4445_v59  ;;  %v1650_v50 = vsel %vm1648_vm4, %v1617_v21, %v4446_v22 }
 0x137   : > { %v4454_v12 = vpop.permute.xlu0 %4453  ;;  %4738 = vrot.lane.b32.xlu1 %v4737_v61, %s5471_s28  ;;  %v4290_v59 = vunpack.i.l.bf16 %v6156_v23  ;;  %v4757_v22 = vpack.i.bf16 %v621_v62, %v620_v28  ;;  %v1783_v34 = vpack.c.bf16 %v625_v25, %v624_v6  ;;  %v1552_v23 = vsel %vm276_vm0, %v5930_v30, %v4210_v17 }
 0x138   : > { %v4456_v15 = vunpack.i.h.bf16 %v4454_v12  ;;  %v4455_v41 = vunpack.i.l.bf16 %v4454_v12  ;;  %v1682_v63 = vsel %vm1681_vm5, %v1649_v44, %v4450_v38  ;;  %v1683_v49 = vsel %vm1681_vm5, %v1650_v50, %v4451_v40 }
 0x139   : > { %4743 = vrot.lane.b32.xlu0 %v4737_v61, %s5468_s13  ;;  %v4459_v13 = vpop.permute.xlu1 %4458  ;;  %v1553_v28 = vsel %vm276_vm0, %v5932_v26, %v4211_v16  ;;  %v1585_v62 = vsel %vm1582_vm2, %v1552_v23, %v4290_v59  ;;  %v626_v26 = vld [vmem:[#allocation2 + $0x62] sm:$0xff]  ;;  %v627_v16 = vld [vmem:[#allocation2 + $0x6a] sm:$0xff]  ;;  %v4215_v59 = vunpack.i.l.bf16 %v6092_v8 }
 0x13a   : > { %v4461_v11 = vunpack.i.h.bf16 %v4459_v13  ;;  %v4460_v3 = vunpack.i.l.bf16 %v4459_v13  ;;  %v1715_v61 = vsel %vm1714_vm6, %v1682_v63, %v4455_v41  ;;  %v1716_v40 = vsel %vm1714_vm6, %v1683_v49, %v4456_v15 }
 0x13b   : > { %v4464_v9 = vpop.permute.xlu0 %4463  ;;  %4748 = vrot.lane.b32.xlu1 %v4747_v47, %s5469_s17  ;;  %v1586_v47 = vsel %vm1582_vm2, %v1553_v28, %v4291_v2  ;;  %v1618_v44 = vsel %vm1615_vm3, %v1585_v62, %v4370_v42  ;;  %v4216_v2 = vunpack.i.h.bf16 %v6092_v8  ;;  %v4296_v42 = vunpack.i.h.bf16 %v6158_v43 }
 0x13c   : > { %v4466_v21 = vunpack.i.h.bf16 %v4464_v9  ;;  %v4465_v38 = vunpack.i.l.bf16 %v4464_v9  ;;  %v1748_v20 = vsel %vm1747_vm7, %v1715_v61, %v4460_v3  ;;  %v1749_v12 = vsel %vm1747_vm7, %v1716_v40, %v4461_v11 }
 0x13d   : > { %4753 = vrot.lane.b32.xlu0 %v4752_v14, %s5470_s26  ;;  %v4469_v6 = vpop.permute.xlu1 %4468  ;;  %v1780_v25 = vpack.c.bf16 %v1749_v12, %v1748_v20  ;;  %v1619_v50 = vsel %vm1615_vm3, %v1586_v47, %v4371_v53  ;;  %v4295_v11 = vunpack.i.l.bf16 %v6158_v43  ;;  %v1785_v9 = vpack.c.bf16 %v627_v16, %v626_v26  ;;  %v629_v26 = vld [vmem:[#allocation2 + $0x82] sm:$0xff] }
 0x13e   : > { %v4471_v30 = vunpack.i.h.bf16 %v4469_v6  ;;  %v4470_v15 = vunpack.i.l.bf16 %v4469_v6  ;;  %v1651_v14 = vsel %vm1648_vm4, %v1618_v44, %v4465_v38  ;;  %v1652_v17 = vsel %vm1648_vm4, %v1619_v50, %v4466_v21 }
 0x13f   : > { %v4474_v41 = vpop.permute.xlu0 %4473  ;;  %4758 = vrot.lane.b32.xlu1 %v4757_v22, %s5471_s28  ;;  %1972 = vmatmul.mubr.bf16.vlgmr.msra.gmra.mrb[0].mxu0 %v1780_v25  ;;  %v4376_v21 = vunpack.i.h.bf16 %v6220_v24  ;;  %v4375_v22 = vunpack.i.l.bf16 %v6220_v24  ;;  %v1555_v43 = vsel %vm276_vm0, %v5943_v51, %v4216_v2 }
 0x140   : > { %v4476_v63 = vunpack.i.h.bf16 %v4474_v41  ;;  %v4475_v49 = vunpack.i.l.bf16 %v4474_v41  ;;  %v1684_v13 = vsel %vm1681_vm5, %v1651_v14, %v4470_v15  ;;  %v1685_v53 = vsel %vm1681_vm5, %v1652_v17, %v4471_v30  ;;  %4095 = vmatprep.mubr.msk.bf16.mxu0 %vm276_vm0, %v1783_v34  ;;  %v628_v41 = vld [vmem:[#allocation2 + $0x7a] sm:$0xff] }
 0x141   : > { %v4479_v3 = vpop.permute.xlu1 %4478  ;;  %v1554_v34 = vsel %vm276_vm0, %v5941_v46, %v4215_v59  ;;  %v1588_v24 = vsel %vm1582_vm2, %v1555_v43, %v4296_v42 }
 0x142   : > { %v4481_v38 = vunpack.i.h.bf16 %v4479_v3  ;;  %v4480_v61 = vunpack.i.l.bf16 %v4479_v3  ;;  %v1717_v28 = vsel %vm1714_vm6, %v1684_v13, %v4475_v49  ;;  %v1718_v20 = vsel %vm1714_vm6, %v1685_v53, %v4476_v63 }
 0x143   : > { %v4484_v40 = vpop.permute.xlu0 %4483  ;;  %v1587_v47 = vsel %vm1582_vm2, %v1554_v34, %v4295_v11  ;;  %v1621_v50 = vsel %vm1615_vm3, %v1588_v24, %v4376_v21  ;;  %v4221_v63 = vunpack.i.h.bf16 %v6100_v10  ;;  %v4220_v49 = vunpack.i.l.bf16 %v6100_v10 }
 0x144   : > { %v4486_v8 = vunpack.i.h.bf16 %v4484_v40  ;;  %v4485_v23 = vunpack.i.l.bf16 %v4484_v40  ;;  %v1750_v12 = vsel %vm1747_vm7, %v1717_v28, %v4480_v61  ;;  %v1751_v62 = vsel %vm1747_vm7, %v1718_v20, %v4481_v38 }
 0x145   : > { %v4489_v6 = vpop.permute.xlu1 %4488  ;;  %v1782_v25 = vpack.c.bf16 %v1751_v62, %v1750_v12  ;;  %v1620_v44 = vsel %vm1615_vm3, %v1587_v47, %v4375_v22  ;;  %v4301_v13 = vunpack.i.h.bf16 %v6164_v56  ;;  %v4300_v53 = vunpack.i.l.bf16 %v6164_v56 }
 0x146   : > { %v4491_v30 = vunpack.i.h.bf16 %v4489_v6  ;;  %v4490_v15 = vunpack.i.l.bf16 %v4489_v6  ;;  %v1653_v51 = vsel %vm1648_vm4, %v1620_v44, %v4485_v23  ;;  %v1654_v16 = vsel %vm1648_vm4, %v1621_v50, %v4486_v8 }
 0x147   : > { %v4494_v46 = vpop.permute.xlu0 %4493  ;;  %1980 = vmatmul.mubr.bf16.gmra.mrb[4].mxu0 %v1782_v25  ;;  %v1787_v11 = vpack.c.bf16 %v629_v26, %v628_v41  ;;  %v4381_v3 = vunpack.i.h.bf16 %v6224_v5  ;;  %v4380_v21 = vunpack.i.l.bf16 %v6224_v5  ;;  %v1556_v56 = vsel %vm276_vm0, %v5946_v55, %v4220_v49 }
 0x148   : > { %v4496_v14 = vunpack.i.h.bf16 %v4494_v46  ;;  %v4495_v17 = vunpack.i.l.bf16 %v4494_v46  ;;  %v1686_v2 = vsel %vm1681_vm5, %v1653_v51, %v4490_v15  ;;  %v1687_v59 = vsel %vm1681_vm5, %v1654_v16, %v4491_v30  ;;  %4096 = vmatprep.mubr.msk.bf16.mxu0 %vm276_vm0, %v1785_v9 }
 0x149   : > { %v4499_v42 = vpop.permute.xlu1 %4498  ;;  %v1557_v9 = vsel %vm276_vm0, %v5948_v0, %v4221_v63  ;;  %v4226_v5 = vunpack.i.h.bf16 %v6102_v29  ;;  %v1589_v43 = vsel %vm1582_vm2, %v1556_v56, %v4300_v53  ;;  %v4225_v15 = vunpack.i.l.bf16 %v6102_v29  ;;  %v631_v63 = vld [vmem:[#allocation2 + $0x9a] sm:$0xff] }
 0x14a   : > { %v4501_v22 = vunpack.i.h.bf16 %v4499_v42  ;;  %v4500_v38 = vunpack.i.l.bf16 %v4499_v42  ;;  %v1719_v8 = vsel %vm1714_vm6, %v1686_v2, %v4495_v17  ;;  %v1720_v23 = vsel %vm1714_vm6, %v1687_v59, %v4496_v14  ;;  %v630_v17 = vld [vmem:[#allocation2 + $0x92] sm:$0xff] }
 0x14b   : > { %v4504_v61 = vpop.permute.xlu0 %4503  ;;  %v1590_v34 = vsel %vm1582_vm2, %v1557_v9, %v4301_v13  ;;  %v1622_v24 = vsel %vm1615_vm3, %v1589_v43, %v4380_v21  ;;  %v1559_v26 = vsel %vm276_vm0, %v5967_v52, %v4226_v5  ;;  %v4306_v51 = vunpack.i.h.bf16 %v6166_v27 }
 0x14c   : > { %v4506_v10 = vunpack.i.h.bf16 %v4504_v61  ;;  %v4505_v40 = vunpack.i.l.bf16 %v4504_v61  ;;  %v1752_v28 = vsel %vm1747_vm7, %v1719_v8, %v4500_v38  ;;  %v1753_v20 = vsel %vm1747_vm7, %v1720_v23, %v4501_v22 }
 0x14d   : > { %v4509_v12 = vpop.permute.xlu1 %4508  ;;  %v1784_v62 = vpack.c.bf16 %v1753_v20, %v1752_v28  ;;  %v1623_v47 = vsel %vm1615_vm3, %v1590_v34, %v4381_v3  ;;  %v4305_v16 = vunpack.i.l.bf16 %v6166_v27  ;;  %v4386_v49 = vunpack.i.h.bf16 %v6226_v1 }
 0x14e   : > { %v4511_v0 = vunpack.i.h.bf16 %v4509_v12  ;;  %v4510_v6 = vunpack.i.l.bf16 %v4509_v12  ;;  %v1656_v55 = vsel %vm1648_vm4, %v1623_v47, %v4506_v10  ;;  %v1655_v44 = vsel %vm1648_vm4, %v1622_v24, %v4505_v40 }
 0x14f   : > { %v4514_v25 = vpop.permute.xlu0 %4513  ;;  %1988 = vmatmul.mubr.bf16.gmra.mrb[8].mxu0 %v1784_v62  ;;  %v4385_v29 = vunpack.i.l.bf16 %v6226_v1  ;;  %v1558_v3 = vsel %vm276_vm0, %v5965_v36, %v4225_v15  ;;  %v1789_v22 = vpack.c.bf16 %v631_v63, %v630_v17  ;;  %v4231_v38 = vunpack.i.h.bf16 %v6108_v33 }
 0x150   : > { %v4516_v50 = vunpack.i.h.bf16 %v4514_v25  ;;  %v4515_v30 = vunpack.i.l.bf16 %v4514_v25  ;;  %v1688_v46 = vsel %vm1681_vm5, %v1655_v44, %v4510_v6  ;;  %v1689_v41 = vsel %vm1681_vm5, %v1656_v55, %v4511_v0  ;;  %4097 = vmatprep.mubr.msk.bf16.mxu0 %vm276_vm0, %v1787_v11  ;;  %v632_v25 = vld [vmem:[#allocation2 + $0xaa] sm:$0xff]  ;;  %v633_v55 = vld [vmem:[#allocation2 + $0xb2] sm:$0xff] }
 0x151   : > { %v4519_v14 = vpop.permute.xlu1 %4518  ;;  %v1591_v1 = vsel %vm1582_vm2, %v1558_v3, %v4305_v16  ;;  %v1592_v61 = vsel %vm1582_vm2, %v1559_v26, %v4306_v51  ;;  %v4230_v43 = vunpack.i.l.bf16 %v6108_v33  ;;  %v1561_v24 = vsel %vm276_vm0, %v5971_v54, %v4231_v38 }
 0x152   : > { %v4521_v2 = vunpack.i.h.bf16 %v4519_v14  ;;  %v4520_v59 = vunpack.i.l.bf16 %v4519_v14  ;;  %v1721_v11 = vsel %vm1714_vm6, %v1688_v46, %v4515_v30  ;;  %v1722_v52 = vsel %vm1714_vm6, %v1689_v41, %v4516_v50 }
 0x153   : > { %v4524_v13 = vpop.permute.xlu0 %4523  ;;  %v1624_v8 = vsel %vm1615_vm3, %v1591_v1, %v4385_v29  ;;  %v1625_v23 = vsel %vm1615_vm3, %v1592_v61, %v4386_v49  ;;  %v4311_v47 = vunpack.i.h.bf16 %v6172_v19  ;;  %v4310_v0 = vunpack.i.l.bf16 %v6172_v19 }
 0x154   : > { %v4526_v53 = vunpack.i.h.bf16 %v4524_v13  ;;  %v4525_v42 = vunpack.i.l.bf16 %v4524_v13  ;;  %v1754_v27 = vsel %vm1747_vm7, %v1721_v11, %v4520_v59  ;;  %v1755_v21 = vsel %vm1747_vm7, %v1722_v52, %v4521_v2 }
 0x155   : > { %v4529_v10 = vpop.permute.xlu1 %4528  ;;  %v1786_v40 = vpack.c.bf16 %v1755_v21, %v1754_v27  ;;  %v4391_v44 = vunpack.i.h.bf16 %v6236_v18  ;;  %v4390_v33 = vunpack.i.l.bf16 %v6236_v18  ;;  %v1560_v51 = vsel %vm276_vm0, %v5969_v35, %v4230_v43 }
 0x156   : > { %v4531_v9 = vunpack.i.h.bf16 %v4529_v10  ;;  %v4530_v56 = vunpack.i.l.bf16 %v4529_v10  ;;  %v1657_v28 = vsel %vm1648_vm4, %v1624_v8, %v4525_v42  ;;  %v1658_v20 = vsel %vm1648_vm4, %v1625_v23, %v4526_v53  ;;  %v635_v8 = vld [vmem:[#allocation2 + $0xca] sm:$0xff] }
 0x157   : > { %v4534_v36 = vpop.permute.xlu0 %4533  ;;  %1996 = vmatmul.mubr.bf16.gmra.mrb[12].mxu0 %v1786_v40  ;;  %v1791_v14 = vpack.c.bf16 %v633_v55, %v632_v25  ;;  %v4236_v17 = vunpack.i.h.bf16 %v6110_v37  ;;  %v1594_v18 = vsel %vm1582_vm2, %v1561_v24, %v4311_v47  ;;  %v1593_v63 = vsel %vm1582_vm2, %v1560_v51, %v4310_v0  ;;  %v634_v40 = vld [vmem:[#allocation2 + $0xc2] sm:$0xff] }
 0x158   : > { %v4536_v5 = vunpack.i.h.bf16 %v4534_v36  ;;  %v4535_v34 = vunpack.i.l.bf16 %v4534_v36  ;;  %v1690_v12 = vsel %vm1681_vm5, %v1657_v28, %v4530_v56  ;;  %v1691_v62 = vsel %vm1681_vm5, %v1658_v20, %v4531_v9  ;;  %4098 = vmatprep.mubr.msk.bf16.mxu0 %vm276_vm0, %v1789_v22 }
 0x159   : > { %v4539_v6 = vpop.permute.xlu1 %4538  ;;  %v1626_v2 = vsel %vm1615_vm3, %v1593_v63, %v4390_v33  ;;  %v1627_v59 = vsel %vm1615_vm3, %v1594_v18, %v4391_v44  ;;  %v4235_v27 = vunpack.i.l.bf16 %v6110_v37  ;;  %v1563_v38 = vsel %vm276_vm0, %v5991_v48, %v4236_v17  ;;  %v637_v17 = vld [vmem:[#allocation2 + $0xe2] sm:$0xff] }
 0x15a   : > { %v4541_v50 = vunpack.i.h.bf16 %v4539_v6  ;;  %v4540_v30 = vunpack.i.l.bf16 %v4539_v6  ;;  %v1723_v26 = vsel %vm1714_vm6, %v1690_v12, %v4535_v34  ;;  %v1724_v54 = vsel %vm1714_vm6, %v1691_v62, %v4536_v5 }
 0x15b   : > { %v4544_v15 = vpop.permute.xlu0 %4543  ;;  %v4316_v1 = vunpack.i.h.bf16 %v6174_v58  ;;  %v4315_v61 = vunpack.i.l.bf16 %v6174_v58  ;;  %v4396_v23 = vunpack.i.h.bf16 %v6238_v7  ;;  %v4395_v37 = vunpack.i.l.bf16 %v6238_v7 }
 0x15c   : > { %v4546_v46 = vunpack.i.h.bf16 %v4544_v15  ;;  %v4545_v41 = vunpack.i.l.bf16 %v4544_v15  ;;  %v1756_v19 = vsel %vm1747_vm7, %v1723_v26, %v4540_v30  ;;  %v1757_v16 = vsel %vm1747_vm7, %v1724_v54, %v4541_v50 }
 0x15d   : > { %v4549_v49 = vpop.permute.xlu1 %4548  ;;  %v1788_v29 = vpack.c.bf16 %v1757_v16, %v1756_v19  ;;  %v1562_v34 = vsel %vm276_vm0, %v5989_v4, %v4235_v27  ;;  %v1793_v12 = vpack.c.bf16 %v635_v8, %v634_v40  ;;  %v4241_v62 = vunpack.i.h.bf16 %v6116_v39 }
 0x15e   : > { %v4551_v13 = vunpack.i.h.bf16 %v4549_v49  ;;  %v4550_v53 = vunpack.i.l.bf16 %v4549_v49  ;;  %v1660_v42 = vsel %vm1648_vm4, %v1627_v59, %v4546_v46  ;;  %v1659_v11 = vsel %vm1648_vm4, %v1626_v2, %v4545_v41 }
 0x15f   : > { %v4554_v35 = vpop.permute.xlu0 %4553  ;;  %2004 = vmatmul.mubr.bf16.gmra.mrb[16].mxu0 %v1788_v29  ;;  %v1595_v7 = vsel %vm1582_vm2, %v1562_v34, %v4315_v61  ;;  %v1596_v24 = vsel %vm1582_vm2, %v1563_v38, %v4316_v1  ;;  %v4240_v46 = vunpack.i.l.bf16 %v6116_v39  ;;  %v1565_v54 = vsel %vm276_vm0, %v5995_v31, %v4241_v62  ;;  %v638_v34 = vld [vmem:[#allocation2 + $0xf2] sm:$0xff] }
 0x160   : > { %v4556_v52 = vunpack.i.h.bf16 %v4554_v35  ;;  %v4555_v3 = vunpack.i.l.bf16 %v4554_v35  ;;  %v1692_v21 = vsel %vm1681_vm5, %v1659_v11, %v4550_v53  ;;  %v1693_v22 = vsel %vm1681_vm5, %v1660_v42, %v4551_v13  ;;  %4099 = vmatprep.mubr.msk.bf16.mxu0 %vm276_vm0, %v1791_v14  ;;  %v636_v14 = vld [vmem:[#allocation2 + $0xda] sm:$0xff] }
 0x161   : > { %v4559_v10 = vpop.permute.xlu1 %4558  ;;  %v1628_v6 = vsel %vm1615_vm3, %v1595_v7, %v4395_v37  ;;  %v1629_v25 = vsel %vm1615_vm3, %v1596_v24, %v4396_v23  ;;  %v4321_v51 = vunpack.i.h.bf16 %v6180_v57  ;;  %v4320_v19 = vunpack.i.l.bf16 %v6180_v57 }
 0x162   : > { %v4561_v9 = vunpack.i.h.bf16 %v4559_v10  ;;  %v4560_v56 = vunpack.i.l.bf16 %v4559_v10  ;;  %v1725_v5 = vsel %vm1714_vm6, %v1692_v21, %v4555_v3  ;;  %v1726_v48 = vsel %vm1714_vm6, %v1693_v22, %v4556_v52 }
 0x163   : > { %v4564_v36 = vpop.permute.xlu0 %4563  ;;  %v4401_v18 = vunpack.i.h.bf16 %v6244_v45  ;;  %v4400_v39 = vunpack.i.l.bf16 %v6244_v45  ;;  %v1564_v53 = vsel %vm276_vm0, %v5993_v32, %v4240_v46  ;;  %v1795_v42 = vpack.c.bf16 %v637_v17, %v636_v14 }
 0x164   : > { %v4566_v28 = vunpack.i.h.bf16 %v4564_v36  ;;  %v4565_v20 = vunpack.i.l.bf16 %v4564_v36  ;;  %v1758_v58 = vsel %vm1747_vm7, %v1725_v5, %v4560_v56  ;;  %v1759_v43 = vsel %vm1747_vm7, %v1726_v48, %v4561_v9  ;;  %v5340_v56 = vld [vmem:[#allocation2 + $0xc8] sm:$0xff] }
 0x165   : > { %v4569_v47 = vpop.permute.xlu1 %4568  ;;  %v1790_v0 = vpack.c.bf16 %v1759_v43, %v1758_v58  ;;  %v4246_v11 = vunpack.i.h.bf16 %v6118_v60  ;;  %v1598_v45 = vsel %vm1582_vm2, %v1565_v54, %v4321_v51  ;;  %v1597_v52 = vsel %vm1582_vm2, %v1564_v53, %v4320_v19  ;;  %v639_v58 = vld [vmem:[#allocation2 + $0xfa] sm:$0xff]  ;;  %v7644_v53 = vld [vmem:[#allocation49_spill] sm:$0xff] }
 0x166   : > { %v4571_v55 = vunpack.i.h.bf16 %v4569_v47  ;;  %v4570_v44 = vunpack.i.l.bf16 %v4569_v47  ;;  %v1661_v33 = vsel %vm1648_vm4, %v1628_v6, %v4565_v20  ;;  %v1662_v50 = vsel %vm1648_vm4, %v1629_v25, %v4566_v28  ;;  %v7641_v28 = vld [vmem:[#allocation48_spill] sm:$0xff]  ;;  %v7642_v43 = vld [vmem:[#allocation58_spill] sm:$0xff] }
 0x167   : > { %v4574_v4 = vpop.permute.xlu0 %4573  ;;  %2012 = vmatmul.mubr.bf16.gmra.mrb[20].mxu0 %v1790_v0  ;;  %v1630_v21 = vsel %vm1615_vm3, %v1597_v52, %v4400_v39  ;;  %v1631_v22 = vsel %vm1615_vm3, %v1598_v45, %v4401_v18  ;;  %v4245_v23 = vunpack.i.l.bf16 %v6118_v60  ;;  %v1567_v36 = vsel %vm276_vm0, %v5340_v56, %v4246_v11  ;;  %v640_v11 = vld [vmem:[#allocation2 + $0x10a] sm:$0xff]  ;;  %v641_v45 = vld [vmem:[#allocation2 + $0x112] sm:$0xff]  ;;  %v7645_v52 = vld [vmem:[#allocation59_spill] sm:$0xff] }
 0x168   : > { %v4576_v30 = vunpack.i.h.bf16 %v4574_v4  ;;  %v4575_v15 = vunpack.i.l.bf16 %v4574_v4  ;;  %v1694_v41 = vsel %vm1681_vm5, %v1661_v33, %v4570_v44  ;;  %v1695_v26 = vsel %vm1681_vm5, %v1662_v50, %v4571_v55  ;;  %4100 = vmatprep.mubr.msk.bf16.mxu0 %vm276_vm0, %v1793_v12  ;;  %v5341_v55 = vld [vmem:[#allocation2 + $0xc0] sm:$0xff]  ;;  %v7646_v56 = vld [vmem:[#allocation42_spill] sm:$0xff] }
 0x169   : > { %v4579_v16 = vpop.permute.xlu1 %4578  ;;  %v4326_v20 = vunpack.i.h.bf16 %v7641_v28  ;;  %v4325_v5 = vunpack.i.l.bf16 %v7641_v28  ;;  %v4406_v12 = vunpack.i.h.bf16 %v7642_v43  ;;  %v4405_v60 = vunpack.i.l.bf16 %v7642_v43 }
 0x16a   : > { %v4581_v63 = vunpack.i.h.bf16 %v4579_v16  ;;  %v4580_v49 = vunpack.i.l.bf16 %v4579_v16  ;;  %v1727_v13 = vsel %vm1714_vm6, %v1694_v41, %v4575_v15  ;;  %v1728_v31 = vsel %vm1714_vm6, %v1695_v26, %v4576_v30  ;;  %v7643_v30 = vld [vmem:[#allocation41_spill] sm:$0xff] }
 0x16b   : > { %v4584_v29 = vpop.permute.xlu0 %4583  ;;  %v1566_v44 = vsel %vm276_vm0, %v5341_v55, %v4245_v23  ;;  %v1797_v50 = vpack.c.bf16 %v639_v58, %v638_v34  ;;  %v4251_v15 = vunpack.i.h.bf16 %v7643_v30  ;;  %v1600_v41 = vsel %vm1582_vm2, %v1567_v36, %v4326_v20  ;;  %v5344_v55 = vld [vmem:[#allocation2 + $0xf8] sm:$0xff] }
 0x16c   : > { %v4586_v2 = vunpack.i.h.bf16 %v4584_v29  ;;  %v4585_v59 = vunpack.i.l.bf16 %v4584_v29  ;;  %v1760_v57 = vsel %vm1747_vm7, %v1727_v13, %v4580_v49  ;;  %v1761_v35 = vsel %vm1747_vm7, %v1728_v31, %v4581_v63  ;;  %v5342_v13 = vld [vmem:[#allocation2 + $0xe0] sm:$0xff] }
 0x16d   : > { %v4589_v3 = vpop.permute.xlu1 %4588  ;;  %v1792_v27 = vpack.c.bf16 %v1761_v35, %v1760_v57  ;;  %v1599_v46 = vsel %vm1582_vm2, %v1566_v44, %v4325_v5  ;;  %v1633_v19 = vsel %vm1615_vm3, %v1600_v41, %v4406_v12  ;;  %v4250_v29 = vunpack.i.l.bf16 %v7643_v30  ;;  %v7648_v41 = vld [vmem:[#allocation60_spill] sm:$0xff] }
 0x16e   : > { %v4591_v38 = vunpack.i.h.bf16 %v4589_v3  ;;  %v4590_v1 = vunpack.i.l.bf16 %v4589_v3  ;;  %v1664_v61 = vsel %vm1648_vm4, %v1631_v22, %v4586_v2  ;;  %v1663_v10 = vsel %vm1648_vm4, %v1630_v21, %v4585_v59 }
 0x16f   : > { %v4594_v32 = vpop.permute.xlu0 %4593  ;;  %2020 = vmatmul.mubr.bf16.gmra.mrb[24].mxu0 %v1792_v27  ;;  %v1632_v51 = vsel %vm1615_vm3, %v1599_v46, %v4405_v60  ;;  %v1569_v31 = vsel %vm276_vm0, %v5342_v13, %v4251_v15  ;;  %v4331_v57 = vunpack.i.h.bf16 %v7644_v53  ;;  %v4330_v35 = vunpack.i.l.bf16 %v7644_v53  ;;  %v642_v15 = vld [vmem:[#allocation2 + $0x122] sm:$0xff]  ;;  %v643_v46 = vld [vmem:[#allocation2 + $0x12a] sm:$0xff] }
 0x170   : > { %v4596_v40 = vunpack.i.h.bf16 %v4594_v32  ;;  %v4595_v8 = vunpack.i.l.bf16 %v4594_v32  ;;  %v1696_v37 = vsel %vm1681_vm5, %v1663_v10, %v4590_v1  ;;  %v1697_v9 = vsel %vm1681_vm5, %v1664_v61, %v4591_v38  ;;  %4101 = vmatprep.mubr.msk.bf16.mxu0 %vm276_vm0, %v1795_v42  ;;  %v7649_v13 = vld [vmem:[#allocation43_spill] sm:$0xff] }
 0x171   : > { %v4599_v48 = vpop.permute.xlu1 %4598  ;;  %v4411_v3 = vunpack.i.h.bf16 %v7645_v52  ;;  %v4410_v27 = vunpack.i.l.bf16 %v7645_v52  ;;  %v4256_v36 = vunpack.i.h.bf16 %v7646_v56  ;;  %v1602_v28 = vsel %vm1582_vm2, %v1569_v31, %v4331_v57 }
 0x172   : > { %v4601_v62 = vunpack.i.h.bf16 %v4599_v48  ;;  %v4600_v7 = vunpack.i.l.bf16 %v4599_v48  ;;  %v1729_v6 = vsel %vm1714_vm6, %v1696_v37, %v4595_v8  ;;  %v1730_v25 = vsel %vm1714_vm6, %v1697_v9, %v4596_v40  ;;  %v5343_v40 = vld [vmem:[#allocation2 + $0xd8] sm:$0xff] }
 0x173   : > { %v4604_v24 = vpop.permute.xlu0 %4603  ;;  %v1568_v8 = vsel %vm276_vm0, %v5343_v40, %v4250_v29  ;;  %v1799_v9 = vpack.c.bf16 %v641_v45, %v640_v11  ;;  %v1635_v58 = vsel %vm1615_vm3, %v1602_v28, %v4411_v3  ;;  %v1571_v44 = vsel %vm276_vm0, %v5344_v55, %v4256_v36  ;;  %v5346_v40 = vld [vmem:[#allocation2 + $0x110] sm:$0xff] }
 0x174   : > { %v4606_v47 = vunpack.i.h.bf16 %v4604_v24  ;;  %v4605_v0 = vunpack.i.l.bf16 %v4604_v24  ;;  %v1762_v4 = vsel %vm1747_vm7, %v1729_v6, %v4600_v7  ;;  %v1763_v33 = vsel %vm1747_vm7, %v1730_v25, %v4601_v62  ;;  %v7654_v55 = vld [vmem:[#allocation57_spill] sm:$0xff] }
 0x175   : > { %v4609_v26 = vpop.permute.xlu1 %4608  ;;  %v1794_v54 = vpack.c.bf16 %v1763_v33, %v1762_v4  ;;  %v1601_v20 = vsel %vm1582_vm2, %v1568_v8, %v4330_v35  ;;  %v7647_v4 = vld [vmem:[#allocation50_spill] sm:$0xff]  ;;  %v4261_v31 = vunpack.i.h.bf16 %v7649_v13 }
 0x176   : > { %v4611_v16 = vunpack.i.h.bf16 %v4609_v26  ;;  %v4610_v14 = vunpack.i.l.bf16 %v4609_v26  ;;  %v1665_v18 = vsel %vm1648_vm4, %v1632_v51, %v4605_v0  ;;  %v1666_v39 = vsel %vm1648_vm4, %v1633_v19, %v4606_v47 }
 0x177   : > { %v4614_v17 = vpop.permute.xlu0 %4613  ;;  %2028 = vmatmul.mubr.bf16.gmra.mrb[28].mxu0 %v1794_v54  ;;  %v1634_v34 = vsel %vm1615_vm3, %v1601_v20, %v4410_v27  ;;  %v4255_v0 = vunpack.i.l.bf16 %v7646_v56  ;;  %v4336_v33 = vunpack.i.h.bf16 %v7647_v4  ;;  %v4416_v26 = vunpack.i.h.bf16 %v7648_v41  ;;  %v7652_v20 = vld [vmem:[#allocation61_spill] sm:$0xff] }
 0x178   : > { %v4616_v63 = vunpack.i.h.bf16 %v4614_v17  ;;  %v4615_v49 = vunpack.i.l.bf16 %v4614_v17  ;;  %v1698_v2 = vsel %vm1681_vm5, %v1665_v18, %v4610_v14  ;;  %v1699_v59 = vsel %vm1681_vm5, %v1666_v39, %v4611_v16  ;;  %4102 = vmatprep.mubr.msk.bf16.mxu0 %vm276_vm0, %v1797_v50 }
 0x179   : > { %v4619_v42 = vpop.permute.xlu1 %4618  ;;  %v4335_v50 = vunpack.i.l.bf16 %v7647_v4  ;;  %v4415_v54 = vunpack.i.l.bf16 %v7648_v41  ;;  %v1604_v57 = vsel %vm1582_vm2, %v1571_v44, %v4336_v33  ;;  %v1573_v8 = vsel %vm276_vm0, %v5346_v40, %v4261_v31  ;;  %v7656_v31 = vld [vmem:[#allocation52_spill] sm:$0xff]  ;;  %v5350_v40 = vld [vmem:[#allocation2 + $0x152] sm:$0xff] }
 0x17a   : > { %v4621_v21 = vunpack.i.h.bf16 %v4619_v42  ;;  %v4620_v22 = vunpack.i.l.bf16 %v4619_v42  ;;  %v1731_v61 = vsel %vm1714_vm6, %v1698_v2, %v4615_v49  ;;  %v1732_v10 = vsel %vm1714_vm6, %v1699_v59, %v4616_v63  ;;  %v5345_v63 = vld [vmem:[#allocation2 + $0xf0] sm:$0xff] }
 0x17b   : > { %v4624_v38 = vpop.permute.xlu0 %4623  ;;  %v1570_v49 = vsel %vm276_vm0, %v5345_v63, %v4255_v0  ;;  %v1801_v59 = vpack.c.bf16 %v643_v46, %v642_v15  ;;  %v1637_v45 = vsel %vm1615_vm3, %v1604_v57, %v4416_v26  ;;  %v4345_v57 = vunpack.i.l.bf16 %v7656_v31 }
 0x17c   : > { %v4626_v1 = vunpack.i.h.bf16 %v4624_v38  ;;  %v4625_v32 = vunpack.i.l.bf16 %v4624_v38  ;;  %v1764_v23 = vsel %vm1747_vm7, %v1731_v61, %v4620_v22  ;;  %v1765_v37 = vsel %vm1747_vm7, %v1732_v10, %v4621_v21 }
 0x17d   : > { %v4629_v5 = vpop.permute.xlu1 %4628  ;;  %v1796_v48 = vpack.c.bf16 %v1765_v37, %v1764_v23  ;;  %v1603_v53 = vsel %vm1582_vm2, %v1570_v49, %v4335_v50  ;;  %v7650_v23 = vld [vmem:[#allocation44_spill] sm:$0xff] }
 0x17e   : > { %v4631_v43 = vunpack.i.h.bf16 %v4629_v5  ;;  %v4630_v12 = vunpack.i.l.bf16 %v4629_v5  ;;  %v1668_v62 = vsel %vm1648_vm4, %v1635_v58, %v4626_v1  ;;  %v1667_v7 = vsel %vm1648_vm4, %v1634_v34, %v4625_v32 }
 0x17f   : > { %v4634_v60 = vpop.permute.xlu0 %4633  ;;  %2036 = vmatmul.mubr.bf16.gmra.mrb[32].mxu0 %v1796_v48  ;;  %v1636_v11 = vsel %vm1615_vm3, %v1603_v53, %v4415_v54  ;;  %v4260_v32 = vunpack.i.l.bf16 %v7649_v13  ;;  %v4266_v37 = vunpack.i.h.bf16 %v7650_v23  ;;  %v4421_v5 = vunpack.i.h.bf16 %v7652_v20 }
 0x180   : > { %v4636_v24 = vunpack.i.h.bf16 %v4634_v60  ;;  %v4635_v47 = vunpack.i.l.bf16 %v4634_v60  ;;  %v1700_v6 = vsel %vm1681_vm5, %v1667_v7, %v4630_v12  ;;  %v1701_v25 = vsel %vm1681_vm5, %v1668_v62, %v4631_v43  ;;  %4103 = vmatprep.mubr.msk.bf16.mxu0 %vm276_vm0, %v1799_v9  ;;  %v7651_v9 = vld [vmem:[#allocation51_spill] sm:$0xff] }
 0x181   : > { %v4639_v30 = vpop.permute.xlu1 %4638  ;;  %v4341_v56 = vunpack.i.h.bf16 %v7651_v9  ;;  %v4340_v36 = vunpack.i.l.bf16 %v7651_v9  ;;  %v4420_v48 = vunpack.i.l.bf16 %v7652_v20  ;;  %v4265_v4 = vunpack.i.l.bf16 %v7650_v23 }
 0x182   : > { %v4641_v51 = vunpack.i.h.bf16 %v4639_v30  ;;  %v4640_v19 = vunpack.i.l.bf16 %v4639_v30  ;;  %v1733_v18 = vsel %vm1714_vm6, %v1700_v6, %v4635_v47  ;;  %v1734_v39 = vsel %vm1714_vm6, %v1701_v25, %v4636_v24  ;;  %v5347_v24 = vld [vmem:[#allocation2 + $0x108] sm:$0xff] }
 0x183   : > { %v4644_v16 = vpop.permute.xlu0 %4643  ;;  %v1572_v47 = vsel %vm276_vm0, %v5347_v24, %v4260_v32  ;;  %v7653_v25 = vld [vmem:[#allocation56_spill] sm:$0xff]  ;;  %v1606_v33 = vsel %vm1582_vm2, %v1573_v8, %v4341_v56  ;;  %v4346_v53 = vunpack.i.h.bf16 %v7656_v31  ;;  %v5351_v8 = vld [vmem:[#allocation2 + $0x15a] sm:$0xff]  ;;  %v7658_v56 = vld [vmem:[#allocation53_spill] sm:$0xff] }
 0x184   : > { %v4646_v14 = vunpack.i.h.bf16 %v4644_v16  ;;  %v4645_v17 = vunpack.i.l.bf16 %v4644_v16  ;;  %v1766_v29 = vsel %vm1747_vm7, %v1733_v18, %v4640_v19  ;;  %v1767_v2 = vsel %vm1747_vm7, %v1734_v39, %v4641_v51  ;;  %v5348_v18 = vld [vmem:[#allocation2 + $0x128] sm:$0xff] }
 0x185   : > { %v4649_v35 = vpop.permute.xlu1 %4648  ;;  %v1798_v42 = vpack.c.bf16 %v1767_v2, %v1766_v29  ;;  %v1803_v44 = vpack.c.bf16 %v7654_v55, %v7653_v25  ;;  %v1605_v50 = vsel %vm1582_vm2, %v1572_v47, %v4340_v36  ;;  %v1639_v41 = vsel %vm1615_vm3, %v1606_v33, %v4421_v5  ;;  %v5349_v29 = vld [vmem:[#allocation2 + $0x120] sm:$0xff] }
 0x186   : > { %v4651_v52 = vunpack.i.h.bf16 %v4649_v35  ;;  %v4650_v3 = vunpack.i.l.bf16 %v4649_v35  ;;  %v1669_v21 = vsel %vm1648_vm4, %v1636_v11, %v4645_v17  ;;  %v1670_v22 = vsel %vm1648_vm4, %v1637_v45, %v4646_v14  ;;  %v7659_v55 = vld [vmem:[#allocation63_spill] sm:$0xff] }
 0x187   : > { %v4654_v27 = vpop.permute.xlu0 %4653  ;;  %2044 = vmatmul.mubr.bf16.gmra.mrb[36].mxu0 %v1798_v42  ;;  %v1638_v46 = vsel %vm1615_vm3, %v1605_v50, %v4420_v48  ;;  %v1575_v39 = vsel %vm276_vm0, %v5348_v18, %v4266_v37  ;;  %v1574_v2 = vsel %vm276_vm0, %v5349_v29, %v4265_v4  ;;  %v7657_v42 = vld [vmem:[#allocation62_spill] sm:$0xff]  ;;  %v1805_v23 = vpack.c.bf16 %v5351_v8, %v5350_v40 }
 0x188   : > { %v4656_v38 = vunpack.i.h.bf16 %v4654_v27  ;;  %v4655_v1 = vunpack.i.l.bf16 %v4654_v27  ;;  %v1702_v61 = vsel %vm1681_vm5, %v1669_v21, %v4650_v3  ;;  %v1703_v10 = vsel %vm1681_vm5, %v1670_v22, %v4651_v52  ;;  %4104 = vmatprep.mubr.msk.bf16.mxu0 %vm276_vm0, %v1801_v59  ;;  %v7655_v59 = vld [vmem:[#allocation45_spill] sm:$0xff]  ;;  %v5353_v50 = vld [vmem:[#allocation2 + $0x138] sm:$0xff] }
 0x189   : > { %v4659_v28 = vpop.permute.xlu1 %4658  ;;  %v4271_v13 = vunpack.i.h.bf16 %v7655_v59  ;;  %v4426_v11 = vunpack.i.h.bf16 %v7657_v42  ;;  %v4425_v45 = vunpack.i.l.bf16 %v7657_v42  ;;  %v4270_v32 = vunpack.i.l.bf16 %v7655_v59  ;;  %v7660_v29 = vld [vmem:[#allocation46_spill] sm:$0xff]  ;;  %v2196_v42 = vld [vmem:[#allocation2 + $0x1] sm:$0xff] }
 0x18a   : > { %v4661_v34 = vunpack.i.h.bf16 %v4659_v28  ;;  %v4660_v58 = vunpack.i.l.bf16 %v4659_v28  ;;  %v1735_v62 = vsel %vm1714_vm6, %v1702_v61, %v4655_v1  ;;  %v1736_v7 = vsel %vm1714_vm6, %v1703_v10, %v4656_v38  ;;  %v5356_v8 = vld [vmem:[#allocation2 + $0x158] sm:$0xff] }
 0x18b   : > { %v4664_v43 = vpop.permute.xlu0 %4663  ;;  %v1607_v37 = vsel %vm1582_vm2, %v1574_v2, %v4345_v57  ;;  %v1608_v9 = vsel %vm1582_vm2, %v1575_v39, %v4346_v53  ;;  %v4351_v36 = vunpack.i.h.bf16 %v7658_v56  ;;  %v4350_v24 = vunpack.i.l.bf16 %v7658_v56  ;;  %v5354_v39 = vld [vmem:[#allocation2 + $0x16a] sm:$0xff]  ;;  %v2228_v57 = vld [vmem:[#allocation2 + $0x2] sm:$0xff] }
 0x18c   : > { %v4666_v12 = vunpack.i.h.bf16 %v4664_v43  ;;  %v4665_v60 = vunpack.i.l.bf16 %v4664_v43  ;;  %v1768_v0 = vsel %vm1747_vm7, %v1735_v62, %v4660_v58  ;;  %v1769_v6 = vsel %vm1747_vm7, %v1736_v7, %v4661_v34 }
 0x18d   : > { %v4669_v30 = vpop.permute.xlu1 %4668  ;;  %v1800_v15 = vpack.c.bf16 %v1769_v6, %v1768_v0  ;;  %v1640_v5 = vsel %vm1615_vm3, %v1607_v37, %v4425_v45  ;;  %v1641_v48 = vsel %vm1615_vm3, %v1608_v9, %v4426_v11  ;;  %v5352_v6 = vld [vmem:[#allocation2 + $0x140] sm:$0xff]  ;;  %v4430_v4 = vunpack.i.l.bf16 %v7659_v55  ;;  %v7661_v37 = vld [vmem:[#allocation54_spill] sm:$0xff] }
 0x18e   : > { %v4671_v26 = vunpack.i.h.bf16 %v4669_v30  ;;  %v4670_v54 = vunpack.i.l.bf16 %v4669_v30  ;;  %v1672_v19 = vsel %vm1648_vm4, %v1639_v41, %v4666_v12  ;;  %v1671_v16 = vsel %vm1648_vm4, %v1638_v46, %v4665_v60 }
 0x18f   : > { %v4674_v51 = vpop.permute.xlu0 %4673  ;;  %2052 = vmatmul.mubr.bf16.gmra.mrb[40].mxu0 %v1800_v15  ;;  %v1577_v25 = vsel %vm276_vm0, %v5352_v6, %v4271_v13  ;;  %v1576_v30 = vsel %vm276_vm0, %v5353_v50, %v4270_v32  ;;  %v4276_v2 = vunpack.i.h.bf16 %v7660_v29  ;;  %v4356_v9 = vunpack.i.h.bf16 %v7661_v37  ;;  %v5358_v6 = vld [vmem:[#allocation2 + $0x182] sm:$0xff] }
 0x190   : > { %v4676_v14 = vunpack.i.h.bf16 %v4674_v51  ;;  %v4675_v17 = vunpack.i.l.bf16 %v4674_v51  ;;  %v1704_v63 = vsel %vm1681_vm5, %v1671_v16, %v4670_v54  ;;  %v1705_v49 = vsel %vm1681_vm5, %v1672_v19, %v4671_v26  ;;  %4105 = vmatprep.mubr.msk.bf16.mxu0 %vm276_vm0, %v1803_v44 }
 0x191   : > { %v4679_v35 = vpop.permute.xlu1 %4678  ;;  %v4431_v44 = vunpack.i.h.bf16 %v7659_v55  ;;  %v1610_v15 = vsel %vm1582_vm2, %v1577_v25, %v4351_v36  ;;  %v4355_v56 = vunpack.i.l.bf16 %v7661_v37  ;;  %v5359_v25 = vld [vmem:[#allocation2 + $0x18a] sm:$0xff] }
 0x192   : > { %v4681_v52 = vunpack.i.h.bf16 %v4679_v35  ;;  %v4680_v3 = vunpack.i.l.bf16 %v4679_v35  ;;  %v1737_v38 = vsel %vm1714_vm6, %v1704_v63, %v4675_v17  ;;  %v1738_v1 = vsel %vm1714_vm6, %v1705_v49, %v4676_v14  ;;  %v5355_v63 = vld [vmem:[#allocation2 + $0x172] sm:$0xff]  ;;  %v2229_v35 = vld [vmem:[#allocation2 + $0xa] sm:$0xff] }
 0x193   : > { %v4684_v27 = vpop.permute.xlu0 %4683  ;;  %v1609_v14 = vsel %vm1582_vm2, %v1576_v30, %v4350_v24  ;;  %v1807_v49 = vpack.c.bf16 %v5355_v63, %v5354_v39  ;;  %v1643_v13 = vsel %vm1615_vm3, %v1610_v15, %v4431_v44  ;;  %v1809_v55 = vpack.c.bf16 %v5359_v25, %v5358_v6  ;;  %v7663_v44 = vld [vmem:[#allocation47_spill] sm:$0xff] }
 0x194   : > { %v4686_v21 = vunpack.i.h.bf16 %v4684_v27  ;;  %v4685_v22 = vunpack.i.l.bf16 %v4684_v27  ;;  %v1770_v61 = vsel %vm1747_vm7, %v1737_v38, %v4680_v3  ;;  %v1771_v10 = vsel %vm1747_vm7, %v1738_v1, %v4681_v52 }
 0x195   : > { %v4689_v28 = vpop.permute.xlu1 %4688  ;;  %v1802_v20 = vpack.c.bf16 %v1771_v10, %v1770_v61  ;;  %v1642_v59 = vsel %vm1615_vm3, %v1609_v14, %v4430_v4  ;;  %v4767_v27 = vpack.i.bf16 %v2229_v35, %v2228_v57  ;;  %v4275_v61 = vunpack.i.l.bf16 %v7660_v29  ;;  %v653_v57 = vld [vmem:[#allocation2 + $0x1a2] sm:$0xff]  ;;  %v7665_v35 = vld [vmem:[#allocation65_spill] sm:$0xff] }
 0x196   : > { %v4691_v34 = vunpack.i.h.bf16 %v4689_v28  ;;  %v4690_v58 = vunpack.i.l.bf16 %v4689_v28  ;;  %v1673_v12 = vsel %vm1648_vm4, %v1640_v5, %v4685_v22  ;;  %v1674_v60 = vsel %vm1648_vm4, %v1641_v48, %v4686_v21  ;;  %v2197_v21 = vld [vmem:[#allocation2 + $0x9] sm:$0xff] }
 0x197   : > { %v4694_v43 = vpop.permute.xlu0 %4693  ;;  %2060 = vmatmul.mubr.bf16.gmra.mrb[44].mxu0 %v1802_v20  ;;  %v4762_v32 = vpack.i.bf16 %v2197_v21, %v2196_v42  ;;  %4768 = vrot.lane.b32.xlu1 %v4767_v27, %s5465_s12  ;;  %v7662_v28 = vld [vmem:[#allocation64_spill] sm:$0xff]  ;;  %v4281_v4 = vunpack.i.h.bf16 %v7663_v44  ;;  %v4441_v42 = vunpack.i.h.bf16 %v7665_v35 }
 0x198   : > { %v4696_v62 = vunpack.i.h.bf16 %v4694_v43  ;;  %v4695_v7 = vunpack.i.l.bf16 %v4694_v43  ;;  %v1706_v47 = vsel %vm1681_vm5, %v1673_v12, %v4690_v58  ;;  %v1707_v0 = vsel %vm1681_vm5, %v1674_v60, %v4691_v34  ;;  %4106 = vmatprep.mubr.msk.bf16.mxu0 %vm276_vm0, %v1805_v23 }
 0x199   : > { %v4699_v33 = vpop.permute.xlu1 %4698  ;;  %v1579_v23 = vsel %vm276_vm0, %v5356_v8, %v4276_v2  ;;  %4763 = vrot.lane.b32.xlu0 %v4762_v32, %s5464_s29  ;;  %v4436_v20 = vunpack.i.h.bf16 %v7662_v28  ;;  %v4435_v5 = vunpack.i.l.bf16 %v7662_v28  ;;  %v7664_v2 = vld [vmem:[#allocation55_spill] sm:$0xff] }
 0x19a   : > { %v4701_v46 = vunpack.i.h.bf16 %v4699_v33  ;;  %v4700_v41 = vunpack.i.l.bf16 %v4699_v33  ;;  %v1739_v19 = vsel %vm1714_vm6, %v1706_v47, %v4695_v7  ;;  %v1740_v16 = vsel %vm1714_vm6, %v1707_v0, %v4696_v62  ;;  %v5357_v7 = vld [vmem:[#allocation2 + $0x150] sm:$0xff] }
 0x19b   : > { %v4704_v26 = vpop.permute.xlu0 %4703  ;;  %v1578_v24 = vsel %vm276_vm0, %v5357_v7, %v4275_v61  ;;  %v1612_v50 = vsel %vm1582_vm2, %v1579_v23, %v4356_v9 }
 0x19c   : > { %v4706_v54 = vunpack.i.h.bf16 %v4704_v26  ;;  %v4705_v51 = vunpack.i.l.bf16 %v4704_v26  ;;  %v1772_v17 = vsel %vm1747_vm7, %v1739_v19, %v4700_v41  ;;  %v1773_v18 = vsel %vm1747_vm7, %v1740_v16, %v4701_v46 }
 0x19d   : > { %v4709_v31 = vpop.permute.xlu1 %4708  ;;  %v1804_v53 = vpack.c.bf16 %v1773_v18, %v1772_v17  ;;  %v1611_v33 = vsel %vm1582_vm2, %v1578_v24, %v4355_v56  ;;  %v1645_v41 = vsel %vm1615_vm3, %v1612_v50, %v4436_v20  ;;  %v4280_v18 = vunpack.i.l.bf16 %v7663_v44  ;;  %v5331_v44 = vld [vmem:[%s7513_s3] sm:$0xff]   ;;  %v5333_v50 = vld [vmem:[%s7513_s3 + $0x10] sm:$0xff]  }
 0x19e   : > { %v1676_v11 = vsel %vm1648_vm4, %v1643_v13, %v4706_v54  ;;  %v4711_v45 = vunpack.i.h.bf16 %v4709_v31  ;;  %v4710_v52 = vunpack.i.l.bf16 %v4709_v31  ;;  %v1675_v22 = vsel %vm1648_vm4, %v1642_v59, %v4705_v51  ;;  %3732 = vmatpush1.bf16.msra.mxu1 %v5331_v44 }
 0x19f   : > { %v4714_v3 = vpop.permute.xlu0 %4713  ;;  %2068 = vmatmul.mubr.bf16.gmra.mrb[48].mxu0 %v1804_v53  ;;  %v1644_v46 = vsel %vm1615_vm3, %v1611_v33, %v4435_v5  ;;  %v4361_v59 = vunpack.i.h.bf16 %v7664_v2  ;;  %v4360_v13 = vunpack.i.l.bf16 %v7664_v2  ;;  %v652_v53 = vld [vmem:[#allocation2 + $0x19a] sm:$0xff]  ;;  %v5332_v33 = vld [vmem:[%s7513_s3 + $0x8] sm:$0xff]   ;;  %v5337_v2 = vld [vmem:[%s7513_s3 + $0x30] sm:$0xff]  }
 0x1a0   : > { %v4716_v38 = vunpack.i.h.bf16 %v4714_v3  ;;  %v4715_v1 = vunpack.i.l.bf16 %v4714_v3  ;;  %v1708_v10 = vsel %vm1681_vm5, %v1675_v22, %v4710_v52  ;;  %v1709_v40 = vsel %vm1681_vm5, %v1676_v11, %v4711_v45  ;;  %4107 = vmatprep.mubr.msk.bf16.mxu0 %vm276_vm0, %v1807_v49  ;;  %v5360_v49 = vld [vmem:[#allocation2 + $0x170] sm:$0xff] }
 0x1a1   : > { %v4719_v36 = vpop.permute.xlu1 %4718  ;;  %v1581_v29 = vsel %vm276_vm0, %v5360_v49, %v4281_v4  ;;  %v4440_v11 = vunpack.i.l.bf16 %v7665_v35  ;;  %v7666_v4 = vmov 0  }
 0x1a2   : > { %v4721_v48 = vunpack.i.h.bf16 %v4719_v36  ;;  %v4720_v34 = vunpack.i.l.bf16 %v4719_v36  ;;  %v1741_v60 = vsel %vm1714_vm6, %v1708_v10, %v4715_v1  ;;  %v1742_v62 = vsel %vm1714_vm6, %v1709_v40, %v4716_v38  ;;  %v5361_v1 = vld [vmem:[#allocation2 + $0x168] sm:$0xff]  ;;  %3733 = vmatprep.subr.bf16.mxu1 %v7666_v4 }
 0x1a3   : > { %v4724_v58 = vpop.permute.xlu0 %4723  ;;  %v1580_v32 = vsel %vm276_vm0, %v5361_v1, %v4280_v18  ;;  %v1811_v40 = vpack.c.bf16 %v653_v57, %v652_v53  ;;  %v1614_v8 = vsel %vm1582_vm2, %v1581_v29, %v4361_v59  ;;  %3734 = vmatpush1.bf16.msra.mxu1 %v5332_v33  ;;  %v5336_v18 = vld [vmem:[%s7513_s3 + $0x28] sm:$0xff]  }
 0x1a4   : > { %v4726_v43 = vunpack.i.h.bf16 %v4724_v58  ;;  %v4725_v12 = vunpack.i.l.bf16 %v4724_v58  ;;  %v1774_v47 = vsel %vm1747_vm7, %v1741_v60, %v4720_v34  ;;  %v1775_v0 = vsel %vm1747_vm7, %v1742_v62, %v4721_v48  ;;  %3735 = vmatprep.subr.bf16.mxu1 %v7666_v4 }
 0x1a5   : > { %v4729_v30 = vpop.permute.xlu1 %4728  ;;  %v1806_v15 = vpack.c.bf16 %v1775_v0, %v1774_v47  ;;  %v1613_v23 = vsel %vm1582_vm2, %v1580_v32, %v4360_v13  ;;  %v1647_v36 = vsel %vm1615_vm3, %v1614_v8, %v4441_v42 }
 0x1a6   : > { %v4731_v26 = vunpack.i.h.bf16 %v4729_v30  ;;  %v4730_v54 = vunpack.i.l.bf16 %v4729_v30  ;;  %v1677_v19 = vsel %vm1648_vm4, %v1644_v46, %v4725_v12  ;;  %v1678_v16 = vsel %vm1648_vm4, %v1645_v41, %v4726_v43  ;;  %v6646_v30 = vld [vmem:[%s7512_s2] ss:$0 sm:$0xff] }
 0x1a7   : > { %v4734_v51 = vpop.permute.xlu0 %4733  ;;  %2076 = vmatmul.mubr.bf16.gmra.mrb[52].mxu0 %v1806_v15  ;;  %v1646_v56 = vsel %vm1615_vm3, %v1613_v23, %v4440_v11  ;;  %3736 = vmatpush1.bf16.msra.mxu1 %v5333_v50  ;;  %v5334_v15 = vld [vmem:[%s7513_s3 + $0x18] sm:$0xff]  }
 0x1a8   : > { %v4736_v14 = vunpack.i.h.bf16 %v4734_v51  ;;  %v4735_v17 = vunpack.i.l.bf16 %v4734_v51  ;;  %v1710_v39 = vsel %vm1681_vm5, %v1677_v19, %v4730_v54  ;;  %v1711_v63 = vsel %vm1681_vm5, %v1678_v16, %v4731_v26  ;;  %4108 = vmatprep.mubr.msk.bf16.mxu0 %vm276_vm0, %v1809_v55  ;;  %3737 = vmatprep.subr.bf16.mxu1 %v7666_v4  ;;  %v5335_v51 = vld [vmem:[%s7513_s3 + $0x20] sm:$0xff]  }
 0x1a9   : > { %v4739_v31 = vpop.permute.xlu1 %4738 }
 0x1aa   : > { %v4741_v45 = vunpack.i.h.bf16 %v4739_v31  ;;  %v4740_v52 = vunpack.i.l.bf16 %v4739_v31  ;;  %v1743_v22 = vsel %vm1714_vm6, %v1710_v39, %v4735_v17  ;;  %v1744_v38 = vsel %vm1714_vm6, %v1711_v63, %v4736_v14 }
 0x1ab   : > { %v4744_v3 = vpop.permute.xlu0 %4743  ;;  %3738 = vmatpush1.bf16.msra.mxu1 %v5334_v15 }
 0x1ac   : > { %v4746_v27 = vunpack.i.h.bf16 %v4744_v3  ;;  %v4745_v21 = vunpack.i.l.bf16 %v4744_v3  ;;  %v1776_v61 = vsel %vm1747_vm7, %v1743_v22, %v4740_v52  ;;  %v1777_v10 = vsel %vm1747_vm7, %v1744_v38, %v4741_v45  ;;  %3739 = vmatprep.subr.bf16.mxu1 %v7666_v4  ;;  %v5338_v3 = vld [vmem:[%s7513_s3 + $0x38] sm:$0xff]  }
 0x1ad   : > { %v4749_v37 = vpop.permute.xlu1 %4748  ;;  %v1808_v9 = vpack.c.bf16 %v1777_v10, %v1776_v61  ;;  %v5339_v61 = vld [vmem:[%s7513_s3 + $0x40] sm:$0xff]  }
 0x1ae   : > { %v4751_v28 = vunpack.i.h.bf16 %v4749_v37  ;;  %v4750_v20 = vunpack.i.l.bf16 %v4749_v37  ;;  %v1680_v48 = vsel %vm1648_vm4, %v1647_v36, %v4746_v27  ;;  %v1679_v34 = vsel %vm1648_vm4, %v1646_v56, %v4745_v21 }
 0x1af   : > { %v4754_v5 = vpop.permute.xlu0 %4753  ;;  %2084 = vmatmul.mubr.bf16.gmra.mrb[56].mxu0 %v1808_v9  ;;  %3740 = vmatpush1.bf16.msra.mxu1 %v5335_v51 }
 0x1b0   : > { %v4756_v58 = vunpack.i.h.bf16 %v4754_v5  ;;  %v4755_v43 = vunpack.i.l.bf16 %v4754_v5  ;;  %v1712_v12 = vsel %vm1681_vm5, %v1679_v34, %v4750_v20  ;;  %v1713_v60 = vsel %vm1681_vm5, %v1680_v48, %v4751_v28  ;;  %4109 = vmatprep.mubr.msk.bf16.mxu0 %vm276_vm0, %v1811_v40  ;;  %3741 = vmatprep.subr.bf16.mxu1 %v7666_v4 }
 0x1b1   : > { %v4759_v62 = vpop.permute.xlu1 %4758 }
 0x1b2   : > { %v4761_v7 = vunpack.i.h.bf16 %v4759_v62  ;;  %v4760_v24 = vunpack.i.l.bf16 %v4759_v62  ;;  %v1745_v47 = vsel %vm1714_vm6, %v1712_v12, %v4755_v43  ;;  %v1746_v0 = vsel %vm1714_vm6, %v1713_v60, %v4756_v58 }
 0x1b3   : > { %3742 = vmatpush1.bf16.msra.mxu1 %v5336_v18 }
 0x1b4   : > { %v1778_v6 = vsel %vm1747_vm7, %v1745_v47, %v4760_v24  ;;  %v1779_v25 = vsel %vm1747_vm7, %v1746_v0, %v4761_v7  ;;  %3743 = vmatprep.subr.bf16.mxu1 %v7666_v4 }
 0x1b5   : > { %v1810_v55 = vpack.c.bf16 %v1779_v25, %v1778_v6 }
 0x1b7   : > { %2092 = vmatmul.mubr.bf16.gmra.mrb[60].mxu0 %v1810_v55  ;;  %3744 = vmatpush1.bf16.msra.mxu1 %v5337_v2 }
 0x1b8   : > { %3745 = vmatprep.subr.bf16.mxu1 %v7666_v4 }
 0x1bb   : > { %3746 = vmatpush1.bf16.msra.mxu1 %v5338_v3 }
 0x1bc   : > { %3747 = vmatprep.subr.bf16.mxu1 %v7666_v4 }
 0x1bf   : > { %3748 = vmatpush1.bf16.msra.mxu1 %v5339_v61 }
 0x212   : > { %v1973_v46 = vpop.f32.mrb[0].mxu0 }
 0x213   : > { %v1974_v41 = vadd.f32 %v6646_v30, %v1973_v46  ;;  %v1975_v26 = vpop.f32.mrb[1].mxu0 }
 0x214   : > { %v1976_v54 = vpop.f32.mrb[2].mxu0 }
 0x215   : > { %v2100_v19 = vmax.f32 %v1974_v41, 0.0  ;;  %v1977_v16 = vadd.f32 %v6646_v30, %v1976_v54  ;;  %v1978_v14 = vpop.f32.mrb[3].mxu0 }
 0x217   : > { %2132 = vst.msk [vmem:[#allocation2 + $0x19] sm:$0xff] %vm276_vm0, %v2100_v19  ;;  %v2101_v17 = vmax.f32 %v1977_v16, 0.0 }
 0x219   : > { %2133 = vst.msk [vmem:[#allocation2 + $0x21] sm:$0xff] %vm276_vm0, %v2101_v17 }
 0x21a   : > { %v1981_v39 = vpop.f32.mrb[4].mxu0 }
 0x21b   : > { %v1982_v63 = vadd.f32 %v6646_v30, %v1981_v39  ;;  %v1983_v49 = vpop.f32.mrb[5].mxu0 }
 0x21c   : > { %v1984_v29 = vpop.f32.mrb[6].mxu0 }
 0x21d   : > { %v2102_v59 = vmax.f32 %v1982_v63, 0.0  ;;  %v1985_v13 = vadd.f32 %v6646_v30, %v1984_v29  ;;  %v1986_v31 = vpop.f32.mrb[7].mxu0 }
 0x21e   : > { %v6670_v57 = vld [vmem:[#allocation2 + $0x18] sm:$0xff] }
 0x21f   : > { %2134 = vst.msk [vmem:[#allocation2 + $0x31] sm:$0xff] %vm276_vm0, %v2102_v59  ;;  %v2103_v53 = vmax.f32 %v1985_v13, 0.0  ;;  %v2198_v42 = vld [vmem:[#allocation2 + $0x19] sm:$0xff] }
 0x220   : > { %v6673_v35 = vld [vmem:[#allocation2 + $0x20] sm:$0xff] }
 0x221   : > { %v2199_v11 = vld [vmem:[#allocation2 + $0x21] sm:$0xff]  ;;  %2135 = vst.msk [vmem:[#allocation2 + $0x39] sm:$0xff] %vm276_vm0, %v2103_v53  ;;  %v4777_v45 = vpack.i.bf16 %v6673_v35, %v6670_v57 }
 0x222   : > { %v4772_v52 = vpack.i.bf16 %v2199_v11, %v2198_v42  ;;  %v1989_v27 = vpop.f32.mrb[8].mxu0  ;;  %v2324_v21 = vld [vmem:[#allocation2 + $0x1a] sm:$0xff]  ;;  %v2325_v22 = vld [vmem:[#allocation2 + $0x22] sm:$0xff] }
 0x223   : > { %v1990_v38 = vadd.f32 %v6646_v30, %v1989_v27  ;;  %4778 = vrot.lane.b32.xlu0 %v4777_v45, %s5467_s7  ;;  %v1991_v1 = vpop.f32.mrb[9].mxu0  ;;  %v4787_v23 = vpack.i.bf16 %v2325_v22, %v2324_v21 }
 0x224   : > { %4773 = vrot.lane.b32.xlu1 %v4772_v52, %s5464_s29  ;;  %v1992_v32 = vpop.f32.mrb[10].mxu0 }
 0x225   : > { %v2104_v10 = vmax.f32 %v1990_v38, 0.0  ;;  %v1993_v40 = vadd.f32 %v6646_v30, %v1992_v32  ;;  %v1994_v8 = vpop.f32.mrb[11].mxu0 }
 0x226   : > { %v2200_v9 = vld [vmem:[#allocation2 + $0x31] sm:$0xff] }
 0x227   : > { %2136 = vst.msk [vmem:[#allocation2 + $0x49] sm:$0xff] %vm276_vm0, %v2104_v10  ;;  %v2105_v37 = vmax.f32 %v1993_v40, 0.0  ;;  %4788 = vrot.lane.b32.xlu0 %v4787_v23, %s5469_s17  ;;  %v6699_v60 = vld [vmem:[#allocation2 + $0x30] sm:$0xff] }
 0x228   : > { %4783 = vrot.lane.b32.xlu1 %v4772_v52, %s5468_s13  ;;  %v2420_v56 = vld [vmem:[#allocation2 + $0x32] sm:$0xff]  ;;  %v2421_v36 = vld [vmem:[#allocation2 + $0x3a] sm:$0xff] }
 0x229   : > { %v2201_v28 = vld [vmem:[#allocation2 + $0x39] sm:$0xff]  ;;  %2137 = vst.msk [vmem:[#allocation2 + $0x51] sm:$0xff] %vm276_vm0, %v2105_v37  ;;  %v3573_v20 = vpack.c.bf16 %v2421_v36, %v2420_v56  ;;  %v4827_v26 = vpack.i.bf16 %v2421_v36, %v2420_v56 }
 0x22a   : > { %v4797_v5 = vpack.i.bf16 %v2201_v28, %v2200_v9  ;;  %v1997_v48 = vpop.f32.mrb[12].mxu0  ;;  %v6693_v34 = vld [vmem:[#allocation2 + $0x38] sm:$0xff] }
 0x22b   : > { %v1998_v58 = vadd.f32 %v6646_v30, %v1997_v48  ;;  %v1999_v43 = vpop.f32.mrb[13].mxu0  ;;  %4120 = vmatprep.mubr.msk.bf16.mxu1 %vm276_vm0, %v3573_v20  ;;  %v4802_v47 = vpack.i.bf16 %v6693_v34, %v6699_v60 }
 0x22c   : > { %4793 = vrot.lane.b32.xlu1 %v4787_v23, %s5465_s12  ;;  %4798 = vrot.lane.b32.xlu0 %v4797_v5, %s5464_s29  ;;  %v2000_v12 = vpop.f32.mrb[14].mxu0 }
 0x22d   : > { %v2106_v62 = vmax.f32 %v1998_v58, 0.0  ;;  %v2001_v7 = vadd.f32 %v6646_v30, %v2000_v12  ;;  %v2002_v24 = vpop.f32.mrb[15].mxu0 }
 0x22e   : > { %v2202_v19 = vld [vmem:[#allocation2 + $0x49] sm:$0xff] }
 0x22f   : > { %2138 = vst.msk [vmem:[#allocation2 + $0x61] sm:$0xff] %vm276_vm0, %v2106_v62  ;;  %v2107_v0 = vmax.f32 %v2001_v7, 0.0  ;;  %v6733_v59 = vld [vmem:[#allocation2 + $0x48] sm:$0xff] }
 0x230   : > { %4803 = vrot.lane.b32.xlu1 %v4802_v47, %s5470_s26  ;;  %4808 = vrot.lane.b32.xlu0 %v4797_v5, %s5471_s28  ;;  %v6707_v6 = vld [vmem:[#allocation2 + $0x4a] sm:$0xff]  ;;  %v6710_v25 = vld [vmem:[#allocation2 + $0x52] sm:$0xff] }
 0x231   : > { %2139 = vst.msk [vmem:[#allocation2 + $0x69] sm:$0xff] %vm276_vm0, %v2107_v0  ;;  %v3575_v44 = vpack.c.bf16 %v6710_v25, %v6707_v6  ;;  %v2203_v54 = vld [vmem:[#allocation2 + $0x51] sm:$0xff]  ;;  %v4857_v27 = vpack.i.bf16 %v6710_v25, %v6707_v6 }
 0x232   : > { %v2005_v55 = vpop.f32.mrb[16].mxu0  ;;  %v4832_v14 = vpack.i.bf16 %v2203_v54, %v2202_v19  ;;  %v6726_v39 = vld [vmem:[#allocation2 + $0x50] sm:$0xff] }
 0x233   : > { %v2006_v4 = vadd.f32 %v6646_v30, %v2005_v55  ;;  %v2007_v33 = vpop.f32.mrb[17].mxu0  ;;  %v4837_v42 = vpack.i.bf16 %v6726_v39, %v6733_v59 }
 0x234   : > { %4818 = vrot.lane.b32.xlu1 %v4797_v5, %s5468_s13  ;;  %4813 = vrot.lane.b32.xlu0 %v4802_v47, %s5467_s7  ;;  %v2008_v50 = vpop.f32.mrb[18].mxu0 }
 0x235   : > { %v2108_v15 = vmax.f32 %v2006_v4, 0.0  ;;  %v2009_v46 = vadd.f32 %v6646_v30, %v2008_v50  ;;  %v2010_v41 = vpop.f32.mrb[19].mxu0 }
 0x236   : > { %v2204_v8 = vld [vmem:[#allocation2 + $0x61] sm:$0xff] }
 0x237   : > { %2140 = vst.msk [vmem:[#allocation2 + $0x79] sm:$0xff] %vm276_vm0, %v2108_v15  ;;  %v2109_v51 = vmax.f32 %v2009_v46, 0.0  ;;  %v6759_v56 = vld [vmem:[#allocation2 + $0x60] sm:$0xff] }
 0x238   : > { %4828 = vrot.lane.b32.xlu1 %v4827_v26, %s5465_s12  ;;  %4823 = vrot.lane.b32.xlu0 %v4827_v26, %s5469_s17  ;;  %v6721_v16 = vld [vmem:[#allocation2 + $0x62] sm:$0xff]  ;;  %v6724_v17 = vld [vmem:[#allocation2 + $0x6a] sm:$0xff] }
 0x239   : > { %2141 = vst.msk [vmem:[#allocation2 + $0x81] sm:$0xff] %vm276_vm0, %v2109_v51  ;;  %v3577_v63 = vpack.c.bf16 %v6724_v17, %v6721_v16  ;;  %v2205_v1 = vld [vmem:[#allocation2 + $0x69] sm:$0xff]  ;;  %v4897_v0 = vpack.i.bf16 %v6724_v17, %v6721_v16 }
 0x23a   : > { %v2013_v18 = vpop.f32.mrb[20].mxu0  ;;  %v4867_v23 = vpack.i.bf16 %v2205_v1, %v2204_v8  ;;  %v6754_v37 = vld [vmem:[#allocation2 + $0x68] sm:$0xff] }
 0x23b   : > { %v2014_v49 = vadd.f32 %v6646_v30, %v2013_v18  ;;  %v2015_v29 = vpop.f32.mrb[21].mxu0  ;;  %v4872_v28 = vpack.i.bf16 %v6754_v37, %v6759_v56 }
 0x23c   : > { %4833 = vrot.lane.b32.xlu1 %v4832_v14, %s5464_s29  ;;  %4843 = vrot.lane.b32.xlu0 %v4832_v14, %s5471_s28  ;;  %v2016_v2 = vpop.f32.mrb[22].mxu0 }
 0x23d   : > { %v2110_v13 = vmax.f32 %v2014_v49, 0.0  ;;  %v2017_v31 = vadd.f32 %v6646_v30, %v2016_v2  ;;  %v2018_v53 = vpop.f32.mrb[23].mxu0 }
 0x23e   : > { %v2206_v46 = vld [vmem:[#allocation2 + $0x79] sm:$0xff] }
 0x23f   : > { %2142 = vst.msk [vmem:[#allocation2 + $0x91] sm:$0xff] %vm276_vm0, %v2110_v13  ;;  %v2111_v11 = vmax.f32 %v2017_v31, 0.0  ;;  %v6789_v18 = vld [vmem:[#allocation2 + $0x78] sm:$0xff] }
 0x240   : > { %4838 = vrot.lane.b32.xlu1 %v4837_v42, %s5470_s26  ;;  %4848 = vrot.lane.b32.xlu0 %v4837_v42, %s5467_s7  ;;  %v6741_v45 = vld [vmem:[#allocation2 + $0x7a] sm:$0xff]  ;;  %v6744_v52 = vld [vmem:[#allocation2 + $0x82] sm:$0xff] }
 0x241   : > { %2143 = vst.msk [vmem:[#allocation2 + $0x99] sm:$0xff] %vm276_vm0, %v2111_v11  ;;  %v3579_v21 = vpack.c.bf16 %v6744_v52, %v6741_v45  ;;  %v2207_v4 = vld [vmem:[#allocation2 + $0x81] sm:$0xff] }
 0x242   : > { %v2021_v3 = vpop.f32.mrb[24].mxu0  ;;  %v4902_v51 = vpack.i.bf16 %v2207_v4, %v2206_v46  ;;  %v6784_v19 = vld [vmem:[#allocation2 + $0x80] sm:$0xff] }
 0x243   : > { %v2022_v22 = vadd.f32 %v6646_v30, %v2021_v3  ;;  %v2023_v38 = vpop.f32.mrb[25].mxu0  ;;  %v4907_v49 = vpack.i.bf16 %v6784_v19, %v6789_v18  ;;  %v4927_v3 = vpack.i.bf16 %v6744_v52, %v6741_v45 }
 0x244   : > { %4853 = vrot.lane.b32.xlu1 %v4832_v14, %s5468_s13  ;;  %4858 = vrot.lane.b32.xlu0 %v4857_v27, %s5469_s17  ;;  %v2024_v32 = vpop.f32.mrb[26].mxu0 }
 0x245   : > { %v2112_v61 = vmax.f32 %v2022_v22, 0.0  ;;  %v2025_v10 = vadd.f32 %v6646_v30, %v2024_v32  ;;  %v2026_v40 = vpop.f32.mrb[27].mxu0 }
 0x246   : > { %v2208_v38 = vld [vmem:[#allocation2 + $0x91] sm:$0xff] }
 0x247   : > { %2144 = vst.msk [vmem:[#allocation2 + $0xa9] sm:$0xff] %vm276_vm0, %v2112_v61  ;;  %v2113_v9 = vmax.f32 %v2025_v10, 0.0 }
 0x248   : > { %4863 = vrot.lane.b32.xlu1 %v4857_v27, %s5465_s12  ;;  %4868 = vrot.lane.b32.xlu0 %v4867_v23, %s5464_s29  ;;  %v6761_v36 = vld [vmem:[#allocation2 + $0x92] sm:$0xff]  ;;  %v6766_v20 = vld [vmem:[#allocation2 + $0x9a] sm:$0xff] }
 0x249   : > { %2145 = vst.msk [vmem:[#allocation2 + $0xb1] sm:$0xff] %vm276_vm0, %v2113_v9  ;;  %v3581_v48 = vpack.c.bf16 %v6766_v20, %v6761_v36  ;;  %v2209_v22 = vld [vmem:[#allocation2 + $0x99] sm:$0xff] }
 0x24a   : > { %v2029_v5 = vpop.f32.mrb[28].mxu0  ;;  %v4937_v32 = vpack.i.bf16 %v2209_v22, %v2208_v38  ;;  %v2365_v61 = vld [vmem:[#allocation2 + $0x98] sm:$0xff] }
 0x24b   : > { %v2030_v58 = vadd.f32 %v6646_v30, %v2029_v5  ;;  %v2031_v43 = vpop.f32.mrb[29].mxu0 }
 0x24c   : > { %4873 = vrot.lane.b32.xlu1 %v4872_v28, %s5470_s26  ;;  %4878 = vrot.lane.b32.xlu0 %v4867_v23, %s5471_s28  ;;  %v2032_v12 = vpop.f32.mrb[30].mxu0 }
 0x24d   : > { %v2114_v62 = vmax.f32 %v2030_v58, 0.0  ;;  %v2033_v7 = vadd.f32 %v6646_v30, %v2032_v12  ;;  %v2034_v24 = vpop.f32.mrb[31].mxu0 }
 0x24f   : > { %2146 = vst.msk [vmem:[#allocation2 + $0xc1] sm:$0xff] %vm276_vm0, %v2114_v62  ;;  %v2115_v47 = vmax.f32 %v2033_v7, 0.0 }
 0x250   : > { %4888 = vrot.lane.b32.xlu1 %v4867_v23, %s5468_s13  ;;  %4883 = vrot.lane.b32.xlu0 %v4872_v28, %s5467_s7  ;;  %v2364_v23 = vld [vmem:[#allocation2 + $0x90] sm:$0xff] }
 0x251   : > { %2147 = vst.msk [vmem:[#allocation2 + $0xc9] sm:$0xff] %vm276_vm0, %v2115_v47  ;;  %v4942_v58 = vpack.i.bf16 %v2365_v61, %v2364_v23  ;;  %v2211_v46 = vld [vmem:[#allocation2 + $0xb1] sm:$0xff] }
 0x252   : > { %v2037_v55 = vpop.f32.mrb[32].mxu0 }
 0x253   : > { %v2038_v33 = vadd.f32 %v6646_v30, %v2037_v55  ;;  %v2039_v50 = vpop.f32.mrb[33].mxu0 }
 0x254   : > { %4898 = vrot.lane.b32.xlu1 %v4897_v0, %s5465_s12  ;;  %4893 = vrot.lane.b32.xlu0 %v4897_v0, %s5469_s17  ;;  %v2040_v15 = vpop.f32.mrb[34].mxu0 }
 0x255   : > { %v2116_v41 = vmax.f32 %v2038_v33, 0.0  ;;  %v2041_v26 = vadd.f32 %v6646_v30, %v2040_v15  ;;  %v2042_v54 = vpop.f32.mrb[35].mxu0  ;;  %v4967_v15 = vpack.i.bf16 %v6766_v20, %v6761_v36 }
 0x257   : > { %2148 = vst.msk [vmem:[#allocation2 + $0xd9] sm:$0xff] %vm276_vm0, %v2116_v41  ;;  %v2117_v14 = vmax.f32 %v2041_v26, 0.0  ;;  %v2210_v26 = vld [vmem:[#allocation2 + $0xa9] sm:$0xff] }
 0x258   : > { %4903 = vrot.lane.b32.xlu1 %v4902_v51, %s5464_s29  ;;  %4913 = vrot.lane.b32.xlu0 %v4902_v51, %s5471_s28 }
 0x259   : > { %2149 = vst.msk [vmem:[#allocation2 + $0xe1] sm:$0xff] %vm276_vm0, %v2117_v14 }
 0x25a   : > { %v2045_v29 = vpop.f32.mrb[36].mxu0 }
 0x25b   : > { %v2046_v2 = vadd.f32 %v6646_v30, %v2045_v29  ;;  %v2047_v13 = vpop.f32.mrb[37].mxu0  ;;  %v2367_v29 = vld [vmem:[#allocation2 + $0xb0] sm:$0xff] }
 0x25c   : > { %4908 = vrot.lane.b32.xlu1 %v4907_v49, %s5470_s26  ;;  %4918 = vrot.lane.b32.xlu0 %v4907_v49, %s5467_s7  ;;  %v2048_v31 = vpop.f32.mrb[38].mxu0 }
 0x25d   : > { %v2118_v53 = vmax.f32 %v2046_v2, 0.0  ;;  %v2049_v42 = vadd.f32 %v6646_v30, %v2048_v31  ;;  %v2050_v11 = vpop.f32.mrb[39].mxu0 }
 0x25f   : > { %2150 = vst.msk [vmem:[#allocation2 + $0xf1] sm:$0xff] %vm276_vm0, %v2118_v53  ;;  %v2119_v27 = vmax.f32 %v2049_v42, 0.0  ;;  %v2366_v42 = vld [vmem:[#allocation2 + $0xa8] sm:$0xff] }
 0x260   : > { %4923 = vrot.lane.b32.xlu1 %v4902_v51, %s5468_s13  ;;  %4928 = vrot.lane.b32.xlu0 %v4927_v3, %s5469_s17  ;;  %v4972_v51 = vpack.i.bf16 %v2211_v46, %v2210_v26  ;;  %v4977_v22 = vpack.i.bf16 %v2367_v29, %v2366_v42 }
 0x261   : > { %2151 = vst.msk [vmem:[#allocation2 + $0xf9] sm:$0xff] %vm276_vm0, %v2119_v27 }
 0x262   : > { %v2053_v1 = vpop.f32.mrb[40].mxu0 }
 0x263   : > { %v2054_v10 = vadd.f32 %v6646_v30, %v2053_v1  ;;  %v2055_v40 = vpop.f32.mrb[41].mxu0  ;;  %v2336_v1 = vld [vmem:[#allocation2 + $0xaa] sm:$0xff] }
 0x264   : > { %4933 = vrot.lane.b32.xlu1 %v4927_v3, %s5465_s12  ;;  %4938 = vrot.lane.b32.xlu0 %v4937_v32, %s5464_s29  ;;  %v2056_v8 = vpop.f32.mrb[42].mxu0 }
 0x265   : > { %v2120_v9 = vmax.f32 %v2054_v10, 0.0  ;;  %v2057_v28 = vadd.f32 %v6646_v30, %v2056_v8  ;;  %v2058_v5 = vpop.f32.mrb[43].mxu0 }
 0x266   : > { %v2213_v5 = vld [vmem:[#allocation2 + $0xc9] sm:$0xff] }
 0x267   : > { %2152 = vst.msk [vmem:[#allocation2 + $0x109] sm:$0xff] %vm276_vm0, %v2120_v9  ;;  %v2121_v43 = vmax.f32 %v2057_v28, 0.0 }
 0x268   : > { %4943 = vrot.lane.b32.xlu1 %v4942_v58, %s5470_s26  ;;  %4948 = vrot.lane.b32.xlu0 %v4937_v32, %s5471_s28  ;;  %v6811_v12 = vld [vmem:[#allocation2 + $0xf2] sm:$0xff]  ;;  %v6814_v62 = vld [vmem:[#allocation2 + $0xfa] sm:$0xff] }
 0x269   : > { %2153 = vst.msk [vmem:[#allocation2 + $0x111] sm:$0xff] %vm276_vm0, %v2121_v43  ;;  %v3589_v24 = vpack.c.bf16 %v6814_v62, %v6811_v12 }
 0x26a   : > { %v2061_v7 = vpop.f32.mrb[44].mxu0 }
 0x26b   : > { %v2062_v47 = vadd.f32 %v6646_v30, %v2061_v7  ;;  %v2063_v0 = vpop.f32.mrb[45].mxu0 }
 0x26c   : > { %4958 = vrot.lane.b32.xlu1 %v4937_v32, %s5468_s13  ;;  %4953 = vrot.lane.b32.xlu0 %v4942_v58, %s5467_s7  ;;  %v2064_v55 = vpop.f32.mrb[46].mxu0  ;;  %v2337_v32 = vld [vmem:[#allocation2 + $0xb2] sm:$0xff]  ;;  %v2212_v0 = vld [vmem:[#allocation2 + $0xc1] sm:$0xff] }
 0x26d   : > { %v2122_v4 = vmax.f32 %v2062_v47, 0.0  ;;  %v2065_v33 = vadd.f32 %v6646_v30, %v2064_v55  ;;  %v2066_v50 = vpop.f32.mrb[47].mxu0  ;;  %v4997_v8 = vpack.i.bf16 %v2337_v32, %v2336_v1  ;;  %v5007_v55 = vpack.i.bf16 %v2213_v5, %v2212_v0 }
 0x26e   : > { %v2368_v50 = vld [vmem:[#allocation2 + $0xc0] sm:$0xff] }
 0x26f   : > { %2154 = vst.msk [vmem:[#allocation2 + $0x121] sm:$0xff] %vm276_vm0, %v2122_v4  ;;  %v2123_v41 = vmax.f32 %v2065_v33, 0.0  ;;  %v2369_v4 = vld [vmem:[#allocation2 + $0xc8] sm:$0xff] }
 0x270   : > { %4968 = vrot.lane.b32.xlu1 %v4967_v15, %s5465_s12  ;;  %4963 = vrot.lane.b32.xlu0 %v4967_v15, %s5469_s17  ;;  %v6827_v54 = vld [vmem:[#allocation2 + $0x10a] sm:$0xff]  ;;  %v6830_v14 = vld [vmem:[#allocation2 + $0x112] sm:$0xff]  ;;  %v5012_v46 = vpack.i.bf16 %v2369_v4, %v2368_v50  ;;  %v4764_v50 = vpop.permute.xlu0 %4763 }
 0x271   : > { %2155 = vst.msk [vmem:[#allocation2 + $0x129] sm:$0xff] %vm276_vm0, %v2123_v41  ;;  %v3591_v2 = vpack.c.bf16 %v6830_v14, %v6827_v54 }
 0x272   : > { %v2069_v49 = vpop.f32.mrb[48].mxu0 }
 0x273   : > { %v2070_v13 = vadd.f32 %v6646_v30, %v2069_v49  ;;  %v2071_v31 = vpop.f32.mrb[49].mxu0 }
 0x274   : > { %4973 = vrot.lane.b32.xlu1 %v4972_v51, %s5464_s29  ;;  %4983 = vrot.lane.b32.xlu0 %v4972_v51, %s5471_s28  ;;  %v2072_v53 = vpop.f32.mrb[50].mxu0 }
 0x275   : > { %v2124_v11 = vmax.f32 %v2070_v13, 0.0  ;;  %v2073_v3 = vadd.f32 %v6646_v30, %v2072_v53  ;;  %v2074_v27 = vpop.f32.mrb[51].mxu0 }
 0x277   : > { %2156 = vst.msk [vmem:[#allocation2 + $0x139] sm:$0xff] %vm276_vm0, %v2124_v11  ;;  %v2125_v38 = vmax.f32 %v2073_v3, 0.0  ;;  %v2244_v11 = vld [vmem:[#allocation2 + $0xc2] sm:$0xff]  ;;  %v2245_v3 = vld [vmem:[#allocation2 + $0xca] sm:$0xff] }
 0x278   : > { %4978 = vrot.lane.b32.xlu1 %v4977_v22, %s5470_s26  ;;  %4988 = vrot.lane.b32.xlu0 %v4977_v22, %s5467_s7  ;;  %v6841_v61 = vld [vmem:[#allocation2 + $0x122] sm:$0xff]  ;;  %v6844_v10 = vld [vmem:[#allocation2 + $0x12a] sm:$0xff] }
 0x279   : > { %2157 = vst.msk [vmem:[#allocation2 + $0x141] sm:$0xff] %vm276_vm0, %v2125_v38  ;;  %v3593_v23 = vpack.c.bf16 %v6844_v10, %v6841_v61  ;;  %v5037_v38 = vpack.i.bf16 %v2245_v3, %v2244_v11  ;;  %v4766_v11 = vunpack.i.h.bf16 %v4764_v50 }
 0x27a   : > { %v2077_v40 = vpop.f32.mrb[52].mxu0 }
 0x27b   : > { %v2078_v9 = vadd.f32 %v6646_v30, %v2077_v40  ;;  %v2079_v28 = vpop.f32.mrb[53].mxu0  ;;  %v2215_v40 = vld [vmem:[#allocation2 + $0xe1] sm:$0xff] }
 0x27c   : > { %4993 = vrot.lane.b32.xlu1 %v4972_v51, %s5468_s13  ;;  %4998 = vrot.lane.b32.xlu0 %v4997_v8, %s5469_s17  ;;  %v2080_v58 = vpop.f32.mrb[54].mxu0 }
 0x27d   : > { %v2126_v43 = vmax.f32 %v2078_v9, 0.0  ;;  %v2081_v7 = vadd.f32 %v6646_v30, %v2080_v58  ;;  %v2082_v47 = vpop.f32.mrb[55].mxu0  ;;  %v2214_v58 = vld [vmem:[#allocation2 + $0xd9] sm:$0xff] }
 0x27e   : > { %v5042_v0 = vpack.i.bf16 %v2215_v40, %v2214_v58  ;;  %v2164_v40 = vld [vmem:[#allocation2] sm:$0xff]  ;;  %v2216_v58 = vld [vmem:[#allocation2 + $0xf1] sm:$0xff] }
 0x27f   : > { %2158 = vst.msk [vmem:[#allocation2 + $0x151] sm:$0xff] %vm276_vm0, %v2126_v43  ;;  %v2127_v33 = vmax.f32 %v2081_v7, 0.0 }
 0x280   : > { %5003 = vrot.lane.b32.xlu1 %v4997_v8, %s5465_s12  ;;  %5008 = vrot.lane.b32.xlu0 %v5007_v55, %s5464_s29  ;;  %v6855_v15 = vld [vmem:[#allocation2 + $0x13a] sm:$0xff]  ;;  %v6858_v41 = vld [vmem:[#allocation2 + $0x142] sm:$0xff]  ;;  %v2372_v8 = vld [vmem:[#allocation2 + $0xf0] sm:$0xff] }
 0x281   : > { %2159 = vst.msk [vmem:[#allocation2 + $0x159] sm:$0xff] %vm276_vm0, %v2127_v33  ;;  %v4769_v33 = vpop.permute.xlu1 %4768 }
 0x282   : > { %v2085_v26 = vpop.f32.mrb[56].mxu0 }
 0x283   : > { %v2086_v49 = vadd.f32 %v6646_v30, %v2085_v26  ;;  %v2087_v29 = vpop.f32.mrb[57].mxu0 }
 0x284   : > { %5013 = vrot.lane.b32.xlu1 %v5012_v46, %s5470_s26  ;;  %5018 = vrot.lane.b32.xlu0 %v5007_v55, %s5471_s28  ;;  %v2088_v13 = vpop.f32.mrb[58].mxu0 }
 0x285   : > { %v2128_v31 = vmax.f32 %v2086_v49, 0.0  ;;  %v2089_v53 = vadd.f32 %v6646_v30, %v2088_v13  ;;  %v2090_v42 = vpop.f32.mrb[59].mxu0  ;;  %v2340_v13 = vld [vmem:[#allocation2 + $0xda] sm:$0xff] }
 0x287   : > { %2160 = vst.msk [vmem:[#allocation2 + $0x169] sm:$0xff] %vm276_vm0, %v2128_v31  ;;  %v2129_v27 = vmax.f32 %v2089_v53, 0.0  ;;  %v2341_v31 = vld [vmem:[#allocation2 + $0xe2] sm:$0xff] }
 0x288   : > { %5028 = vrot.lane.b32.xlu1 %v5007_v55, %s5468_s13  ;;  %5023 = vrot.lane.b32.xlu0 %v5012_v46, %s5467_s7  ;;  %v6869_v22 = vld [vmem:[#allocation2 + $0x152] sm:$0xff]  ;;  %v6872_v1 = vld [vmem:[#allocation2 + $0x15a] sm:$0xff]  ;;  %v5067_v3 = vpack.i.bf16 %v2341_v31, %v2340_v13 }
 0x289   : > { %2161 = vst.msk [vmem:[#allocation2 + $0x171] sm:$0xff] %vm276_vm0, %v2129_v27  ;;  %v2371_v55 = vld [vmem:[#allocation2 + $0xe0] sm:$0xff]  ;;  %v2370_v46 = vld [vmem:[#allocation2 + $0xd8] sm:$0xff]  ;;  %v2165_v27 = vld [vmem:[#allocation2 + $0x8] sm:$0xff] }
 0x28a   : > { %v2093_v32 = vpop.f32.mrb[60].mxu0  ;;  %v5047_v49 = vpack.i.bf16 %v2371_v55, %v2370_v46  ;;  %v3349_v55 = vsel %vm276_vm0, %v2165_v27, %v4766_v11  ;;  %v2373_v46 = vld [vmem:[#allocation2 + $0xf8] sm:$0xff] }
 0x28b   : > { %v2094_v9 = vadd.f32 %v6646_v30, %v2093_v32  ;;  %v2095_v28 = vpop.f32.mrb[61].mxu0  ;;  %v2217_v32 = vld [vmem:[#allocation2 + $0xf9] sm:$0xff] }
 0x28c   : > { %5038 = vrot.lane.b32.xlu1 %v5037_v38, %s5465_s12  ;;  %5033 = vrot.lane.b32.xlu0 %v5037_v38, %s5469_s17  ;;  %v2096_v5 = vpop.f32.mrb[62].mxu0  ;;  %v4765_v38 = vunpack.i.l.bf16 %v4764_v50 }
 0x28d   : > { %v2130_v43 = vmax.f32 %v2094_v9, 0.0  ;;  %v2097_v7 = vadd.f32 %v6646_v30, %v2096_v5  ;;  %v2098_v47 = vpop.f32.mrb[63].mxu0 }
 0x28e   : > { %v4770_v47 = vunpack.i.l.bf16 %v4769_v33  ;;  %v3348_v50 = vsel %vm276_vm0, %v2164_v40, %v4765_v38 }
 0x28f   : > { %2162 = vst.msk [vmem:[#allocation2 + $0x181] sm:$0xff] %vm276_vm0, %v2130_v43  ;;  %v2131_v4 = vmax.f32 %v2097_v7, 0.0  ;;  %v4771_v7 = vunpack.i.h.bf16 %v4769_v33  ;;  %v5082_v33 = vpack.i.bf16 %v2373_v46, %v2372_v8 }
 0x290   : > { %5043 = vrot.lane.b32.xlu1 %v5042_v0, %s5464_s29  ;;  %5053 = vrot.lane.b32.xlu0 %v5042_v0, %s5471_s28  ;;  %v6883_v26 = vld [vmem:[#allocation2 + $0x16a] sm:$0xff]  ;;  %v6886_v29 = vld [vmem:[#allocation2 + $0x172] sm:$0xff]  ;;  %v3380_v11 = vsel %vm1582_vm2, %v3348_v50, %v4770_v47 }
 0x291   : > { %2163 = vst.msk [vmem:[#allocation2 + $0x189] sm:$0xff] %vm276_vm0, %v2131_v4  ;;  %v5077_v4 = vpack.i.bf16 %v2217_v32, %v2216_v58  ;;  %v3381_v27 = vsel %vm1582_vm2, %v3349_v55, %v4771_v7 }
 0x294   : > { %5048 = vrot.lane.b32.xlu1 %v5047_v49, %s5470_s26  ;;  %5058 = vrot.lane.b32.xlu0 %v5047_v49, %s5467_s7 }
 0x295   : > { %v4779_v53 = vpop.permute.xlu0 %4778 }
 0x296   : > { %v6892_v42 = vpop.permute.xlu1 %4773  ;;  %v4780_v49 = vunpack.i.l.bf16 %v4779_v53 }
 0x298   : > { %5063 = vrot.lane.b32.xlu1 %v5042_v0, %s5468_s13  ;;  %5068 = vrot.lane.b32.xlu0 %v5067_v3, %s5469_s17  ;;  %v6896_v9 = vld [vmem:[#allocation2 + $0x182] sm:$0xff]  ;;  %v6898_v43 = vld [vmem:[#allocation2 + $0x18a] sm:$0xff]  ;;  %v4781_v0 = vunpack.i.h.bf16 %v4779_v53 }
 0x299   : > { %v4789_v28 = vpop.permute.xlu0 %4788  ;;  %v3601_v13 = vpack.c.bf16 %v6898_v43, %v6896_v9 }
 0x29a   : > { %v4784_v5 = vpop.permute.xlu1 %4783  ;;  %v3413_v53 = vsel %vm1615_vm3, %v3381_v27, %v4781_v0  ;;  %v4791_v38 = vunpack.i.h.bf16 %v4789_v28  ;;  %v4790_v40 = vunpack.i.l.bf16 %v4789_v28 }
 0x29b   : > { %v4786_v31 = vunpack.i.h.bf16 %v4784_v5  ;;  %v4785_v30 = vunpack.i.l.bf16 %v4784_v5 }
 0x29c   : > { %5073 = vrot.lane.b32.xlu1 %v5067_v3, %s5465_s12  ;;  %5078 = vrot.lane.b32.xlu0 %v5077_v4, %s5464_s29  ;;  %v3412_v3 = vsel %vm1615_vm3, %v3380_v11, %v4780_v49  ;;  %v5107_v11 = vpack.i.bf16 %v6814_v62, %v6811_v12 }
 0x29d   : > { %v3445_v5 = vsel %vm1648_vm4, %v3413_v53, %v4786_v31  ;;  %v3444_v58 = vsel %vm1648_vm4, %v3412_v3, %v4785_v30 }
 0x29e   : > { %v4794_v51 = vpop.permute.xlu1 %4793  ;;  %v6908_v32 = vpop.permute.xlu0 %4798  ;;  %v3476_v0 = vsel %vm1681_vm5, %v3444_v58, %v4790_v40  ;;  %v3477_v28 = vsel %vm1681_vm5, %v3445_v5, %v4791_v38  ;;  %v2407_v38 = vld [vmem:[#allocation2 + $0x111] sm:$0xff]  ;;  %v4776_v40 = vunpack.i.h.bf16 %v6892_v42  ;;  %v4775_v5 = vunpack.i.l.bf16 %v6892_v42 }
 0x2a0   : > { %5083 = vrot.lane.b32.xlu1 %v5082_v33, %s5470_s26  ;;  %5088 = vrot.lane.b32.xlu0 %v5077_v4, %s5471_s28  ;;  %v3350_v42 = vsel %vm276_vm0, %v6670_v57, %v4775_v5  ;;  %v3351_v6 = vsel %vm276_vm0, %v6673_v35, %v4776_v40  ;;  %v5132_v35 = vpack.i.bf16 %v6830_v14, %v6827_v54 }
 0x2a2   : > { %v4804_v8 = vpop.permute.xlu1 %4803  ;;  %v4809_v7 = vpop.permute.xlu0 %4808 }
 0x2a3   : > { %v4806_v47 = vunpack.i.h.bf16 %v4804_v8  ;;  %v4805_v46 = vunpack.i.l.bf16 %v4804_v8  ;;  %v4811_v55 = vunpack.i.h.bf16 %v4809_v7  ;;  %v4810_v50 = vunpack.i.l.bf16 %v4809_v7  ;;  %v2375_v8 = vld [vmem:[#allocation2 + $0x110] sm:$0xff] }
 0x2a4   : > { %5098 = vrot.lane.b32.xlu1 %v5077_v4, %s5468_s13  ;;  %5093 = vrot.lane.b32.xlu0 %v5082_v33, %s5467_s7  ;;  %v2374_v33 = vld [vmem:[#allocation2 + $0x108] sm:$0xff]  ;;  %v4796_v7 = vunpack.i.h.bf16 %v4794_v51 }
 0x2a5   : > { %v3508_v49 = vsel %vm1714_vm6, %v3476_v0, %v4805_v46  ;;  %v3509_v30 = vsel %vm1714_vm6, %v3477_v28, %v4806_v47  ;;  %v5112_v47 = vpack.i.bf16 %v2375_v8, %v2374_v33  ;;  %v2406_v46 = vld [vmem:[#allocation2 + $0x109] sm:$0xff] }
 0x2a6   : > { %v4819_v31 = vpop.permute.xlu1 %4818  ;;  %v3540_v27 = vsel %vm1747_vm7, %v3508_v49, %v4810_v50  ;;  %v3541_v53 = vsel %vm1747_vm7, %v3509_v30, %v4811_v55  ;;  %v4814_v3 = vpop.permute.xlu0 %4813  ;;  %v4795_v55 = vunpack.i.l.bf16 %v4794_v51  ;;  %v5117_v0 = vpack.i.bf16 %v2407_v38, %v2406_v46  ;;  %v2377_v38 = vld [vmem:[#allocation2 + $0x128] sm:$0xff] }
 0x2a7   : > { %v3572_v4 = vpack.c.bf16 %v3541_v53, %v3540_v27  ;;  %v4816_v28 = vunpack.i.h.bf16 %v4814_v3  ;;  %v4815_v49 = vunpack.i.l.bf16 %v4814_v3  ;;  %v3383_v51 = vsel %vm1582_vm2, %v3351_v6, %v4796_v7 }
 0x2a8   : > { %5108 = vrot.lane.b32.xlu1 %v5107_v11, %s5465_s12  ;;  %5103 = vrot.lane.b32.xlu0 %v5107_v11, %s5469_s17  ;;  %v4821_v30 = vunpack.i.h.bf16 %v4819_v31  ;;  %v4820_v11 = vunpack.i.l.bf16 %v4819_v31 }
 0x2a9   : > { %3764 = vmatmul.mubr.bf16.vlgmr.msra.gmra.mrb[0].mxu1 %v3572_v4  ;;  %v3415_v53 = vsel %vm1615_vm3, %v3383_v51, %v4816_v28  ;;  %v4800_v51 = vunpack.i.l.bf16 %v6908_v32 }
 0x2aa   : > { %v6930_v58 = vpop.permute.xlu1 %4828  ;;  %4121 = vmatprep.mubr.msk.bf16.mxu1 %vm276_vm0, %v3575_v44  ;;  %v4824_v50 = vpop.permute.xlu0 %4823  ;;  %v3382_v44 = vsel %vm1582_vm2, %v3350_v42, %v4795_v55  ;;  %v3447_v31 = vsel %vm1648_vm4, %v3415_v53, %v4821_v30 }
 0x2ab   : > { %v3414_v3 = vsel %vm1615_vm3, %v3382_v44, %v4815_v49  ;;  %v4826_v4 = vunpack.i.h.bf16 %v4824_v50  ;;  %v4825_v8 = vunpack.i.l.bf16 %v4824_v50  ;;  %v4801_v44 = vunpack.i.h.bf16 %v6908_v32 }
 0x2ac   : > { %5113 = vrot.lane.b32.xlu1 %v5112_v47, %s5470_s26  ;;  %5118 = vrot.lane.b32.xlu0 %v5117_v0, %s5471_s28  ;;  %v3446_v33 = vsel %vm1648_vm4, %v3414_v3, %v4820_v11  ;;  %v3352_v32 = vsel %vm276_vm0, %v6699_v60, %v4800_v51 }
 0x2ad   : > { %v3478_v7 = vsel %vm1681_vm5, %v3446_v33, %v4825_v8  ;;  %v3479_v55 = vsel %vm1681_vm5, %v3447_v31, %v4826_v4 }
 0x2ae   : > { %v6942_v25 = vpop.permute.xlu1 %4833  ;;  %v4844_v27 = vpop.permute.xlu0 %4843 }
 0x2af   : > { %v4846_v50 = vunpack.i.h.bf16 %v4844_v27  ;;  %v4845_v28 = vunpack.i.l.bf16 %v4844_v27  ;;  %v4831_v27 = vunpack.i.h.bf16 %v6930_v58 }
 0x2b0   : > { %5128 = vrot.lane.b32.xlu1 %v5117_v0, %s5468_s13  ;;  %5123 = vrot.lane.b32.xlu0 %v5112_v47, %s5467_s7  ;;  %v2376_v47 = vld [vmem:[#allocation2 + $0x120] sm:$0xff] }
 0x2b1   : > { %v5147_v6 = vpack.i.bf16 %v2377_v38, %v2376_v47  ;;  %v2409_v38 = vld [vmem:[#allocation2 + $0x129] sm:$0xff]  ;;  %v5167_v47 = vpack.i.bf16 %v6844_v10, %v6841_v61 }
 0x2b2   : > { %v4839_v57 = vpop.permute.xlu1 %4838  ;;  %v4849_v46 = vpop.permute.xlu0 %4848 }
 0x2b3   : > { %v4841_v40 = vunpack.i.h.bf16 %v4839_v57  ;;  %v4840_v5 = vunpack.i.l.bf16 %v4839_v57  ;;  %v4851_v8 = vunpack.i.h.bf16 %v4849_v46  ;;  %v4850_v57 = vunpack.i.l.bf16 %v4849_v46 }
 0x2b4   : > { %5138 = vrot.lane.b32.xlu1 %v5117_v0, %s5464_s29  ;;  %5133 = vrot.lane.b32.xlu0 %v5132_v35, %s5469_s17  ;;  %v4830_v0 = vunpack.i.l.bf16 %v6930_v58  ;;  %v2408_v58 = vld [vmem:[#allocation2 + $0x121] sm:$0xff] }
 0x2b5   : > { %v3510_v49 = vsel %vm1714_vm6, %v3478_v7, %v4840_v5  ;;  %v3511_v42 = vsel %vm1714_vm6, %v3479_v55, %v4841_v40  ;;  %v3353_v40 = vsel %vm276_vm0, %v6693_v34, %v4801_v44 }
 0x2b6   : > { %v4854_v30 = vpop.permute.xlu1 %4853  ;;  %v3542_v11 = vsel %vm1747_vm7, %v3510_v49, %v4845_v28  ;;  %v3543_v53 = vsel %vm1747_vm7, %v3511_v42, %v4846_v50  ;;  %v4859_v3 = vpop.permute.xlu0 %4858  ;;  %v3384_v46 = vsel %vm1582_vm2, %v3352_v32, %v4830_v0  ;;  %v3385_v7 = vsel %vm1582_vm2, %v3353_v40, %v4831_v27 }
 0x2b7   : > { %v3574_v4 = vpack.c.bf16 %v3543_v53, %v3542_v11  ;;  %v4856_v33 = vunpack.i.h.bf16 %v4854_v30  ;;  %v4855_v31 = vunpack.i.l.bf16 %v4854_v30  ;;  %v3416_v50 = vsel %vm1615_vm3, %v3384_v46, %v4850_v57 }
 0x2b8   : > { %5148 = vrot.lane.b32.xlu1 %v5147_v6, %s5470_s26  ;;  %5143 = vrot.lane.b32.xlu0 %v5132_v35, %s5465_s12  ;;  %v5152_v35 = vpack.i.bf16 %v2409_v38, %v2408_v58  ;;  %v3417_v60 = vsel %vm1615_vm3, %v3385_v7, %v4851_v8  ;;  %v4861_v28 = vunpack.i.h.bf16 %v4859_v3  ;;  %v4860_v34 = vunpack.i.l.bf16 %v4859_v3  ;;  %v2411_v38 = vld [vmem:[#allocation2 + $0x141] sm:$0xff]  ;;  %v7008_v7 = vld [vmem:[#allocation2 + $0x138] sm:$0xff] }
 0x2b9   : > { %3772 = vmatmul.mubr.bf16.gmra.mrb[4].mxu1 %v3574_v4  ;;  %v3448_v16 = vsel %vm1648_vm4, %v3416_v50, %v4855_v31  ;;  %v3449_v17 = vsel %vm1648_vm4, %v3417_v60, %v4856_v33  ;;  %v6997_v33 = vld [vmem:[#allocation2 + $0x140] sm:$0xff]  ;;  %v4836_v32 = vunpack.i.h.bf16 %v6942_v25  ;;  %v4835_v40 = vunpack.i.l.bf16 %v6942_v25 }
 0x2ba   : > { %v4864_v5 = vpop.permute.xlu1 %4863  ;;  %4122 = vmatprep.mubr.msk.bf16.mxu1 %vm276_vm0, %v3577_v63  ;;  %v6978_v55 = vpop.permute.xlu0 %4868  ;;  %v3480_v51 = vsel %vm1681_vm5, %v3448_v16, %v4860_v34  ;;  %v3481_v30 = vsel %vm1681_vm5, %v3449_v17, %v4861_v28  ;;  %v2410_v31 = vld [vmem:[#allocation2 + $0x139] sm:$0xff] }
 0x2bb   : > { %v5187_v46 = vpack.i.bf16 %v2411_v38, %v2410_v31  ;;  %v4866_v50 = vunpack.i.h.bf16 %v4864_v5  ;;  %v4865_v60 = vunpack.i.l.bf16 %v4864_v5  ;;  %v3355_v45 = vsel %vm276_vm0, %v6726_v39, %v4836_v32  ;;  %v7035_v38 = vld [vmem:[#allocation2 + $0x150] sm:$0xff] }
 0x2bc   : > { %5158 = vrot.lane.b32.xlu1 %v5147_v6, %s5467_s7  ;;  %5153 = vrot.lane.b32.xlu0 %v5152_v35, %s5471_s28  ;;  %v3354_v52 = vsel %vm276_vm0, %v6733_v59, %v4835_v40  ;;  %v5202_v59 = vpack.i.bf16 %v6858_v41, %v6855_v15 }
 0x2bd   : > { %v3386_v25 = vsel %vm1582_vm2, %v3354_v52, %v4865_v60  ;;  %v3387_v5 = vsel %vm1582_vm2, %v3355_v45, %v4866_v50  ;;  %v4871_v50 = vunpack.i.h.bf16 %v6978_v55  ;;  %v4870_v60 = vunpack.i.l.bf16 %v6978_v55 }
 0x2be   : > { %v4874_v63 = vpop.permute.xlu1 %4873  ;;  %v4879_v44 = vpop.permute.xlu0 %4878 }
 0x2bf   : > { %v4876_v49 = vunpack.i.h.bf16 %v4874_v63  ;;  %v4875_v42 = vunpack.i.l.bf16 %v4874_v63  ;;  %v4881_v11 = vunpack.i.h.bf16 %v4879_v44  ;;  %v4880_v53 = vunpack.i.l.bf16 %v4879_v44 }
 0x2c0   : > { %5168 = vrot.lane.b32.xlu1 %v5167_v47, %s5469_s17  ;;  %5163 = vrot.lane.b32.xlu0 %v5152_v35, %s5468_s13  ;;  %v3357_v55 = vsel %vm276_vm0, %v6754_v37, %v4871_v50  ;;  %v2430_v50 = vld [vmem:[#allocation2 + $0xaa] sm:$0xff] }
 0x2c1   : > { %v3512_v6 = vsel %vm1714_vm6, %v3480_v51, %v4875_v42  ;;  %v3513_v27 = vsel %vm1714_vm6, %v3481_v30, %v4876_v49  ;;  %v7028_v30 = vld [vmem:[#allocation2 + $0x158] sm:$0xff] }
 0x2c2   : > { %v4889_v0 = vpop.permute.xlu1 %4888  ;;  %v3544_v3 = vsel %vm1747_vm7, %v3512_v6, %v4880_v53  ;;  %v3545_v4 = vsel %vm1747_vm7, %v3513_v27, %v4881_v11  ;;  %v4884_v8 = vpop.permute.xlu0 %4883  ;;  %v5217_v40 = vpack.i.bf16 %v7028_v30, %v7035_v38 }
 0x2c3   : > { %v3576_v57 = vpack.c.bf16 %v3545_v4, %v3544_v3  ;;  %v4886_v34 = vunpack.i.h.bf16 %v4884_v8  ;;  %v4885_v16 = vunpack.i.l.bf16 %v4884_v8  ;;  %v4891_v17 = vunpack.i.h.bf16 %v4889_v0 }
 0x2c4   : > { %5178 = vrot.lane.b32.xlu1 %v5167_v47, %s5465_s12  ;;  %5173 = vrot.lane.b32.xlu0 %v5152_v35, %s5464_s29  ;;  %v5182_v35 = vpack.i.bf16 %v6997_v33, %v7008_v7  ;;  %v4890_v63 = vunpack.i.l.bf16 %v4889_v0 }
 0x2c5   : > { %3780 = vmatmul.mubr.bf16.gmra.mrb[8].mxu1 %v3576_v57  ;;  %v3419_v49 = vsel %vm1615_vm3, %v3387_v5, %v4886_v34  ;;  %v3418_v42 = vsel %vm1615_vm3, %v3386_v25, %v4885_v16 }
 0x2c6   : > { %v7002_v58 = vpop.permute.xlu1 %4898  ;;  %4123 = vmatprep.mubr.msk.bf16.mxu1 %vm276_vm0, %v3579_v21  ;;  %v4894_v28 = vpop.permute.xlu0 %4893  ;;  %v3450_v11 = vsel %vm1648_vm4, %v3418_v42, %v4890_v63  ;;  %v3451_v53 = vsel %vm1648_vm4, %v3419_v49, %v4891_v17  ;;  %v2413_v17 = vld [vmem:[#allocation2 + $0x159] sm:$0xff]  ;;  %v3356_v49 = vsel %vm276_vm0, %v6759_v56, %v4870_v60 }
 0x2c7   : > { %v4896_v44 = vunpack.i.h.bf16 %v4894_v28  ;;  %v4895_v51 = vunpack.i.l.bf16 %v4894_v28  ;;  %v4901_v34 = vunpack.i.h.bf16 %v7002_v58  ;;  %v4900_v16 = vunpack.i.l.bf16 %v7002_v58  ;;  %v2412_v58 = vld [vmem:[#allocation2 + $0x151] sm:$0xff] }
 0x2c8   : > { %5188 = vrot.lane.b32.xlu1 %v5187_v46, %s5471_s28  ;;  %5183 = vrot.lane.b32.xlu0 %v5182_v35, %s5470_s26  ;;  %v2431_v60 = vld [vmem:[#allocation2 + $0xb2] sm:$0xff] }
 0x2c9   : > { %v3482_v3 = vsel %vm1681_vm5, %v3450_v11, %v4895_v51  ;;  %v3483_v4 = vsel %vm1681_vm5, %v3451_v53, %v4896_v44  ;;  %v3388_v44 = vsel %vm1582_vm2, %v3356_v49, %v4900_v16  ;;  %v3389_v51 = vsel %vm1582_vm2, %v3357_v55, %v4901_v34  ;;  %v7087_v49 = vld [vmem:[#allocation2 + $0x168] sm:$0xff] }
 0x2ca   : > { %v7018_v21 = vpop.permute.xlu1 %4903  ;;  %v4914_v47 = vpop.permute.xlu0 %4913 }
 0x2cb   : > { %v4916_v8 = vunpack.i.h.bf16 %v4914_v47  ;;  %v4915_v57 = vunpack.i.l.bf16 %v4914_v47 }
 0x2cc   : > { %5198 = vrot.lane.b32.xlu1 %v5187_v46, %s5468_s13  ;;  %5193 = vrot.lane.b32.xlu0 %v5182_v35, %s5467_s7 }
 0x2ce   : > { %v4909_v39 = vpop.permute.xlu1 %4908  ;;  %v4919_v0 = vpop.permute.xlu0 %4918 }
 0x2cf   : > { %v4911_v6 = vunpack.i.h.bf16 %v4909_v39  ;;  %v4910_v27 = vunpack.i.l.bf16 %v4909_v39  ;;  %v4921_v25 = vunpack.i.h.bf16 %v4919_v0  ;;  %v4920_v5 = vunpack.i.l.bf16 %v4919_v0 }
 0x2d0   : > { %5208 = vrot.lane.b32.xlu1 %v5187_v46, %s5464_s29  ;;  %5203 = vrot.lane.b32.xlu0 %v5202_v59, %s5469_s17 }
 0x2d1   : > { %v3514_v31 = vsel %vm1714_vm6, %v3482_v3, %v4910_v27  ;;  %v3515_v32 = vsel %vm1714_vm6, %v3483_v4, %v4911_v6  ;;  %v3420_v11 = vsel %vm1615_vm3, %v3388_v44, %v4920_v5  ;;  %v3421_v37 = vsel %vm1615_vm3, %v3389_v51, %v4921_v25  ;;  %v7079_v25 = vld [vmem:[#allocation2 + $0x170] sm:$0xff] }
 0x2d2   : > { %v4924_v28 = vpop.permute.xlu1 %4923  ;;  %v3546_v35 = vsel %vm1747_vm7, %v3514_v31, %v4915_v57  ;;  %v3547_v46 = vsel %vm1747_vm7, %v3515_v32, %v4916_v8  ;;  %v4929_v45 = vpop.permute.xlu0 %4928  ;;  %v5237_v6 = vpack.i.bf16 %v6872_v1, %v6869_v22  ;;  %v2414_v5 = vld [vmem:[#allocation2 + $0x169] sm:$0xff] }
 0x2d3   : > { %v3578_v52 = vpack.c.bf16 %v3547_v46, %v3546_v35  ;;  %v4926_v63 = vunpack.i.h.bf16 %v4924_v28  ;;  %v4925_v47 = vunpack.i.l.bf16 %v4924_v28  ;;  %v4931_v53 = vunpack.i.h.bf16 %v4929_v45 }
 0x2d4   : > { %5218 = vrot.lane.b32.xlu1 %v5217_v40, %s5470_s26  ;;  %5213 = vrot.lane.b32.xlu0 %v5202_v59, %s5465_s12  ;;  %v5222_v59 = vpack.i.bf16 %v2413_v17, %v2412_v58  ;;  %v4930_v56 = vunpack.i.l.bf16 %v4929_v45  ;;  %v2415_v45 = vld [vmem:[#allocation2 + $0x171] sm:$0xff]  ;;  %v4906_v17 = vunpack.i.h.bf16 %v7018_v21 }
 0x2d5   : > { %3788 = vmatmul.mubr.bf16.gmra.mrb[12].mxu1 %v3578_v52  ;;  %v3452_v36 = vsel %vm1648_vm4, %v3420_v11, %v4925_v47  ;;  %v3453_v20 = vsel %vm1648_vm4, %v3421_v37, %v4926_v63  ;;  %v3583_v52 = vpack.c.bf16 %v2431_v60, %v2430_v50  ;;  %v4905_v63 = vunpack.i.l.bf16 %v7018_v21 }
 0x2d6   : > { %v4934_v42 = vpop.permute.xlu1 %4933  ;;  %4124 = vmatprep.mubr.msk.bf16.mxu1 %vm276_vm0, %v3581_v48  ;;  %v7060_v39 = vpop.permute.xlu0 %4938  ;;  %v3484_v4 = vsel %vm1681_vm5, %v3452_v36, %v4930_v56  ;;  %v3485_v8 = vsel %vm1681_vm5, %v3453_v20, %v4931_v53  ;;  %v5257_v55 = vpack.i.bf16 %v2415_v45, %v2414_v5  ;;  %v5252_v11 = vpack.i.bf16 %v7079_v25, %v7087_v49  ;;  %v2432_v5 = vld [vmem:[#allocation2 + $0xc2] sm:$0xff] }
 0x2d7   : > { %v4936_v58 = vunpack.i.h.bf16 %v4934_v42  ;;  %v4935_v44 = vunpack.i.l.bf16 %v4934_v42  ;;  %v3359_v21 = vsel %vm276_vm0, %v6784_v19, %v4906_v17  ;;  %v3358_v53 = vsel %vm276_vm0, %v6789_v18, %v4905_v63  ;;  %v2433_v17 = vld [vmem:[#allocation2 + $0xca] sm:$0xff] }
 0x2d8   : > { %5228 = vrot.lane.b32.xlu1 %v5217_v40, %s5467_s7  ;;  %5223 = vrot.lane.b32.xlu0 %v5222_v59, %s5471_s28  ;;  %v5272_v18 = vpack.i.bf16 %v6886_v29, %v6883_v26  ;;  %v4941_v63 = vunpack.i.h.bf16 %v7060_v39 }
 0x2d9   : > { %v3390_v42 = vsel %vm1582_vm2, %v3358_v53, %v4935_v44  ;;  %v3391_v36 = vsel %vm1582_vm2, %v3359_v21, %v4936_v58  ;;  %v4940_v58 = vunpack.i.l.bf16 %v7060_v39 }
 0x2da   : > { %v4944_v48 = vpop.permute.xlu1 %4943  ;;  %v4949_v3 = vpop.permute.xlu0 %4948 }
 0x2db   : > { %v4946_v27 = vunpack.i.h.bf16 %v4944_v48  ;;  %v4945_v0 = vunpack.i.l.bf16 %v4944_v48  ;;  %v4951_v57 = vunpack.i.h.bf16 %v4949_v3  ;;  %v4950_v31 = vunpack.i.l.bf16 %v4949_v3 }
 0x2dc   : > { %5238 = vrot.lane.b32.xlu1 %v5237_v6, %s5469_s17  ;;  %5233 = vrot.lane.b32.xlu0 %v5222_v59, %s5468_s13 }
 0x2dd   : > { %v3516_v32 = vsel %vm1714_vm6, %v3484_v4, %v4945_v0  ;;  %v3517_v40 = vsel %vm1714_vm6, %v3485_v8, %v4946_v27  ;;  %v2385_v8 = vld [vmem:[#allocation2 + $0x188] sm:$0xff] }
 0x2de   : > { %v4959_v28 = vpop.permute.xlu1 %4958  ;;  %v3548_v35 = vsel %vm1747_vm7, %v3516_v32, %v4950_v31  ;;  %v3549_v46 = vsel %vm1747_vm7, %v3517_v40, %v4951_v57  ;;  %v4954_v34 = vpop.permute.xlu0 %4953 }
 0x2df   : > { %v3580_v16 = vpack.c.bf16 %v3549_v46, %v3548_v35  ;;  %v4955_v37 = vunpack.i.l.bf16 %v4954_v34  ;;  %v4961_v20 = vunpack.i.h.bf16 %v4959_v28  ;;  %v4960_v48 = vunpack.i.l.bf16 %v4959_v28 }
 0x2e0   : > { %5248 = vrot.lane.b32.xlu1 %v5237_v6, %s5465_s12  ;;  %5243 = vrot.lane.b32.xlu0 %v5222_v59, %s5464_s29  ;;  %v4956_v59 = vunpack.i.h.bf16 %v4954_v34  ;;  %v2384_v34 = vld [vmem:[#allocation2 + $0x180] sm:$0xff] }
 0x2e1   : > { %3796 = vmatmul.mubr.bf16.gmra.mrb[16].mxu1 %v3580_v16  ;;  %v3422_v0 = vsel %vm1615_vm3, %v3390_v42, %v4955_v37 }
 0x2e2   : > { %v7084_v47 = vpop.permute.xlu1 %4968  ;;  %4125 = vmatprep.mubr.msk.bf16.mxu1 %vm276_vm0, %v3583_v52  ;;  %v4964_v51 = vpop.permute.xlu0 %4963  ;;  %v3423_v27 = vsel %vm1615_vm3, %v3391_v36, %v4956_v59  ;;  %v3454_v57 = vsel %vm1648_vm4, %v3422_v0, %v4960_v48  ;;  %v5287_v52 = vpack.i.bf16 %v2385_v8, %v2384_v34  ;;  %v3585_v36 = vpack.c.bf16 %v2433_v17, %v2432_v5  ;;  %v2176_v48 = vld [vmem:[#allocation2 + $0x90] sm:$0xff]  ;;  %v2387_v5 = vld [vmem:[#allocation2 + $0x1a0] sm:$0xff] }
 0x2e3   : > { %v4966_v3 = vunpack.i.h.bf16 %v4964_v51  ;;  %v4965_v4 = vunpack.i.l.bf16 %v4964_v51  ;;  %v3455_v31 = vsel %vm1648_vm4, %v3423_v27, %v4961_v20  ;;  %v4970_v59 = vunpack.i.l.bf16 %v7084_v47  ;;  %v2417_v20 = vld [vmem:[#allocation2 + $0x189] sm:$0xff] }
 0x2e4   : > { %5258 = vrot.lane.b32.xlu1 %v5257_v55, %s5471_s28  ;;  %5253 = vrot.lane.b32.xlu0 %v5252_v11, %s5470_s26 }
 0x2e5   : > { %v3486_v60 = vsel %vm1681_vm5, %v3454_v57, %v4965_v4  ;;  %v3487_v28 = vsel %vm1681_vm5, %v3455_v31, %v4966_v3  ;;  %v3360_v3 = vsel %vm276_vm0, %v2176_v48, %v4940_v58  ;;  %v2416_v4 = vld [vmem:[#allocation2 + $0x181] sm:$0xff] }
 0x2e6   : > { %v7097_v56 = vpop.permute.xlu1 %4973  ;;  %v4984_v6 = vpop.permute.xlu0 %4983  ;;  %v5292_v31 = vpack.i.bf16 %v2417_v20, %v2416_v4 }
 0x2e7   : > { %v4986_v35 = vunpack.i.h.bf16 %v4984_v6  ;;  %v4985_v46 = vunpack.i.l.bf16 %v4984_v6  ;;  %v2177_v6 = vld [vmem:[#allocation2 + $0x98] sm:$0xff] }
 0x2e8   : > { %5268 = vrot.lane.b32.xlu1 %v5257_v55, %s5468_s13  ;;  %5263 = vrot.lane.b32.xlu0 %v5252_v11, %s5467_s7  ;;  %v3361_v0 = vsel %vm276_vm0, %v2177_v6, %v4941_v63 }
 0x2ea   : > { %v4979_v19 = vpop.permute.xlu1 %4978  ;;  %v4989_v50 = vpop.permute.xlu0 %4988 }
 0x2eb   : > { %v4981_v32 = vunpack.i.h.bf16 %v4979_v19  ;;  %v4980_v40 = vunpack.i.l.bf16 %v4979_v19  ;;  %v4991_v53 = vunpack.i.h.bf16 %v4989_v50  ;;  %v4990_v42 = vunpack.i.l.bf16 %v4989_v50 }
 0x2ec   : > { %5278 = vrot.lane.b32.xlu1 %v5257_v55, %s5464_s29  ;;  %5273 = vrot.lane.b32.xlu0 %v5272_v18, %s5469_s17  ;;  %v4971_v55 = vunpack.i.h.bf16 %v7084_v47  ;;  %v3392_v19 = vsel %vm1582_vm2, %v3360_v3, %v4970_v59  ;;  %v4975_v3 = vunpack.i.l.bf16 %v7097_v56 }
 0x2ed   : > { %v3518_v16 = vsel %vm1714_vm6, %v3486_v60, %v4980_v40  ;;  %v3519_v45 = vsel %vm1714_vm6, %v3487_v28, %v4981_v32  ;;  %v3424_v32 = vsel %vm1615_vm3, %v3392_v19, %v4990_v42  ;;  %v2418_v60 = vld [vmem:[#allocation2 + $0x199] sm:$0xff]  ;;  %v2419_v28 = vld [vmem:[#allocation2 + $0x1a1] sm:$0xff] }
 0x2ee   : > { %v4994_v44 = vpop.permute.xlu1 %4993  ;;  %v3550_v51 = vsel %vm1747_vm7, %v3518_v16, %v4985_v46  ;;  %v3551_v11 = vsel %vm1747_vm7, %v3519_v45, %v4986_v35  ;;  %v4999_v37 = vpop.permute.xlu0 %4998  ;;  %v3393_v8 = vsel %vm1582_vm2, %v3361_v0, %v4971_v55  ;;  %v5307_v16 = vpack.i.bf16 %v6898_v43, %v6896_v9  ;;  %v2386_v45 = vld [vmem:[#allocation2 + $0x198] sm:$0xff]  ;;  %v2435_v42 = vld [vmem:[#allocation2 + $0xe2] sm:$0xff] }
 0x2ef   : > { %v3582_v21 = vpack.c.bf16 %v3551_v11, %v3550_v51  ;;  %v4996_v39 = vunpack.i.h.bf16 %v4994_v44  ;;  %v4995_v27 = vunpack.i.l.bf16 %v4994_v44  ;;  %v5001_v40 = vunpack.i.h.bf16 %v4999_v37 }
 0x2f0   : > { %5288 = vrot.lane.b32.xlu1 %v5287_v52, %s5470_s26  ;;  %5283 = vrot.lane.b32.xlu0 %v5272_v18, %s5465_s12  ;;  %v3425_v18 = vsel %vm1615_vm3, %v3393_v8, %v4991_v53  ;;  %v5000_v50 = vunpack.i.l.bf16 %v4999_v37  ;;  %v5317_v44 = vpack.i.bf16 %v2419_v28, %v2418_v60  ;;  %v2434_v53 = vld [vmem:[#allocation2 + $0xda] sm:$0xff]  ;;  %v4976_v0 = vunpack.i.h.bf16 %v7097_v56 }
 0x2f1   : > { %3804 = vmatmul.mubr.bf16.gmra.mrb[20].mxu1 %v3582_v21  ;;  %v3456_v35 = vsel %vm1648_vm4, %v3424_v32, %v4995_v27  ;;  %v3457_v46 = vsel %vm1648_vm4, %v3425_v18, %v4996_v39  ;;  %v5312_v21 = vpack.i.bf16 %v2387_v5, %v2386_v45  ;;  %v3587_v27 = vpack.c.bf16 %v2435_v42, %v2434_v53 }
 0x2f2   : > { %v5004_v47 = vpop.permute.xlu1 %5003  ;;  %4126 = vmatprep.mubr.msk.bf16.mxu1 %vm276_vm0, %v3585_v36  ;;  %v7128_v57 = vpop.permute.xlu0 %5008  ;;  %v3489_v51 = vsel %vm1681_vm5, %v3457_v46, %v5001_v40  ;;  %v2178_v40 = vld [vmem:[#allocation2 + $0xa8] sm:$0xff] }
 0x2f3   : > { %v5006_v19 = vunpack.i.h.bf16 %v5004_v47  ;;  %v5005_v8 = vunpack.i.l.bf16 %v5004_v47  ;;  %v3362_v28 = vsel %vm276_vm0, %v2178_v40, %v4975_v3  ;;  %v2181_v40 = vld [vmem:[#allocation2 + $0xc8] sm:$0xff] }
 0x2f4   : > { %5298 = vrot.lane.b32.xlu1 %v5287_v52, %s5467_s7  ;;  %5293 = vrot.lane.b32.xlu0 %v5292_v31, %s5471_s28  ;;  %v3488_v52 = vsel %vm1681_vm5, %v3456_v35, %v5000_v50  ;;  %v2179_v50 = vld [vmem:[#allocation2 + $0xb0] sm:$0xff]  ;;  %s7671_s7 = sshll.u32 %s5609_s23, 8 }
 0x2f5   : > { %v3363_v60 = vsel %vm276_vm0, %v2179_v50, %v4976_v0  ;;  %v3394_v46 = vsel %vm1582_vm2, %v3362_v28, %v5005_v8 }
 0x2f6   : > { %v5014_v34 = vpop.permute.xlu1 %5013  ;;  %v5019_v58 = vpop.permute.xlu0 %5018  ;;  %v3395_v56 = vsel %vm1582_vm2, %v3363_v60, %v5006_v19 }
 0x2f7   : > { %v5016_v17 = vunpack.i.h.bf16 %v5014_v34  ;;  %v5015_v63 = vunpack.i.l.bf16 %v5014_v34  ;;  %v5021_v11 = vunpack.i.h.bf16 %v5019_v58  ;;  %v5020_v55 = vunpack.i.l.bf16 %v5019_v58 }
 0x2f8   : > { %5308 = vrot.lane.b32.xlu1 %v5307_v16, %s5469_s17  ;;  %5303 = vrot.lane.b32.xlu0 %v5292_v31, %s5468_s13  ;;  %s7332_s13 = scalar_lea.vmem [#allocation6], %s7671_s7  ;;  %s4142_s17 = sshll.u32 %s5526_s22, 12 }
 0x2f9   : > { %v3520_v59 = vsel %vm1714_vm6, %v3488_v52, %v5015_v63  ;;  %v3521_v37 = vsel %vm1714_vm6, %v3489_v51, %v5016_v17  ;;  %s7459_s9 = scalar_lea.hbm %s7515_s5, %s4142_s17  ;;  %s3989_s22 = scalar_lea.sflag [#allocation5], %s5609_s23 }
 0x2fa   : > { %v5029_v36 = vpop.permute.xlu1 %5028  ;;  %v3552_v20 = vsel %vm1747_vm7, %v3520_v59, %v5020_v55  ;;  %v3553_v48 = vsel %vm1747_vm7, %v3521_v37, %v5021_v11  ;;  %v5024_v6 = vpop.permute.xlu0 %5023 }
 0x2fb   : > { %v3584_v39 = vpack.c.bf16 %v3553_v48, %v3552_v20  ;;  %v5026_v32 = vunpack.i.h.bf16 %v5024_v6  ;;  %v5025_v18 = vunpack.i.l.bf16 %v5024_v6  ;;  %v5031_v34 = vunpack.i.h.bf16 %v5029_v36 }
 0x2fc   : > { %5318 = vrot.lane.b32.xlu1 %v5317_v44, %s5471_s28  ;;  %5313 = vrot.lane.b32.xlu0 %v5312_v21, %s5470_s26  ;;  %v5030_v16 = vunpack.i.l.bf16 %v5029_v36  ;;  %v5011_v20 = vunpack.i.h.bf16 %v7128_v57  ;;  %v5010_v48 = vunpack.i.l.bf16 %v7128_v57  ;;  %s4002_s26 = sshll.u32 %s7332_s13, 4  ;;  %s7461_s26 = int_to_ptr.vmem [resolvable:$true] %s4002_s26 }
 0x2fd   : > { %3812 = vmatmul.mubr.bf16.gmra.mrb[24].mxu1 %v3584_v39  ;;  %v3427_v47 = vsel %vm1615_vm3, %v3395_v56, %v5026_v32  ;;  %v3426_v5 = vsel %vm1615_vm3, %v3394_v46, %v5025_v18  ;;  %v2180_v18 = vld [vmem:[#allocation2 + $0xc0] sm:$0xff]  ;;  %s5392_s10 = scalar_lea.vmem %s7461_s26, 4096  ;;  %p5399_p8 = scmp.lt.s32.totalorder %s7461_s26, %s5397_s14 }
 0x2fe   : > { %v5039_v4 = vpop.permute.xlu1 %5038  ;;  %4127 = vmatprep.mubr.msk.bf16.mxu1 %vm276_vm0, %v3587_v27  ;;  %v5034_v31 = vpop.permute.xlu0 %5033  ;;  %v3458_v44 = vsel %vm1648_vm4, %v3426_v5, %v5030_v16  ;;  %v3459_v52 = vsel %vm1648_vm4, %v3427_v47, %v5031_v34  ;;  %v3365_v28 = vsel %vm276_vm0, %v2181_v40, %v5011_v20  ;;  %v3364_v57 = vsel %vm276_vm0, %v2180_v18, %v5010_v48  ;;  %p5393_p6 = scmp.ne.s32.totalorder %s7461_s26, %s5392_s10  ;;  %p5400_p10 = scmp.lt.s32.totalorder %s5398_s15, %s5392_s10 }
 0x2ff   : > { %v5036_v17 = vunpack.i.h.bf16 %v5034_v31  ;;  %v5035_v63 = vunpack.i.l.bf16 %v5034_v31  ;;  %v5041_v0 = vunpack.i.h.bf16 %v5039_v4  ;;  %v5040_v3 = vunpack.i.l.bf16 %v5039_v4 }
 0x300   : > { %p5394_p12 = pnand %p5393_p6, %p7703_p11  ;;  %p5401_p0 = por %p5400_p10, %p5399_p8 }
 0x301   : > { %v3490_v59 = vsel %vm1681_vm5, %v3458_v44, %v5035_v63  ;;  %v3491_v37 = vsel %vm1681_vm5, %v3459_v52, %v5036_v17  ;;  %v3396_v4 = vsel %vm1582_vm2, %v3364_v57, %v5040_v3  ;;  %v3397_v56 = vsel %vm1582_vm2, %v3365_v28, %v5041_v0  ;;  %v2182_v3 = vld [vmem:[#allocation2 + $0xd8] sm:$0xff] }
 0x302   : > { %v7153_v35 = vpop.permute.xlu1 %5043  ;;  %v5054_v45 = vpop.permute.xlu0 %5053  ;;  %p5395_p13 = pneg %p5394_p12 }
 0x303   : > { %v5056_v21 = vunpack.i.h.bf16 %v5054_v45  ;;  %v5055_v53 = vunpack.i.l.bf16 %v5054_v45 }
 0x304   : > { %p5402_p2 = pnand %p5401_p0, %p5395_p13 }
 0x306   : > { %v5049_v58 = vpop.permute.xlu1 %5048  ;;  %v5059_v55 = vpop.permute.xlu0 %5058 }
 0x307   : > { %v5051_v51 = vunpack.i.h.bf16 %v5049_v58  ;;  %v5050_v11 = vunpack.i.l.bf16 %v5049_v58  ;;  %v5061_v31 = vunpack.i.h.bf16 %v5059_v55  ;;  %v5060_v32 = vunpack.i.l.bf16 %v5059_v55 }
 0x309   : > { %v3522_v42 = vsel %vm1714_vm6, %v3490_v59, %v5050_v11  ;;  %v3523_v36 = vsel %vm1714_vm6, %v3491_v37, %v5051_v51  ;;  %v3428_v16 = vsel %vm1615_vm3, %v3396_v4, %v5060_v32  ;;  %v3429_v45 = vsel %vm1615_vm3, %v3397_v56, %v5061_v31 }
 0x30a   : > { %v5064_v6 = vpop.permute.xlu1 %5063  ;;  %v3554_v39 = vsel %vm1747_vm7, %v3522_v42, %v5055_v53  ;;  %v3555_v27 = vsel %vm1747_vm7, %v3523_v36, %v5056_v21  ;;  %v5069_v19 = vpop.permute.xlu0 %5068  ;;  %v5046_v37 = vunpack.i.h.bf16 %v7153_v35  ;;  %v5045_v21 = vunpack.i.l.bf16 %v7153_v35 }
 0x30b   : > { %v3586_v8 = vpack.c.bf16 %v3555_v27, %v3554_v39  ;;  %v5066_v50 = vunpack.i.h.bf16 %v5064_v6  ;;  %v5065_v60 = vunpack.i.l.bf16 %v5064_v6  ;;  %v5071_v47 = vunpack.i.h.bf16 %v5069_v19 }
 0x30c   : > { %v5070_v5 = vunpack.i.l.bf16 %v5069_v19  ;;  %v2183_v19 = vld [vmem:[#allocation2 + $0xe0] sm:$0xff]  ;;  %v3366_v31 = vsel %vm276_vm0, %v2182_v3, %v5045_v21 }
 0x30d   : > { %3820 = vmatmul.mubr.bf16.gmra.mrb[28].mxu1 %v3586_v8  ;;  %v3460_v17 = vsel %vm1648_vm4, %v3428_v16, %v5065_v60  ;;  %v3461_v63 = vsel %vm1648_vm4, %v3429_v45, %v5066_v50  ;;  %v3367_v8 = vsel %vm276_vm0, %v2183_v19, %v5046_v37 }
 0x30e   : > { %v5074_v46 = vpop.permute.xlu1 %5073  ;;  %4128 = vmatprep.mubr.msk.bf16.mxu1 %vm276_vm0, %v3589_v24  ;;  %v7177_v34 = vpop.permute.xlu0 %5078  ;;  %v3492_v44 = vsel %vm1681_vm5, %v3460_v17, %v5070_v5  ;;  %v3493_v52 = vsel %vm1681_vm5, %v3461_v63, %v5071_v47 }
 0x30f   : > { %v5076_v20 = vunpack.i.h.bf16 %v5074_v46  ;;  %v5075_v48 = vunpack.i.l.bf16 %v5074_v46 }
 0x311   : > { %v3398_v35 = vsel %vm1582_vm2, %v3366_v31, %v5075_v48  ;;  %v3399_v18 = vsel %vm1582_vm2, %v3367_v8, %v5076_v20  ;;  %v2184_v20 = vld [vmem:[#allocation2 + $0xf0] sm:$0xff]  ;;  %v2185_v48 = vld [vmem:[#allocation2 + $0xf8] sm:$0xff] }
 0x312   : > { %v5084_v58 = vpop.permute.xlu1 %5083  ;;  %v5089_v24 = vpop.permute.xlu0 %5088 }
 0x313   : > { %v5086_v12 = vunpack.i.h.bf16 %v5084_v58  ;;  %v5085_v62 = vunpack.i.l.bf16 %v5084_v58  ;;  %v5091_v51 = vunpack.i.h.bf16 %v5089_v24  ;;  %v5090_v11 = vunpack.i.l.bf16 %v5089_v24 }
 0x315   : > { %v3524_v55 = vsel %vm1714_vm6, %v3492_v44, %v5085_v62  ;;  %v3525_v59 = vsel %vm1714_vm6, %v3493_v52, %v5086_v12 }
 0x316   : > { %v5099_v53 = vpop.permute.xlu1 %5098  ;;  %v3556_v42 = vsel %vm1747_vm7, %v3524_v55, %v5090_v11  ;;  %v3557_v36 = vsel %vm1747_vm7, %v3525_v59, %v5091_v51  ;;  %v5094_v6 = vpop.permute.xlu0 %5093  ;;  %v5081_v11 = vunpack.i.h.bf16 %v7177_v34  ;;  %v5080_v55 = vunpack.i.l.bf16 %v7177_v34 }
 0x317   : > { %v3588_v39 = vpack.c.bf16 %v3557_v36, %v3556_v42  ;;  %v5096_v27 = vunpack.i.h.bf16 %v5094_v6  ;;  %v5095_v0 = vunpack.i.l.bf16 %v5094_v6  ;;  %v5101_v40 = vunpack.i.h.bf16 %v5099_v53 }
 0x318   : > { %v5100_v50 = vunpack.i.l.bf16 %v5099_v53  ;;  %v3369_v6 = vsel %vm276_vm0, %v2185_v48, %v5081_v11  ;;  %v7667_v11 = vpack.c.bf16 %v6858_v41, %v6855_v15 }
 0x319   : > { %3828 = vmatmul.mubr.bf16.gmra.mrb[32].mxu1 %v3588_v39  ;;  %v3431_v28 = vsel %vm1615_vm3, %v3399_v18, %v5096_v27  ;;  %v3430_v57 = vsel %vm1615_vm3, %v3398_v35, %v5095_v0  ;;  %v3368_v39 = vsel %vm276_vm0, %v2184_v20, %v5080_v55 }
 0x31a   : > { %v5109_v32 = vpop.permute.xlu1 %5108  ;;  %4129 = vmatprep.mubr.msk.bf16.mxu1 %vm276_vm0, %v3591_v2  ;;  %v5104_v60 = vpop.permute.xlu0 %5103  ;;  %v3462_v16 = vsel %vm1648_vm4, %v3430_v57, %v5100_v50  ;;  %v3463_v54 = vsel %vm1648_vm4, %v3431_v28, %v5101_v40 }
 0x31b   : > { %v5106_v46 = vunpack.i.h.bf16 %v5104_v60  ;;  %v5105_v4 = vunpack.i.l.bf16 %v5104_v60  ;;  %v5111_v37 = vunpack.i.h.bf16 %v5109_v32  ;;  %v5110_v21 = vunpack.i.l.bf16 %v5109_v32 }
 0x31d   : > { %v3494_v47 = vsel %vm1681_vm5, %v3462_v16, %v5105_v4  ;;  %v3495_v5 = vsel %vm1681_vm5, %v3463_v54, %v5106_v46  ;;  %v3400_v34 = vsel %vm1582_vm2, %v3368_v39, %v5110_v21  ;;  %v3401_v0 = vsel %vm1582_vm2, %v3369_v6, %v5111_v37 }
 0x31e   : > { %v5114_v56 = vpop.permute.xlu1 %5113  ;;  %v5119_v45 = vpop.permute.xlu0 %5118 }
 0x31f   : > { %v5116_v14 = vunpack.i.h.bf16 %v5114_v56  ;;  %v5115_v2 = vunpack.i.l.bf16 %v5114_v56  ;;  %v5121_v17 = vunpack.i.h.bf16 %v5119_v45  ;;  %v5120_v63 = vunpack.i.l.bf16 %v5119_v45 }
 0x321   : > { %v3526_v58 = vsel %vm1714_vm6, %v3494_v47, %v5115_v2  ;;  %v3527_v12 = vsel %vm1714_vm6, %v3495_v5, %v5116_v14 }
 0x322   : > { %v5129_v62 = vpop.permute.xlu1 %5128  ;;  %v3558_v24 = vsel %vm1747_vm7, %v3526_v58, %v5120_v63  ;;  %v3559_v44 = vsel %vm1747_vm7, %v3527_v12, %v5121_v17  ;;  %v5124_v52 = vpop.permute.xlu0 %5123 }
 0x323   : > { %v3590_v51 = vpack.c.bf16 %v3559_v44, %v3558_v24  ;;  %v5126_v42 = vunpack.i.h.bf16 %v5124_v52  ;;  %v5125_v36 = vunpack.i.l.bf16 %v5124_v52  ;;  %v5131_v3 = vunpack.i.h.bf16 %v5129_v62  ;;  %v2186_v24 = vld [vmem:[#allocation2 + $0x108] sm:$0xff]  ;;  %v2187_v44 = vld [vmem:[#allocation2 + $0x110] sm:$0xff] }
 0x324   : > { %v5130_v61 = vunpack.i.l.bf16 %v5129_v62 }
 0x325   : > { %3836 = vmatmul.mubr.bf16.gmra.mrb[36].mxu1 %v3590_v51  ;;  %v3433_v19 = vsel %vm1615_vm3, %v3401_v0, %v5126_v42 }
 0x326   : > { %v5139_v59 = vpop.permute.xlu1 %5138  ;;  %4130 = vmatprep.mubr.msk.bf16.mxu1 %vm276_vm0, %v3593_v23  ;;  %v5134_v53 = vpop.permute.xlu0 %5133  ;;  %v3432_v23 = vsel %vm1615_vm3, %v3400_v34, %v5125_v36  ;;  %v3465_v50 = vsel %vm1648_vm4, %v3433_v19, %v5131_v3 }
 0x327   : > { %v5136_v8 = vunpack.i.h.bf16 %v5134_v53  ;;  %v5135_v31 = vunpack.i.l.bf16 %v5134_v53  ;;  %v3464_v40 = vsel %vm1648_vm4, %v3432_v23, %v5130_v61  ;;  %v5141_v45 = vunpack.i.h.bf16 %v5139_v59 }
 0x328   : > { %v5140_v47 = vunpack.i.l.bf16 %v5139_v59 }
 0x329   : > { %v3496_v28 = vsel %vm1681_vm5, %v3464_v40, %v5135_v31  ;;  %v3497_v57 = vsel %vm1681_vm5, %v3465_v50, %v5136_v8  ;;  %v3371_v37 = vsel %vm276_vm0, %v2187_v44, %v5141_v45 }
 0x32a   : > { %v5149_v27 = vpop.permute.xlu1 %5148  ;;  %v5144_v10 = vpop.permute.xlu0 %5143  ;;  %v3370_v59 = vsel %vm276_vm0, %v2186_v24, %v5140_v47 }
 0x32b   : > { %v5151_v32 = vunpack.i.h.bf16 %v5149_v27  ;;  %v5150_v35 = vunpack.i.l.bf16 %v5149_v27  ;;  %v5146_v63 = vunpack.i.h.bf16 %v5144_v10  ;;  %v5145_v58 = vunpack.i.l.bf16 %v5144_v10 }
 0x32d   : > { %v3528_v56 = vsel %vm1714_vm6, %v3496_v28, %v5150_v35  ;;  %v3529_v16 = vsel %vm1714_vm6, %v3497_v57, %v5151_v32  ;;  %v3403_v53 = vsel %vm1582_vm2, %v3371_v37, %v5146_v63  ;;  %v3402_v42 = vsel %vm1582_vm2, %v3370_v59, %v5145_v58 }
 0x32e   : > { %v5159_v18 = vpop.permute.xlu1 %5158  ;;  %v5154_v60 = vpop.permute.xlu0 %5153 }
 0x32f   : > { %v5156_v46 = vunpack.i.h.bf16 %v5154_v60  ;;  %v5155_v4 = vunpack.i.l.bf16 %v5154_v60  ;;  %v5161_v12 = vunpack.i.h.bf16 %v5159_v18  ;;  %v5160_v62 = vunpack.i.l.bf16 %v5159_v18 }
 0x331   : > { %v3560_v14 = vsel %vm1747_vm7, %v3528_v56, %v5155_v4  ;;  %v3561_v2 = vsel %vm1747_vm7, %v3529_v16, %v5156_v46  ;;  %v3434_v36 = vsel %vm1615_vm3, %v3402_v42, %v5160_v62  ;;  %v3435_v20 = vsel %vm1615_vm3, %v3403_v53, %v5161_v12  ;;  %v2188_v4 = vld [vmem:[#allocation2 + $0x120] sm:$0xff]  ;;  %v2189_v56 = vld [vmem:[#allocation2 + $0x128] sm:$0xff] }
 0x332   : > { %v5169_v54 = vpop.permute.xlu1 %5168  ;;  %v5164_v5 = vpop.permute.xlu0 %5163  ;;  %v3592_v17 = vpack.c.bf16 %v3561_v2, %v3560_v14 }
 0x333   : > { %v5166_v52 = vunpack.i.h.bf16 %v5164_v5  ;;  %v5165_v51 = vunpack.i.l.bf16 %v5164_v5  ;;  %v5171_v48 = vunpack.i.h.bf16 %v5169_v54  ;;  %v5170_v6 = vunpack.i.l.bf16 %v5169_v54 }
 0x334   : > { %3844 = vmatmul.mubr.bf16.gmra.mrb[40].mxu1 %v3592_v17  ;;  %v7668_v54 = vpack.c.bf16 %v6872_v1, %v6869_v22 }
 0x335   : > { %4131 = vmatprep.mubr.msk.bf16.mxu1 %vm276_vm0, %v7667_v11  ;;  %v3466_v15 = vsel %vm1648_vm4, %v3434_v36, %v5165_v51  ;;  %v3467_v41 = vsel %vm1648_vm4, %v3435_v20, %v5166_v52 }
 0x336   : > { %v5179_v55 = vpop.permute.xlu1 %5178  ;;  %v5174_v21 = vpop.permute.xlu0 %5173  ;;  %v3498_v10 = vsel %vm1681_vm5, %v3466_v15, %v5170_v6  ;;  %v3499_v23 = vsel %vm1681_vm5, %v3467_v41, %v5171_v48 }
 0x337   : > { %v5176_v40 = vunpack.i.h.bf16 %v5174_v21  ;;  %v5175_v50 = vunpack.i.l.bf16 %v5174_v21  ;;  %v5181_v57 = vunpack.i.h.bf16 %v5179_v55  ;;  %v5180_v46 = vunpack.i.l.bf16 %v5179_v55 }
 0x339   : > { %v3373_v14 = vsel %vm276_vm0, %v2189_v56, %v5176_v40  ;;  %v3372_v2 = vsel %vm276_vm0, %v2188_v4, %v5175_v50 }
 0x33a   : > { %v5189_v39 = vpop.permute.xlu1 %5188  ;;  %v5184_v0 = vpop.permute.xlu0 %5183  ;;  %v3404_v58 = vsel %vm1582_vm2, %v3372_v2, %v5180_v46  ;;  %v3405_v12 = vsel %vm1582_vm2, %v3373_v14, %v5181_v57 }
 0x33b   : > { %v5191_v27 = vunpack.i.h.bf16 %v5189_v39  ;;  %v5190_v34 = vunpack.i.l.bf16 %v5189_v39  ;;  %v5186_v3 = vunpack.i.h.bf16 %v5184_v0  ;;  %v5185_v61 = vunpack.i.l.bf16 %v5184_v0 }
 0x33d   : > { %v3530_v19 = vsel %vm1714_vm6, %v3498_v10, %v5185_v61  ;;  %v3531_v8 = vsel %vm1714_vm6, %v3499_v23, %v5186_v3 }
 0x33e   : > { %v5199_v31 = vpop.permute.xlu1 %5198  ;;  %v5194_v32 = vpop.permute.xlu0 %5193  ;;  %v3562_v35 = vsel %vm1747_vm7, %v3530_v19, %v5190_v34  ;;  %v3563_v18 = vsel %vm1747_vm7, %v3531_v8, %v5191_v27 }
 0x33f   : > { %v3594_v60 = vpack.c.bf16 %v3563_v18, %v3562_v35  ;;  %v5196_v45 = vunpack.i.h.bf16 %v5194_v32  ;;  %v5195_v47 = vunpack.i.l.bf16 %v5194_v32  ;;  %v5201_v17 = vunpack.i.h.bf16 %v5199_v31 }
 0x340   : > { %v5200_v63 = vunpack.i.l.bf16 %v5199_v31  ;;  %v7669_v31 = vpack.c.bf16 %v6886_v29, %v6883_v26 }
 0x341   : > { %3852 = vmatmul.mubr.bf16.gmra.mrb[44].mxu1 %v3594_v60  ;;  %v3436_v24 = vsel %vm1615_vm3, %v3404_v58, %v5195_v47  ;;  %v3437_v22 = vsel %vm1615_vm3, %v3405_v12, %v5196_v45 }
 0x342   : > { %v5209_v28 = vpop.permute.xlu1 %5208  ;;  %v5204_v16 = vpop.permute.xlu0 %5203  ;;  %4132 = vmatprep.mubr.msk.bf16.mxu1 %vm276_vm0, %v7668_v54  ;;  %v3468_v55 = vsel %vm1648_vm4, %v3436_v24, %v5200_v63  ;;  %v3469_v37 = vsel %vm1648_vm4, %v3437_v22, %v5201_v17 }
 0x343   : > { %v5206_v1 = vunpack.i.h.bf16 %v5204_v16  ;;  %v5205_v44 = vunpack.i.l.bf16 %v5204_v16  ;;  %v5211_v39 = vunpack.i.h.bf16 %v5209_v28  ;;  %v5210_v27 = vunpack.i.l.bf16 %v5209_v28 }
 0x345   : > { %v3500_v21 = vsel %vm1681_vm5, %v3468_v55, %v5205_v44  ;;  %v3501_v53 = vsel %vm1681_vm5, %v3469_v37, %v5206_v1  ;;  %v3375_v35 = vsel %vm276_vm0, %v6997_v33, %v5211_v39  ;;  %v3374_v18 = vsel %vm276_vm0, %v7008_v7, %v5210_v27 }
 0x346   : > { %v5219_v5 = vpop.permute.xlu1 %5218  ;;  %v5214_v62 = vpop.permute.xlu0 %5213 }
 0x347   : > { %v5221_v52 = vunpack.i.h.bf16 %v5219_v5  ;;  %v5220_v51 = vunpack.i.l.bf16 %v5219_v5  ;;  %v5216_v3 = vunpack.i.h.bf16 %v5214_v62  ;;  %v5215_v61 = vunpack.i.l.bf16 %v5214_v62 }
 0x349   : > { %v3532_v20 = vsel %vm1714_vm6, %v3500_v21, %v5220_v51  ;;  %v3533_v48 = vsel %vm1714_vm6, %v3501_v53, %v5221_v52  ;;  %v3407_v50 = vsel %vm1582_vm2, %v3375_v35, %v5216_v3  ;;  %v3406_v60 = vsel %vm1582_vm2, %v3374_v18, %v5215_v61 }
 0x34a   : > { %v5229_v11 = vpop.permute.xlu1 %5228  ;;  %v5224_v59 = vpop.permute.xlu0 %5223 }
 0x34b   : > { %v5226_v42 = vunpack.i.h.bf16 %v5224_v59  ;;  %v5225_v36 = vunpack.i.l.bf16 %v5224_v59  ;;  %v5231_v10 = vunpack.i.h.bf16 %v5229_v11  ;;  %v5230_v23 = vunpack.i.l.bf16 %v5229_v11 }
 0x34d   : > { %v3564_v15 = vsel %vm1747_vm7, %v3532_v20, %v5225_v36  ;;  %v3565_v41 = vsel %vm1747_vm7, %v3533_v48, %v5226_v42  ;;  %v3438_v28 = vsel %vm1615_vm3, %v3406_v60, %v5230_v23  ;;  %v3439_v57 = vsel %vm1615_vm3, %v3407_v50, %v5231_v10  ;;  %v2450_v10 = vld [vmem:[#allocation2 + $0x19a] sm:$0xff]  ;;  %v2451_v23 = vld [vmem:[#allocation2 + $0x1a2] sm:$0xff] }
 0x34e   : > { %v5239_v6 = vpop.permute.xlu1 %5238  ;;  %v5234_v34 = vpop.permute.xlu0 %5233  ;;  %v3596_v0 = vpack.c.bf16 %v3565_v41, %v3564_v15 }
 0x34f   : > { %v5236_v19 = vunpack.i.h.bf16 %v5234_v34  ;;  %v5235_v8 = vunpack.i.l.bf16 %v5234_v34  ;;  %v5241_v46 = vunpack.i.h.bf16 %v5239_v6  ;;  %v5240_v26 = vunpack.i.l.bf16 %v5239_v6 }
 0x350   : > { %3860 = vmatmul.mubr.bf16.gmra.mrb[48].mxu1 %v3596_v0 }
 0x351   : > { %4133 = vmatprep.mubr.msk.bf16.mxu1 %vm276_vm0, %v7669_v31  ;;  %v3470_v29 = vsel %vm1648_vm4, %v3438_v28, %v5235_v8  ;;  %v3471_v4 = vsel %vm1648_vm4, %v3439_v57, %v5236_v19 }
 0x352   : > { %v5249_v32 = vpop.permute.xlu1 %5248  ;;  %v5244_v40 = vpop.permute.xlu0 %5243  ;;  %v3502_v2 = vsel %vm1681_vm5, %v3470_v29, %v5240_v26  ;;  %v3503_v45 = vsel %vm1681_vm5, %v3471_v4, %v5241_v46  ;;  %v3603_v46 = vpack.c.bf16 %v2451_v23, %v2450_v10  ;;  %v7674_v10 = vld [vmem:[#allocation10_spill] sm:$0xff] }
 0x353   : > { %v5246_v63 = vunpack.i.h.bf16 %v5244_v40  ;;  %v5245_v58 = vunpack.i.l.bf16 %v5244_v40  ;;  %v5251_v1 = vunpack.i.h.bf16 %v5249_v32  ;;  %v5250_v44 = vunpack.i.l.bf16 %v5249_v32 }
 0x355   : > { %v3377_v51 = vsel %vm276_vm0, %v7028_v30, %v5246_v63  ;;  %v3376_v11 = vsel %vm276_vm0, %v7035_v38, %v5245_v58 }
 0x356   : > { %v5259_v56 = vpop.permute.xlu1 %5258  ;;  %v5254_v54 = vpop.permute.xlu0 %5253  ;;  %v3408_v42 = vsel %vm1582_vm2, %v3376_v11, %v5250_v44  ;;  %v3409_v36 = vsel %vm1582_vm2, %v3377_v51, %v5251_v1 }
 0x357   : > { %v5261_v33 = vunpack.i.h.bf16 %v5259_v56  ;;  %v5260_v16 = vunpack.i.l.bf16 %v5259_v56  ;;  %v5256_v7 = vunpack.i.h.bf16 %v5254_v54  ;;  %v5255_v14 = vunpack.i.l.bf16 %v5254_v54 }
 0x359   : > { %v3534_v47 = vsel %vm1714_vm6, %v3502_v2, %v5255_v14  ;;  %v3535_v5 = vsel %vm1714_vm6, %v3503_v45, %v5256_v7 }
 0x35a   : > { %v5269_v17 = vpop.permute.xlu1 %5268  ;;  %v5264_v12 = vpop.permute.xlu0 %5263  ;;  %v3566_v62 = vsel %vm1747_vm7, %v3534_v47, %v5260_v16  ;;  %v3567_v24 = vsel %vm1747_vm7, %v3535_v5, %v5261_v33 }
 0x35b   : > { %v3598_v22 = vpack.c.bf16 %v3567_v24, %v3566_v62  ;;  %v5266_v55 = vunpack.i.h.bf16 %v5264_v12  ;;  %v5265_v37 = vunpack.i.l.bf16 %v5264_v12  ;;  %v5271_v21 = vunpack.i.h.bf16 %v5269_v17 }
 0x35c   : > { %v5270_v53 = vunpack.i.l.bf16 %v5269_v17 }
 0x35d   : > { %3868 = vmatmul.mubr.bf16.gmra.mrb[52].mxu1 %v3598_v22  ;;  %v3440_v30 = vsel %vm1615_vm3, %v3408_v42, %v5265_v37  ;;  %v3441_v48 = vsel %vm1615_vm3, %v3409_v36, %v5266_v55  ;;  %v7325_v55 = vld [vmem:[%s7514_s4] ss:$0 sm:$0xff] }
 0x35e   : > { %v5279_v52 = vpop.permute.xlu1 %5278  ;;  %v5274_v59 = vpop.permute.xlu0 %5273  ;;  %4134 = vmatprep.mubr.msk.bf16.mxu1 %vm276_vm0, %v3601_v13  ;;  %v3472_v9 = vsel %vm1648_vm4, %v3440_v30, %v5270_v53  ;;  %v3473_v43 = vsel %vm1648_vm4, %v3441_v48, %v5271_v21  ;;  %v7670_v30 = vld [vmem:[#allocation11_spill] sm:$0xff] }
 0x35f   : > { %v5276_v38 = vunpack.i.h.bf16 %v5274_v59  ;;  %v5275_v6 = vunpack.i.l.bf16 %v5274_v59  ;;  %v5281_v27 = vunpack.i.h.bf16 %v5279_v52  ;;  %v5280_v34 = vunpack.i.l.bf16 %v5279_v52 }
 0x361   : > { %v3504_v0 = vsel %vm1681_vm5, %v3472_v9, %v5275_v6  ;;  %v3505_v3 = vsel %vm1681_vm5, %v3473_v43, %v5276_v38  ;;  %v3379_v26 = vsel %vm276_vm0, %v7079_v25, %v5281_v27  ;;  %v3378_v29 = vsel %vm276_vm0, %v7087_v49, %v5280_v34  ;;  %v7672_v6 = vld [vmem:[#allocation12_spill] sm:$0xff] }
 0x362   : > { %v5289_v20 = vpop.permute.xlu1 %5288  ;;  %v5284_v15 = vpop.permute.xlu0 %5283 }
 0x363   : > { %v5291_v41 = vunpack.i.h.bf16 %v5289_v20  ;;  %v5290_v39 = vunpack.i.l.bf16 %v5289_v20  ;;  %v5286_v19 = vunpack.i.h.bf16 %v5284_v15  ;;  %v5285_v8 = vunpack.i.l.bf16 %v5284_v15 }
 0x365   : > { %v3536_v35 = vsel %vm1714_vm6, %v3504_v0, %v5290_v39  ;;  %v3537_v18 = vsel %vm1714_vm6, %v3505_v3, %v5291_v41  ;;  %v3411_v33 = vsel %vm1582_vm2, %v3379_v26, %v5286_v19  ;;  %v3410_v16 = vsel %vm1582_vm2, %v3378_v29, %v5285_v8  ;;  %v7673_v0 = vld [vmem:[#allocation9_spill] sm:$0xff] }
 0x366   : > { %v5299_v13 = vpop.permute.xlu1 %5298  ;;  %v5294_v61 = vpop.permute.xlu0 %5293 }
 0x367   : > { %v5296_v31 = vunpack.i.h.bf16 %v5294_v61  ;;  %v5295_v32 = vunpack.i.l.bf16 %v5294_v61  ;;  %v5301_v40 = vunpack.i.h.bf16 %v5299_v13  ;;  %v5300_v50 = vunpack.i.l.bf16 %v5299_v13 }
 0x369   : > { %v3568_v28 = vsel %vm1747_vm7, %v3536_v35, %v5295_v32  ;;  %v3569_v57 = vsel %vm1747_vm7, %v3537_v18, %v5296_v31  ;;  %v3442_v14 = vsel %vm1615_vm3, %v3410_v16, %v5300_v50  ;;  %v3443_v2 = vsel %vm1615_vm3, %v3411_v33, %v5301_v40  ;;  %v7675_v50 = vld [vmem:[#allocation13_spill] sm:$0xff] }
 0x36a   : > { %v5309_v60 = vpop.permute.xlu1 %5308  ;;  %v5304_v4 = vpop.permute.xlu0 %5303  ;;  %v3600_v56 = vpack.c.bf16 %v3569_v57, %v3568_v28  ;;  %v7676_v57 = vld [vmem:[#allocation14_spill] sm:$0xff] }
 0x36b   : > { %v5306_v54 = vunpack.i.h.bf16 %v5304_v4  ;;  %v5305_v7 = vunpack.i.l.bf16 %v5304_v4  ;;  %v5311_v45 = vunpack.i.h.bf16 %v5309_v60  ;;  %v5310_v47 = vunpack.i.l.bf16 %v5309_v60 }
 0x36c   : > { %3876 = vmatmul.mubr.bf16.gmra.mrb[56].mxu1 %v3600_v56 }
 0x36d   : > { %v3474_v25 = vsel %vm1648_vm4, %v3442_v14, %v5305_v7  ;;  %v3475_v5 = vsel %vm1648_vm4, %v3443_v2, %v5306_v54  ;;  %4135 = vmatprep.mubr.msk.bf16.mxu1 %vm276_vm0, %v3603_v46  ;;  %v7677_v7 = vld [vmem:[#allocation15_spill] sm:$0xff] }
 0x36e   : > { %v5319_v49 = vpop.permute.xlu1 %5318  ;;  %v5314_v17 = vpop.permute.xlu0 %5313  ;;  %v3506_v24 = vsel %vm1681_vm5, %v3474_v25, %v5310_v47  ;;  %v3507_v22 = vsel %vm1681_vm5, %v3475_v5, %v5311_v45  ;;  %v7678_v45 = vld [vmem:[#allocation16_spill] sm:$0xff] }
 0x36f   : > { %v5321_v63 = vunpack.i.h.bf16 %v5319_v49  ;;  %v5320_v58 = vunpack.i.l.bf16 %v5319_v49  ;;  %v5316_v12 = vunpack.i.h.bf16 %v5314_v17  ;;  %v5315_v62 = vunpack.i.l.bf16 %v5314_v17 }
 0x371   : > { %v3538_v1 = vsel %vm1714_vm6, %v3506_v24, %v5315_v62  ;;  %v3539_v44 = vsel %vm1714_vm6, %v3507_v22, %v5316_v12  ;;  %v7679_v62 = vld [vmem:[#allocation17_spill] sm:$0xff] }
 0x372   : > { %v3570_v52 = vsel %vm1747_vm7, %v3538_v1, %v5320_v58  ;;  %v3571_v51 = vsel %vm1747_vm7, %v3539_v44, %v5321_v63  ;;  %v7680_v1 = vld [vmem:[#allocation18_spill] sm:$0xff] }
 0x373   : > { %v3602_v11 = vpack.c.bf16 %v3571_v51, %v3570_v52 }
 0x375   : > { %3884 = vmatmul.mubr.bf16.gmra.mrb[60].mxu1 %v3602_v11 }
 0x37c   : > { %v3765_v37 = vpop.f32.mrb[0].mxu1 }
 0x37d   : > { %v3766_v59 = vadd.f32 %v7325_v55, %v3765_v37  ;;  %v3767_v21 = vpop.f32.mrb[1].mxu1 }
 0x37e   : > { %v3768_v53 = vpop.f32.mrb[2].mxu1 }
 0x37f   : > { %v3892_v42 = vmax.f32 %v3766_v59, 0.0  ;;  %v3769_v36 = vadd.f32 %v7325_v55, %v3768_v53  ;;  %v3770_v20 = vpop.f32.mrb[3].mxu1 }
 0x381   : > { %v3924_v48 = vadd.f32 %v3892_v42, %v7670_v30  ;;  %v3893_v38 = vmax.f32 %v3769_v36, 0.0  ;;  %v7681_v42 = vld [vmem:[#allocation19_spill] sm:$0xff]  ;;  %v7682_v30 = vld [vmem:[#allocation20_spill] sm:$0xff] }
 0x383   : > { %3956 = vst.msk [vmem:[%s7332_s13] sm:$0xff] %vm276_vm0, %v3924_v48  ;;  %v3925_v15 = vadd.f32 %v3893_v38, %v7672_v6 }
 0x385   : > { %3957 = vst.msk [vmem:[%s7332_s13 + $0x8] sm:$0xff] %vm276_vm0, %v3925_v15 }
 0x38c   : > { %v3773_v41 = vpop.f32.mrb[4].mxu1 }
 0x38d   : > { %v3774_v39 = vadd.f32 %v7325_v55, %v3773_v41  ;;  %v3775_v9 = vpop.f32.mrb[5].mxu1 }
 0x38e   : > { %v3776_v43 = vpop.f32.mrb[6].mxu1 }
 0x38f   : > { %v3894_v13 = vmax.f32 %v3774_v39, 0.0  ;;  %v3777_v27 = vadd.f32 %v7325_v55, %v3776_v43  ;;  %v3778_v34 = vpop.f32.mrb[7].mxu1 }
 0x391   : > { %v3926_v3 = vadd.f32 %v3894_v13, %v7673_v0  ;;  %v3895_v61 = vmax.f32 %v3777_v27, 0.0  ;;  %v7683_v13 = vld [vmem:[#allocation21_spill] sm:$0xff]  ;;  %v7684_v0 = vld [vmem:[#allocation22_spill] sm:$0xff] }
 0x393   : > { %3958 = vst.msk [vmem:[%s7332_s13 + $0x10] sm:$0xff] %vm276_vm0, %v3926_v3  ;;  %v3927_v23 = vadd.f32 %v3895_v61, %v7674_v10 }
 0x395   : > { %3959 = vst.msk [vmem:[%s7332_s13 + $0x18] sm:$0xff] %vm276_vm0, %v3927_v23 }
 0x398   : > { %v3781_v19 = vpop.f32.mrb[8].mxu1 }
 0x399   : > { %v3782_v8 = vadd.f32 %v7325_v55, %v3781_v19  ;;  %v3783_v31 = vpop.f32.mrb[9].mxu1 }
 0x39a   : > { %v3784_v32 = vpop.f32.mrb[10].mxu1 }
 0x39b   : > { %v3896_v35 = vmax.f32 %v3782_v8, 0.0  ;;  %v3785_v18 = vadd.f32 %v7325_v55, %v3784_v32  ;;  %v3786_v40 = vpop.f32.mrb[11].mxu1 }
 0x39d   : > { %v3928_v60 = vadd.f32 %v3896_v35, %v7675_v50  ;;  %v3897_v28 = vmax.f32 %v3785_v18, 0.0  ;;  %v7685_v35 = vld [vmem:[#allocation23_spill] sm:$0xff]  ;;  %v7686_v50 = vld [vmem:[#allocation24_spill] sm:$0xff] }
 0x39f   : > { %3960 = vst.msk [vmem:[%s7332_s13 + $0x20] sm:$0xff] %vm276_vm0, %v3928_v60  ;;  %v3929_v46 = vadd.f32 %v3897_v28, %v7676_v57 }
 0x3a1   : > { %3961 = vst.msk [vmem:[%s7332_s13 + $0x28] sm:$0xff] %vm276_vm0, %v3929_v46 }
 0x3a8   : > { %v3789_v26 = vpop.f32.mrb[12].mxu1 }
 0x3a9   : > { %v3790_v29 = vadd.f32 %v7325_v55, %v3789_v26  ;;  %v3791_v4 = vpop.f32.mrb[13].mxu1 }
 0x3aa   : > { %v3792_v56 = vpop.f32.mrb[14].mxu1 }
 0x3ab   : > { %v3898_v33 = vmax.f32 %v3790_v29, 0.0  ;;  %v3793_v16 = vadd.f32 %v7325_v55, %v3792_v56  ;;  %v3794_v54 = vpop.f32.mrb[15].mxu1 }
 0x3ad   : > { %v3930_v14 = vadd.f32 %v3898_v33, %v7677_v7  ;;  %v3899_v2 = vmax.f32 %v3793_v16, 0.0  ;;  %v7687_v33 = vld [vmem:[#allocation25_spill] sm:$0xff]  ;;  %v7688_v7 = vld [vmem:[#allocation26_spill] sm:$0xff] }
 0x3af   : > { %3962 = vst.msk [vmem:[%s7332_s13 + $0x30] sm:$0xff] %vm276_vm0, %v3930_v14  ;;  %v3931_v47 = vadd.f32 %v3899_v2, %v7678_v45 }
 0x3b1   : > { %3963 = vst.msk [vmem:[%s7332_s13 + $0x38] sm:$0xff] %vm276_vm0, %v3931_v47 }
 0x3b4   : > { %v3797_v25 = vpop.f32.mrb[16].mxu1 }
 0x3b5   : > { %v3798_v5 = vadd.f32 %v7325_v55, %v3797_v25  ;;  %v3799_v49 = vpop.f32.mrb[17].mxu1 }
 0x3b6   : > { %v3800_v17 = vpop.f32.mrb[18].mxu1 }
 0x3b7   : > { %v3900_v63 = vmax.f32 %v3798_v5, 0.0  ;;  %v3801_v58 = vadd.f32 %v7325_v55, %v3800_v17  ;;  %v3802_v12 = vpop.f32.mrb[19].mxu1 }
 0x3b9   : > { %v3932_v24 = vadd.f32 %v3900_v63, %v7679_v62  ;;  %v3901_v22 = vmax.f32 %v3801_v58, 0.0  ;;  %v7689_v63 = vld [vmem:[#allocation27_spill] sm:$0xff]  ;;  %v7690_v62 = vld [vmem:[#allocation28_spill] sm:$0xff] }
 0x3bb   : > { %3964 = vst.msk [vmem:[%s7332_s13 + $0x40] sm:$0xff] %vm276_vm0, %v3932_v24  ;;  %v3933_v44 = vadd.f32 %v3901_v22, %v7680_v1 }
 0x3bd   : > { %3965 = vst.msk [vmem:[%s7332_s13 + $0x48] sm:$0xff] %vm276_vm0, %v3933_v44 }
 0x3c4   : > { %v3805_v52 = vpop.f32.mrb[20].mxu1 }
 0x3c5   : > { %v3806_v51 = vadd.f32 %v7325_v55, %v3805_v52  ;;  %v3807_v11 = vpop.f32.mrb[21].mxu1 }
 0x3c6   : > { %v3808_v37 = vpop.f32.mrb[22].mxu1 }
 0x3c7   : > { %v3902_v59 = vmax.f32 %v3806_v51, 0.0  ;;  %v3809_v21 = vadd.f32 %v7325_v55, %v3808_v37  ;;  %v3810_v53 = vpop.f32.mrb[23].mxu1 }
 0x3c9   : > { %v3934_v36 = vadd.f32 %v3902_v59, %v7681_v42  ;;  %v3903_v20 = vmax.f32 %v3809_v21, 0.0  ;;  %v7691_v59 = vld [vmem:[#allocation29_spill] sm:$0xff]  ;;  %v7692_v42 = vld [vmem:[#allocation30_spill] sm:$0xff] }
 0x3cb   : > { %3966 = vst.msk [vmem:[%s7332_s13 + $0x50] sm:$0xff] %vm276_vm0, %v3934_v36  ;;  %v3935_v48 = vadd.f32 %v3903_v20, %v7682_v30 }
 0x3cd   : > { %3967 = vst.msk [vmem:[%s7332_s13 + $0x58] sm:$0xff] %vm276_vm0, %v3935_v48 }
 0x3d0   : > { %v3813_v38 = vpop.f32.mrb[24].mxu1 }
 0x3d1   : > { %v3814_v6 = vadd.f32 %v7325_v55, %v3813_v38  ;;  %v3815_v15 = vpop.f32.mrb[25].mxu1 }
 0x3d2   : > { %v3816_v41 = vpop.f32.mrb[26].mxu1 }
 0x3d3   : > { %v3904_v39 = vmax.f32 %v3814_v6, 0.0  ;;  %v3817_v9 = vadd.f32 %v7325_v55, %v3816_v41  ;;  %v3818_v43 = vpop.f32.mrb[27].mxu1 }
 0x3d5   : > { %v3936_v27 = vadd.f32 %v3904_v39, %v7683_v13  ;;  %v3905_v34 = vmax.f32 %v3817_v9, 0.0  ;;  %v7693_v39 = vld [vmem:[#allocation31_spill] sm:$0xff]  ;;  %v7694_v13 = vld [vmem:[#allocation32_spill] sm:$0xff] }
 0x3d7   : > { %3968 = vst.msk [vmem:[%s7332_s13 + $0x60] sm:$0xff] %vm276_vm0, %v3936_v27  ;;  %v3937_v3 = vadd.f32 %v3905_v34, %v7684_v0 }
 0x3d9   : > { %3969 = vst.msk [vmem:[%s7332_s13 + $0x68] sm:$0xff] %vm276_vm0, %v3937_v3 }
 0x3e0   : > { %v3821_v61 = vpop.f32.mrb[28].mxu1 }
 0x3e1   : > { %v3822_v10 = vadd.f32 %v7325_v55, %v3821_v61  ;;  %v3823_v23 = vpop.f32.mrb[29].mxu1 }
 0x3e2   : > { %v3824_v19 = vpop.f32.mrb[30].mxu1 }
 0x3e3   : > { %v3906_v8 = vmax.f32 %v3822_v10, 0.0  ;;  %v3825_v31 = vadd.f32 %v7325_v55, %v3824_v19  ;;  %v3826_v32 = vpop.f32.mrb[31].mxu1 }
 0x3e5   : > { %v3938_v18 = vadd.f32 %v3906_v8, %v7685_v35  ;;  %v3907_v40 = vmax.f32 %v3825_v31, 0.0  ;;  %v7695_v8 = vld [vmem:[#allocation33_spill] sm:$0xff]  ;;  %v7696_v35 = vld [vmem:[#allocation34_spill] sm:$0xff] }
 0x3e7   : > { %3970 = vst.msk [vmem:[%s7332_s13 + $0x70] sm:$0xff] %vm276_vm0, %v3938_v18  ;;  %v3939_v60 = vadd.f32 %v3907_v40, %v7686_v50 }
 0x3e9   : > { %3971 = vst.msk [vmem:[%s7332_s13 + $0x78] sm:$0xff] %vm276_vm0, %v3939_v60 }
 0x3ec   : > { %v3829_v28 = vpop.f32.mrb[32].mxu1 }
 0x3ed   : > { %v3830_v57 = vadd.f32 %v7325_v55, %v3829_v28  ;;  %v3831_v46 = vpop.f32.mrb[33].mxu1 }
 0x3ee   : > { %v3832_v26 = vpop.f32.mrb[34].mxu1 }
 0x3ef   : > { %v3908_v29 = vmax.f32 %v3830_v57, 0.0  ;;  %v3833_v4 = vadd.f32 %v7325_v55, %v3832_v26  ;;  %v3834_v56 = vpop.f32.mrb[35].mxu1 }
 0x3f1   : > { %v3940_v16 = vadd.f32 %v3908_v29, %v7687_v33  ;;  %v3909_v54 = vmax.f32 %v3833_v4, 0.0  ;;  %v7697_v29 = vld [vmem:[#allocation35_spill] sm:$0xff]  ;;  %v7698_v33 = vld [vmem:[#allocation36_spill] sm:$0xff] }
 0x3f3   : > { %3972 = vst.msk [vmem:[%s7332_s13 + $0x80] sm:$0xff] %vm276_vm0, %v3940_v16  ;;  %v3941_v14 = vadd.f32 %v3909_v54, %v7688_v7 }
 0x3f5   : > { %3973 = vst.msk [vmem:[%s7332_s13 + $0x88] sm:$0xff] %vm276_vm0, %v3941_v14 }
 0x3f8   : > { %v3837_v2 = vpop.f32.mrb[36].mxu1 }
 0x3f9   : > { %v3838_v45 = vadd.f32 %v7325_v55, %v3837_v2  ;;  %v3839_v47 = vpop.f32.mrb[37].mxu1 }
 0x3fa   : > { %v3840_v25 = vpop.f32.mrb[38].mxu1 }
 0x3fb   : > { %v3910_v5 = vmax.f32 %v3838_v45, 0.0  ;;  %v3841_v49 = vadd.f32 %v7325_v55, %v3840_v25  ;;  %v3842_v17 = vpop.f32.mrb[39].mxu1 }
 0x3fd   : > { %v3942_v58 = vadd.f32 %v3910_v5, %v7689_v63  ;;  %v3911_v12 = vmax.f32 %v3841_v49, 0.0  ;;  %v7699_v5 = vld [vmem:[#allocation37_spill] sm:$0xff]  ;;  %v7700_v63 = vld [vmem:[#allocation38_spill] sm:$0xff] }
 0x3ff   : > { %3974 = vst.msk [vmem:[%s7332_s13 + $0x90] sm:$0xff] %vm276_vm0, %v3942_v58  ;;  %v3943_v24 = vadd.f32 %v3911_v12, %v7690_v62 }
 0x401   : > { %3975 = vst.msk [vmem:[%s7332_s13 + $0x98] sm:$0xff] %vm276_vm0, %v3943_v24 }
 0x407   : > { %v3845_v22 = vpop.f32.mrb[40].mxu1 }
 0x408   : > { %v3846_v1 = vadd.f32 %v7325_v55, %v3845_v22  ;;  %v3847_v44 = vpop.f32.mrb[41].mxu1 }
 0x409   : > { %v3848_v52 = vpop.f32.mrb[42].mxu1 }
 0x40a   : > { %v3912_v51 = vmax.f32 %v3846_v1, 0.0  ;;  %v3849_v11 = vadd.f32 %v7325_v55, %v3848_v52  ;;  %v3850_v37 = vpop.f32.mrb[43].mxu1 }
 0x40c   : > { %v3944_v21 = vadd.f32 %v3912_v51, %v7691_v59  ;;  %v3913_v53 = vmax.f32 %v3849_v11, 0.0  ;;  %v7701_v51 = vld [vmem:[#allocation39_spill] sm:$0xff]  ;;  %v7702_v59 = vld [vmem:[#allocation40_spill] sm:$0xff] }
 0x40e   : > { %3976 = vst.msk [vmem:[%s7332_s13 + $0xa0] sm:$0xff] %vm276_vm0, %v3944_v21  ;;  %v3945_v36 = vadd.f32 %v3913_v53, %v7692_v42 }
 0x410   : > { %3977 = vst.msk [vmem:[%s7332_s13 + $0xa8] sm:$0xff] %vm276_vm0, %v3945_v36 }
 0x414   : > { %v3853_v20 = vpop.f32.mrb[44].mxu1 }
 0x415   : > { %v3854_v30 = vadd.f32 %v7325_v55, %v3853_v20  ;;  %v3855_v48 = vpop.f32.mrb[45].mxu1 }
 0x416   : > { %v3856_v38 = vpop.f32.mrb[46].mxu1 }
 0x417   : > { %v3914_v6 = vmax.f32 %v3854_v30, 0.0  ;;  %v3857_v15 = vadd.f32 %v7325_v55, %v3856_v38  ;;  %v3858_v41 = vpop.f32.mrb[47].mxu1 }
 0x419   : > { %v3946_v9 = vadd.f32 %v3914_v6, %v7693_v39  ;;  %v3915_v43 = vmax.f32 %v3857_v15, 0.0 }
 0x41b   : > { %3978 = vst.msk [vmem:[%s7332_s13 + $0xb0] sm:$0xff] %vm276_vm0, %v3946_v9  ;;  %v3947_v27 = vadd.f32 %v3915_v43, %v7694_v13 }
 0x41d   : > { %3979 = vst.msk [vmem:[%s7332_s13 + $0xb8] sm:$0xff] %vm276_vm0, %v3947_v27 }
 0x423   : > { %v3861_v34 = vpop.f32.mrb[48].mxu1 }
 0x424   : > { %v3862_v0 = vadd.f32 %v7325_v55, %v3861_v34  ;;  %v3863_v3 = vpop.f32.mrb[49].mxu1 }
 0x425   : > { %v3864_v61 = vpop.f32.mrb[50].mxu1 }
 0x426   : > { %v3916_v10 = vmax.f32 %v3862_v0, 0.0  ;;  %v3865_v23 = vadd.f32 %v7325_v55, %v3864_v61  ;;  %v3866_v19 = vpop.f32.mrb[51].mxu1 }
 0x428   : > { %v3948_v31 = vadd.f32 %v3916_v10, %v7695_v8  ;;  %v3917_v32 = vmax.f32 %v3865_v23, 0.0 }
 0x42a   : > { %3980 = vst.msk [vmem:[%s7332_s13 + $0xc0] sm:$0xff] %vm276_vm0, %v3948_v31  ;;  %v3949_v18 = vadd.f32 %v3917_v32, %v7696_v35 }
 0x42c   : > { %3981 = vst.msk [vmem:[%s7332_s13 + $0xc8] sm:$0xff] %vm276_vm0, %v3949_v18 }
 0x430   : > { %v3869_v40 = vpop.f32.mrb[52].mxu1 }
 0x431   : > { %v3870_v50 = vadd.f32 %v7325_v55, %v3869_v40  ;;  %v3871_v60 = vpop.f32.mrb[53].mxu1 }
 0x432   : > { %v3872_v28 = vpop.f32.mrb[54].mxu1 }
 0x433   : > { %v3918_v57 = vmax.f32 %v3870_v50, 0.0  ;;  %v3873_v46 = vadd.f32 %v7325_v55, %v3872_v28  ;;  %v3874_v26 = vpop.f32.mrb[55].mxu1 }
 0x435   : > { %v3950_v4 = vadd.f32 %v3918_v57, %v7697_v29  ;;  %v3919_v56 = vmax.f32 %v3873_v46, 0.0 }
 0x437   : > { %3982 = vst.msk [vmem:[%s7332_s13 + $0xd0] sm:$0xff] %vm276_vm0, %v3950_v4  ;;  %v3951_v16 = vadd.f32 %v3919_v56, %v7698_v33 }
 0x439   : > { %3983 = vst.msk [vmem:[%s7332_s13 + $0xd8] sm:$0xff] %vm276_vm0, %v3951_v16 }
 0x43f   : > { %v3877_v54 = vpop.f32.mrb[56].mxu1 }
 0x440   : > { %v3878_v7 = vadd.f32 %v7325_v55, %v3877_v54  ;;  %v3879_v14 = vpop.f32.mrb[57].mxu1 }
 0x441   : > { %v3880_v2 = vpop.f32.mrb[58].mxu1 }
 0x442   : > { %v3920_v45 = vmax.f32 %v3878_v7, 0.0  ;;  %v3881_v47 = vadd.f32 %v7325_v55, %v3880_v2  ;;  %v3882_v25 = vpop.f32.mrb[59].mxu1 }
 0x444   : > { %v3952_v49 = vadd.f32 %v3920_v45, %v7699_v5  ;;  %v3921_v17 = vmax.f32 %v3881_v47, 0.0 }
 0x446   : > { %3984 = vst.msk [vmem:[%s7332_s13 + $0xe0] sm:$0xff] %vm276_vm0, %v3952_v49  ;;  %v3953_v58 = vadd.f32 %v3921_v17, %v7700_v63 }
 0x448   : > { %3985 = vst.msk [vmem:[%s7332_s13 + $0xe8] sm:$0xff] %vm276_vm0, %v3953_v58  ;;  %v3885_v12 = vpop.f32.mrb[60].mxu1 }
 0x449   : > { %v3886_v62 = vadd.f32 %v7325_v55, %v3885_v12  ;;  %v3887_v24 = vpop.f32.mrb[61].mxu1 }
 0x44a   : > { %v3888_v22 = vpop.f32.mrb[62].mxu1 }
 0x44b   : > { %v3922_v1 = vmax.f32 %v3886_v62, 0.0  ;;  %v3889_v44 = vadd.f32 %v7325_v55, %v3888_v22  ;;  %v3890_v52 = vpop.f32.mrb[63].mxu1 }
 0x44d   : > { %v3954_v11 = vadd.f32 %v3922_v1, %v7701_v51  ;;  %v3923_v37 = vmax.f32 %v3889_v44, 0.0 }
 0x44f   : > { %3986 = vst.msk [vmem:[%s7332_s13 + $0xf0] sm:$0xff] %vm276_vm0, %v3954_v11  ;;  %v3955_v55 = vadd.f32 %v3923_v37, %v7702_v59 }
 0x451   : > { %3987 = vst.msk [vmem:[%s7332_s13 + $0xf8] sm:$0xff] %vm276_vm0, %v3955_v55 }
 0x452   : > { %5405 = shalt.err (!%p5402_p2)
}
 0x453   : > { %s5406_s16 = scalar_lea.hbm %s7459_s9, 4096  ;;  %s5410_s12 = scalar_lea.hbm %s7515_s5, 8192 }
 0x454   : > { %p5407_p4 = scmp.ne.s32.totalorder %s7459_s9, %s5406_s16  ;;  %p5411_p9 = scmp.lt.u32.totalorder %s7459_s9, %s7515_s5 }
 0x455   : > { %p5412_p1 = scmp.lt.u32.totalorder %s5410_s12, %s5406_s16  ;;  %p5414_p6 = scmp.lt.u32.totalorder %s5406_s16, %s7459_s9 }
 0x456   : > { %p5408_p5 = pnand %p5407_p4, %p7703_p11 }
 0x457   : > { %p5413_p3 = por %p5412_p1, %p5411_p9 }
 0x458   : > { %p5409_p7 = pneg %p5408_p5 }
 0x459   : > { %p5415_p12 = por %p5414_p6, %p5413_p3 }
 0x45b   : > { %p5416_p13 = pnand %p5415_p12, %p5409_p7 }
 0x45d   : > { %5419 = shalt.err (!%p5416_p13)
}
 0x45e   : > { %s5473_s17 = smov 128   ;;  %s5474_s28 = smov 8  }
 0x45f   : > { %4145 = dma.vmem_to_hbm [thread:$0]  (%p7703_p11), %s7461_s26, 4096, %s7459_s9, %s3989_s22, %s5473_s17, %s5473_s17, %s5474_s28  }
 0x460 PF: > { %s4017_s25 = sand.u32 1, %s5446_s18   ;;  %p7704_p8 = scmp.ne.s32.totalorder %s7581_s6, 0 }
 0x461   : > { %p7705_p10 = scmp.ge.s32.totalorder %s5458_s21, 2  ;;  %s4018_s10 = scalar_lea.sflag [#allocation5], %s4017_s25 }
 0x463   : > { %p4152_p0 = pnand %p7705_p10, %p7704_p8 }
 0x465   : > { %5441 = dma.done.wait (!%p4152_p0), %s4018_s10, 4096  }
 0x466   : > { %5443 = vsyncadd (!%p4152_p0), %s4018_s10, 4294963200  ;;  %p18_p2 = scmp.ge.s32.totalorder %s5530_s24, 4   ;;  %s7706_s18 = smov %s5450_s19 }
 0x467   : > { %s7707_s19 = smov %s5454_s20  ;;  %s7708_s20 = smov %s5542_s27 }
 0x468   : > { %s7709_s21 = smov %s5530_s24  ;;  %20 = sbr.rel (!%p18_p2) target bundleno = 5 (0x5), region = 87 }
 0x46f   :  { %4023 = vsyncpa [#allocation4], 1 }
 0x470   :  { %4025 = vsyncpa [#allocation4 + $0x1], 1 }
 0x471   :  { %4026 = vsyncpa [#allocation5], 1 }
 0x472   :  { %4028 = vsyncpa [#allocation5 + $0x1], 1 }

</bundles_post_ra>
